<compile_context>
chip_gen: v7x
topology: tpu7x:2x2x1
jax: 0.10.0
libtpu: 0.0.40
codegen_flags: <defaults>
</compile_context>

<pallas_src>
import functools
import math

import jax
import jax.numpy as jnp
from jax.experimental import pallas as pl
from jax.experimental.pallas import tpu as pltpu


# ----------------------------- shift helpers ------------------------------- #

def _shift_cols(y, dx):
    """out[b, i, j, :] = y[b, i, j+dx, :], zero-filled outside the map."""
    if dx == 0:
        return y
    n, h, w, c = y.shape
    zero = jnp.zeros((n, h, abs(dx), c), y.dtype)
    if dx > 0:
        return jnp.concatenate([y[:, :, dx:, :], zero], axis=2)
    return jnp.concatenate([zero, y[:, :, :dx, :]], axis=2)


def _shift_rows(y, dy):
    """out[b, i, j, :] = y[b, i+dy, j, :], zero-filled outside the map."""
    if dy == 0:
        return y
    n, h, w, c = y.shape
    zero = jnp.zeros((n, abs(dy), w, c), y.dtype)
    if dy > 0:
        return jnp.concatenate([y[:, dy:, :, :], zero], axis=1)
    return jnp.concatenate([zero, y[:, :dy, :, :]], axis=1)


# ------------------------------ Pallas kernel ------------------------------ #

def _hgstem_kernel(xs_ref, w1_ref, w2a_ref, w2b_ref, w3_ref, w4_ref, out_ref,
                   *, n, h, cm, c2):
    """Whole stem, whole batch, one invocation.  Channels-last (B, h, h, C) maps."""
    f32, bf16 = jnp.float32, jnp.bfloat16
    P = n * h * h                                     # matmul M dim (= 128 here)

    def conv_relu(maps, w_ref):
        # maps: list of (n, h, h, Ck) taps -> one fused-K bf16 matmul + f32 ReLU.
        k = jnp.concatenate(maps, axis=-1)
        k = k.reshape(P, k.shape[-1]).astype(bf16)
        y = jnp.dot(k, w_ref[...], preferred_element_type=f32)
        return jnp.maximum(y, 0.0)                    # (P, Cout) f32

    # ---- stem1: 3x3 stride-2 conv.  Tap (dy, dx) is a unit-stride slice of the
    #      space-to-depth input: xs[(dy%2)*2 + dx%2, :, dy//2:, dx//2:, :].
    taps1 = [
        xs_ref[(dy % 2) * 2 + (dx % 2), :,
               dy // 2:dy // 2 + h, dx // 2:dx // 2 + h, :]
        for dy in range(3) for dx in range(3)
    ]
    y1 = conv_relu(taps1, w1_ref).reshape(n, h, h, cm)

    # ---- F.pad(x,[0,1,0,1]) + stem2a (2x2, s1): the right/bottom halo is
    #      realised as zero-fill shifts of the stem1 map.
    t01 = _shift_cols(y1, 1)
    t10 = _shift_rows(y1, 1)
    t11 = _shift_rows(t01, 1)
    y2a = conv_relu([y1, t01, t10, t11], w2a_ref).reshape(n, h, h, cm // 2)

    # ---- maxpool(k=2, s=1, ceil_mode) on the same padded map: max of the taps
    #      (pad zeros never win since y1 >= 0 after ReLU, matching torch).
    pool = jnp.maximum(jnp.maximum(y1, t01), jnp.maximum(t10, t11))

    # ---- F.pad + stem2b (2x2, s1)
    u01 = _shift_cols(y2a, 1)
    u10 = _shift_rows(y2a, 1)
    u11 = _shift_rows(u01, 1)
    y2b = conv_relu([y2a, u01, u10, u11], w2b_ref).reshape(n, h, h, cm)

    # ---- torch.cat([pool, stem2b], dim=1); stem3 (3x3 s2 p1) evaluated as its
    #      stride-1 counterpart (the stride-2 pixels are the even (i, j) rows
    #      and cols of this slab, sliced out on the host for free).
    z = jnp.concatenate([pool, y2b], axis=-1)                    # (n, h, h, 2*cm)
    zc = {dx: _shift_cols(z, dx) for dx in (-1, 0, 1)}
    taps3 = [_shift_rows(zc[dx], dy) for dy in (-1, 0, 1) for dx in (-1, 0, 1)]
    y3 = conv_relu(taps3, w3_ref)                                 # (P, cm)

    # ---- stem4: 1x1 conv + ReLU
    y4 = jnp.maximum(
        jnp.dot(y3.astype(bf16), w4_ref[...], preferred_element_type=f32), 0.0)
    out_ref[...] = y4.reshape(n, h, h, c2)


# ------------------------------- JAX wrapper -------------------------------- #

def hgstem_forward(x, params):
    """x: (B, c1, H, W) float32 NCHW -> (B, c2, H//4, W//4), matching HGStem."""
    B, c1, H, W = x.shape
    assert H == W and H % 4 == 0
    cm, c2 = params["w4"].shape
    assert params["w1"].shape == (9 * c1, cm)
    h1 = H // 2

    # Host prep (cheap, no data expansion): pad=1 (stem1 autopad), NCHW->NHWC,
    # and a space-to-depth reorder so that the 9 stride-2 stem1 taps become
    # unit-stride in-kernel slices:
    #   xs[py*2+px, b, r, c, ci] == xpad[b, ci, 2r+py, 2c+px]
    xpad = jnp.pad(x, ((0, 0), (0, 0), (1, 1), (1, 1)))
    xs = (xpad.transpose(0, 2, 3, 1)
              .reshape(B, h1 + 1, 2, h1 + 1, 2, c1)
              .transpose(2, 4, 0, 1, 3, 5)
              .reshape(4, B, h1 + 1, h1 + 1, c1))

    kern = functools.partial(_hgstem_kernel, n=B, h=h1, cm=cm, c2=c2)
    vmem = lambda: pl.BlockSpec(memory_space=pltpu.MemorySpace.VMEM)

    full = pl.pallas_call(
        kern,
        out_shape=jax.ShapeDtypeStruct((B, h1, h1, c2), jnp.float32),
        in_specs=[vmem() for _ in range(6)],
        out_specs=vmem(),
    )(xs,
      params["w1"].astype(jnp.bfloat16),
      params["w2a"].astype(jnp.bfloat16),
      params["w2b"].astype(jnp.bfloat16),
      params["w3"].astype(jnp.bfloat16),
      params["w4"].astype(jnp.bfloat16))

    # stem3's stride 2 == keep the even (i, j) pixels of the stride-1 slab;
    # NHWC -> NCHW to match the PyTorch module (tiny tensors, trivial XLA ops).
    return full[:, ::2, ::2, :].transpose(0, 3, 1, 2)


# ----------------------------------- main ----------------------------------- #

if __name__ == "__main__":
    key = jax.random.PRNGKey(0)
    kx, k1, k2a, k2b, k3, k4 = jax.random.split(key, 6)

    B, c1, H, W = 2, 4, 16, 16
    cm, c2 = 16, 32

    # BN(eval, default running stats) folds to a 1/sqrt(1+eps) scale on the conv
    # weights.  Fused-K 2-D weight layout, rows ordered (tap k, cin):
    #   w1 [k*c1 + ci, co]     == stem1.conv.weight[co, ci, k//3, k%3] * s
    #   w2a[k*cm + ci, co]     == stem2a.conv.weight[co, ci, k//2, k%2] * s
    #   w2b[k*(cm//2)+ci, co]  == stem2b.conv.weight[co, ci, k//2, k%2] * s
    #   w3 [k*2cm + ci, co]    == stem3.conv.weight[co, ci, k//3, k%3] * s
    #                             (cin order: [maxpool branch, stem2b branch])
    #   w4 [ci, co]            == stem4.conv.weight[co, ci, 0, 0] * s
    s = 1.0 / math.sqrt(1.0 + 1e-5)
    params = {
        "w1":  jax.random.normal(k1,  (9 * c1, cm), jnp.float32) * (9 * c1) ** -0.5 * s,
        "w2a": jax.random.normal(k2a, (4 * cm, cm // 2), jnp.float32) * (4 * cm) ** -0.5 * s,
        "w2b": jax.random.normal(k2b, (4 * (cm // 2), cm), jnp.float32) * (4 * cm // 2) ** -0.5 * s,
        "w3":  jax.random.normal(k3,  (9 * 2 * cm, cm), jnp.float32) * (9 * 2 * cm) ** -0.5 * s,
        "w4":  jax.random.normal(k4,  (cm, c2), jnp.float32) * cm ** -0.5 * s,
    }

    x = jax.random.normal(kx, (B, c1, H, W), jnp.float32)

    out = jax.block_until_ready(jax.jit(hgstem_forward)(x, params))

    assert out.shape == (B, c2, H // 4, W // 4), out.shape
    assert bool(jnp.all(jnp.isfinite(out)))
    print("KERNEL_OK")
</pallas_src>

<mosaic_0001>
module attributes {stable_mosaic.version = 11 : i64} {
  func.func @_hgstem_kernel(%arg0: memref<4x2x9x9x4xf32, #tpu.memory_space<vmem>>, %arg1: memref<36x16xbf16, #tpu.memory_space<vmem>>, %arg2: memref<64x8xbf16, #tpu.memory_space<vmem>>, %arg3: memref<32x16xbf16, #tpu.memory_space<vmem>>, %arg4: memref<288x16xbf16, #tpu.memory_space<vmem>>, %arg5: memref<16x32xbf16, #tpu.memory_space<vmem>>, %arg6: memref<2x8x8x32xf32, #tpu.memory_space<vmem>>) attributes {dimension_semantics = [], scalar_prefetch = 0 : i64, scratch_operands = 0 : i64, tpu.core_type = #tpu.core_type<tc>} {
    %c0 = arith.constant 0 : index
    %c0_0 = arith.constant 0 : index
    %c0_1 = arith.constant 0 : index
    %c0_2 = arith.constant 0 : index
    %c0_3 = arith.constant 0 : index
    %0 = vector.load %arg0[%c0, %c0_0, %c0_1, %c0_2, %c0_3] : memref<4x2x9x9x4xf32, #tpu.memory_space<vmem>>, vector<1x2x8x8x4xf32>
    %1 = vector.shape_cast %0 : vector<1x2x8x8x4xf32> to vector<2x8x8x4xf32>
    %c1 = arith.constant 1 : index
    %c0_4 = arith.constant 0 : index
    %c0_5 = arith.constant 0 : index
    %c0_6 = arith.constant 0 : index
    %c0_7 = arith.constant 0 : index
    %2 = vector.load %arg0[%c1, %c0_4, %c0_5, %c0_6, %c0_7] : memref<4x2x9x9x4xf32, #tpu.memory_space<vmem>>, vector<1x2x8x8x4xf32>
    %3 = vector.shape_cast %2 : vector<1x2x8x8x4xf32> to vector<2x8x8x4xf32>
    %c0_8 = arith.constant 0 : index
    %c0_9 = arith.constant 0 : index
    %c0_10 = arith.constant 0 : index
    %c1_11 = arith.constant 1 : index
    %c0_12 = arith.constant 0 : index
    %4 = vector.load %arg0[%c0_8, %c0_9, %c0_10, %c1_11, %c0_12] : memref<4x2x9x9x4xf32, #tpu.memory_space<vmem>>, vector<1x2x8x8x4xf32>
    %5 = vector.shape_cast %4 : vector<1x2x8x8x4xf32> to vector<2x8x8x4xf32>
    %c2 = arith.constant 2 : index
    %c0_13 = arith.constant 0 : index
    %c0_14 = arith.constant 0 : index
    %c0_15 = arith.constant 0 : index
    %c0_16 = arith.constant 0 : index
    %6 = vector.load %arg0[%c2, %c0_13, %c0_14, %c0_15, %c0_16] : memref<4x2x9x9x4xf32, #tpu.memory_space<vmem>>, vector<1x2x8x8x4xf32>
    %7 = vector.shape_cast %6 : vector<1x2x8x8x4xf32> to vector<2x8x8x4xf32>
    %c3 = arith.constant 3 : index
    %c0_17 = arith.constant 0 : index
    %c0_18 = arith.constant 0 : index
    %c0_19 = arith.constant 0 : index
    %c0_20 = arith.constant 0 : index
    %8 = vector.load %arg0[%c3, %c0_17, %c0_18, %c0_19, %c0_20] : memref<4x2x9x9x4xf32, #tpu.memory_space<vmem>>, vector<1x2x8x8x4xf32>
    %9 = vector.shape_cast %8 : vector<1x2x8x8x4xf32> to vector<2x8x8x4xf32>
    %c2_21 = arith.constant 2 : index
    %c0_22 = arith.constant 0 : index
    %c0_23 = arith.constant 0 : index
    %c1_24 = arith.constant 1 : index
    %c0_25 = arith.constant 0 : index
    %10 = vector.load %arg0[%c2_21, %c0_22, %c0_23, %c1_24, %c0_25] : memref<4x2x9x9x4xf32, #tpu.memory_space<vmem>>, vector<1x2x8x8x4xf32>
    %11 = vector.shape_cast %10 : vector<1x2x8x8x4xf32> to vector<2x8x8x4xf32>
    %c0_26 = arith.constant 0 : index
    %c0_27 = arith.constant 0 : index
    %c1_28 = arith.constant 1 : index
    %c0_29 = arith.constant 0 : index
    %c0_30 = arith.constant 0 : index
    %12 = vector.load %arg0[%c0_26, %c0_27, %c1_28, %c0_29, %c0_30] : memref<4x2x9x9x4xf32, #tpu.memory_space<vmem>>, vector<1x2x8x8x4xf32>
    %13 = vector.shape_cast %12 : vector<1x2x8x8x4xf32> to vector<2x8x8x4xf32>
    %c1_31 = arith.constant 1 : index
    %c0_32 = arith.constant 0 : index
    %c1_33 = arith.constant 1 : index
    %c0_34 = arith.constant 0 : index
    %c0_35 = arith.constant 0 : index
    %14 = vector.load %arg0[%c1_31, %c0_32, %c1_33, %c0_34, %c0_35] : memref<4x2x9x9x4xf32, #tpu.memory_space<vmem>>, vector<1x2x8x8x4xf32>
    %15 = vector.shape_cast %14 : vector<1x2x8x8x4xf32> to vector<2x8x8x4xf32>
    %c0_36 = arith.constant 0 : index
    %c0_37 = arith.constant 0 : index
    %c1_38 = arith.constant 1 : index
    %c1_39 = arith.constant 1 : index
    %c0_40 = arith.constant 0 : index
    %16 = vector.load %arg0[%c0_36, %c0_37, %c1_38, %c1_39, %c0_40] : memref<4x2x9x9x4xf32, #tpu.memory_space<vmem>>, vector<1x2x8x8x4xf32>
    %17 = vector.shape_cast %16 : vector<1x2x8x8x4xf32> to vector<2x8x8x4xf32>
    %18 = tpu.concatenate %1, %3, %5, %7, %9, %11, %13, %15, %17 in 3 : vector<2x8x8x4xf32>, vector<2x8x8x4xf32>, vector<2x8x8x4xf32>, vector<2x8x8x4xf32>, vector<2x8x8x4xf32>, vector<2x8x8x4xf32>, vector<2x8x8x4xf32>, vector<2x8x8x4xf32>, vector<2x8x8x4xf32> -> vector<2x8x8x36xf32>
    %19 = vector.shape_cast %18 : vector<2x8x8x36xf32> to vector<128x36xf32>
    %20 = arith.truncf %19 : vector<128x36xf32> to vector<128x36xbf16>
    %c0_41 = arith.constant 0 : index
    %c0_42 = arith.constant 0 : index
    %21 = vector.load %arg1[%c0_41, %c0_42] : memref<36x16xbf16, #tpu.memory_space<vmem>>, vector<36x16xbf16>
    %cst = arith.constant dense<0.000000e+00> : vector<128x16xf32>
    %22 = tpu.matmul %20, %21, %cst {dimension_numbers = #tpu.dot_dimension_numbers<[1], [0], [0], [1], [0, 0, 1, 1], [], []>} : vector<128x36xbf16>, vector<36x16xbf16>, vector<128x16xf32> -> vector<128x16xf32>
    %cst_43 = arith.constant 0.000000e+00 : f32
    %23 = vector.broadcast %cst_43 : f32 to vector<128x16xf32>
    %24 = arith.maximumf %22, %23 : vector<128x16xf32>
    %25 = vector.shape_cast %24 : vector<128x16xf32> to vector<2x8x8x16xf32>
    %cst_44 = arith.constant 0.000000e+00 : f32
    %26 = vector.broadcast %cst_44 : f32 to vector<2x8x1x16xf32>
    %27 = vector.extract_strided_slice %25 {offsets = [0, 0, 1, 0], sizes = [2, 8, 7, 16], strides = [1, 1, 1, 1]} : vector<2x8x8x16xf32> to vector<2x8x7x16xf32>
    %28 = tpu.concatenate %27, %26 in 2 : vector<2x8x7x16xf32>, vector<2x8x1x16xf32> -> vector<2x8x8x16xf32>
    %cst_45 = arith.constant 0.000000e+00 : f32
    %29 = vector.broadcast %cst_45 : f32 to vector<2x1x8x16xf32>
    %30 = vector.extract_strided_slice %25 {offsets = [0, 1, 0, 0], sizes = [2, 7, 8, 16], strides = [1, 1, 1, 1]} : vector<2x8x8x16xf32> to vector<2x7x8x16xf32>
    %31 = tpu.concatenate %30, %29 in 1 : vector<2x7x8x16xf32>, vector<2x1x8x16xf32> -> vector<2x8x8x16xf32>
    %cst_46 = arith.constant 0.000000e+00 : f32
    %32 = vector.broadcast %cst_46 : f32 to vector<2x1x8x16xf32>
    %33 = vector.extract_strided_slice %28 {offsets = [0, 1, 0, 0], sizes = [2, 7, 8, 16], strides = [1, 1, 1, 1]} : vector<2x8x8x16xf32> to vector<2x7x8x16xf32>
    %34 = tpu.concatenate %33, %32 in 1 : vector<2x7x8x16xf32>, vector<2x1x8x16xf32> -> vector<2x8x8x16xf32>
    %35 = tpu.concatenate %25, %28, %31, %34 in 3 : vector<2x8x8x16xf32>, vector<2x8x8x16xf32>, vector<2x8x8x16xf32>, vector<2x8x8x16xf32> -> vector<2x8x8x64xf32>
    %36 = vector.shape_cast %35 : vector<2x8x8x64xf32> to vector<128x64xf32>
    %37 = arith.truncf %36 : vector<128x64xf32> to vector<128x64xbf16>
    %c0_47 = arith.constant 0 : index
    %c0_48 = arith.constant 0 : index
    %38 = vector.load %arg2[%c0_47, %c0_48] : memref<64x8xbf16, #tpu.memory_space<vmem>>, vector<64x8xbf16>
    %cst_49 = arith.constant dense<0.000000e+00> : vector<128x8xf32>
    %39 = tpu.matmul %37, %38, %cst_49 {dimension_numbers = #tpu.dot_dimension_numbers<[1], [0], [0], [1], [0, 0, 1, 1], [], []>} : vector<128x64xbf16>, vector<64x8xbf16>, vector<128x8xf32> -> vector<128x8xf32>
    %cst_50 = arith.constant 0.000000e+00 : f32
    %40 = vector.broadcast %cst_50 : f32 to vector<128x8xf32>
    %41 = arith.maximumf %39, %40 : vector<128x8xf32>
    %42 = vector.shape_cast %41 : vector<128x8xf32> to vector<2x8x8x8xf32>
    %43 = arith.maximumf %25, %28 : vector<2x8x8x16xf32>
    %44 = arith.maximumf %31, %34 : vector<2x8x8x16xf32>
    %45 = arith.maximumf %43, %44 : vector<2x8x8x16xf32>
    %cst_51 = arith.constant 0.000000e+00 : f32
    %46 = vector.broadcast %cst_51 : f32 to vector<2x8x1x8xf32>
    %47 = vector.extract_strided_slice %42 {offsets = [0, 0, 1, 0], sizes = [2, 8, 7, 8], strides = [1, 1, 1, 1]} : vector<2x8x8x8xf32> to vector<2x8x7x8xf32>
    %48 = tpu.concatenate %47, %46 in 2 : vector<2x8x7x8xf32>, vector<2x8x1x8xf32> -> vector<2x8x8x8xf32>
    %cst_52 = arith.constant 0.000000e+00 : f32
    %49 = vector.broadcast %cst_52 : f32 to vector<2x1x8x8xf32>
    %50 = vector.extract_strided_slice %42 {offsets = [0, 1, 0, 0], sizes = [2, 7, 8, 8], strides = [1, 1, 1, 1]} : vector<2x8x8x8xf32> to vector<2x7x8x8xf32>
    %51 = tpu.concatenate %50, %49 in 1 : vector<2x7x8x8xf32>, vector<2x1x8x8xf32> -> vector<2x8x8x8xf32>
    %cst_53 = arith.constant 0.000000e+00 : f32
    %52 = vector.broadcast %cst_53 : f32 to vector<2x1x8x8xf32>
    %53 = vector.extract_strided_slice %48 {offsets = [0, 1, 0, 0], sizes = [2, 7, 8, 8], strides = [1, 1, 1, 1]} : vector<2x8x8x8xf32> to vector<2x7x8x8xf32>
    %54 = tpu.concatenate %53, %52 in 1 : vector<2x7x8x8xf32>, vector<2x1x8x8xf32> -> vector<2x8x8x8xf32>
    %55 = tpu.concatenate %42, %48, %51, %54 in 3 : vector<2x8x8x8xf32>, vector<2x8x8x8xf32>, vector<2x8x8x8xf32>, vector<2x8x8x8xf32> -> vector<2x8x8x32xf32>
    %56 = vector.shape_cast %55 : vector<2x8x8x32xf32> to vector<128x32xf32>
    %57 = arith.truncf %56 : vector<128x32xf32> to vector<128x32xbf16>
    %c0_54 = arith.constant 0 : index
    %c0_55 = arith.constant 0 : index
    %58 = vector.load %arg3[%c0_54, %c0_55] : memref<32x16xbf16, #tpu.memory_space<vmem>>, vector<32x16xbf16>
    %cst_56 = arith.constant dense<0.000000e+00> : vector<128x16xf32>
    %59 = tpu.matmul %57, %58, %cst_56 {dimension_numbers = #tpu.dot_dimension_numbers<[1], [0], [0], [1], [0, 0, 1, 1], [], []>} : vector<128x32xbf16>, vector<32x16xbf16>, vector<128x16xf32> -> vector<128x16xf32>
    %cst_57 = arith.constant 0.000000e+00 : f32
    %60 = vector.broadcast %cst_57 : f32 to vector<128x16xf32>
    %61 = arith.maximumf %59, %60 : vector<128x16xf32>
    %62 = vector.shape_cast %61 : vector<128x16xf32> to vector<2x8x8x16xf32>
    %63 = tpu.concatenate %45, %62 in 3 : vector<2x8x8x16xf32>, vector<2x8x8x16xf32> -> vector<2x8x8x32xf32>
    %cst_58 = arith.constant 0.000000e+00 : f32
    %64 = vector.broadcast %cst_58 : f32 to vector<2x8x1x32xf32>
    %65 = vector.extract_strided_slice %63 {offsets = [0, 0, 0, 0], sizes = [2, 8, 7, 32], strides = [1, 1, 1, 1]} : vector<2x8x8x32xf32> to vector<2x8x7x32xf32>
    %66 = tpu.concatenate %64, %65 in 2 : vector<2x8x1x32xf32>, vector<2x8x7x32xf32> -> vector<2x8x8x32xf32>
    %cst_59 = arith.constant 0.000000e+00 : f32
    %67 = vector.broadcast %cst_59 : f32 to vector<2x8x1x32xf32>
    %68 = vector.extract_strided_slice %63 {offsets = [0, 0, 1, 0], sizes = [2, 8, 7, 32], strides = [1, 1, 1, 1]} : vector<2x8x8x32xf32> to vector<2x8x7x32xf32>
    %69 = tpu.concatenate %68, %67 in 2 : vector<2x8x7x32xf32>, vector<2x8x1x32xf32> -> vector<2x8x8x32xf32>
    %cst_60 = arith.constant 0.000000e+00 : f32
    %70 = vector.broadcast %cst_60 : f32 to vector<2x1x8x32xf32>
    %71 = vector.extract_strided_slice %66 {offsets = [0, 0, 0, 0], sizes = [2, 7, 8, 32], strides = [1, 1, 1, 1]} : vector<2x8x8x32xf32> to vector<2x7x8x32xf32>
    %72 = tpu.concatenate %70, %71 in 1 : vector<2x1x8x32xf32>, vector<2x7x8x32xf32> -> vector<2x8x8x32xf32>
    %cst_61 = arith.constant 0.000000e+00 : f32
    %73 = vector.broadcast %cst_61 : f32 to vector<2x1x8x32xf32>
    %74 = vector.extract_strided_slice %63 {offsets = [0, 0, 0, 0], sizes = [2, 7, 8, 32], strides = [1, 1, 1, 1]} : vector<2x8x8x32xf32> to vector<2x7x8x32xf32>
    %75 = tpu.concatenate %73, %74 in 1 : vector<2x1x8x32xf32>, vector<2x7x8x32xf32> -> vector<2x8x8x32xf32>
    %cst_62 = arith.constant 0.000000e+00 : f32
    %76 = vector.broadcast %cst_62 : f32 to vector<2x1x8x32xf32>
    %77 = vector.extract_strided_slice %69 {offsets = [0, 0, 0, 0], sizes = [2, 7, 8, 32], strides = [1, 1, 1, 1]} : vector<2x8x8x32xf32> to vector<2x7x8x32xf32>
    %78 = tpu.concatenate %76, %77 in 1 : vector<2x1x8x32xf32>, vector<2x7x8x32xf32> -> vector<2x8x8x32xf32>
    %cst_63 = arith.constant 0.000000e+00 : f32
    %79 = vector.broadcast %cst_63 : f32 to vector<2x1x8x32xf32>
    %80 = vector.extract_strided_slice %66 {offsets = [0, 1, 0, 0], sizes = [2, 7, 8, 32], strides = [1, 1, 1, 1]} : vector<2x8x8x32xf32> to vector<2x7x8x32xf32>
    %81 = tpu.concatenate %80, %79 in 1 : vector<2x7x8x32xf32>, vector<2x1x8x32xf32> -> vector<2x8x8x32xf32>
    %cst_64 = arith.constant 0.000000e+00 : f32
    %82 = vector.broadcast %cst_64 : f32 to vector<2x1x8x32xf32>
    %83 = vector.extract_strided_slice %63 {offsets = [0, 1, 0, 0], sizes = [2, 7, 8, 32], strides = [1, 1, 1, 1]} : vector<2x8x8x32xf32> to vector<2x7x8x32xf32>
    %84 = tpu.concatenate %83, %82 in 1 : vector<2x7x8x32xf32>, vector<2x1x8x32xf32> -> vector<2x8x8x32xf32>
    %cst_65 = arith.constant 0.000000e+00 : f32
    %85 = vector.broadcast %cst_65 : f32 to vector<2x1x8x32xf32>
    %86 = vector.extract_strided_slice %69 {offsets = [0, 1, 0, 0], sizes = [2, 7, 8, 32], strides = [1, 1, 1, 1]} : vector<2x8x8x32xf32> to vector<2x7x8x32xf32>
    %87 = tpu.concatenate %86, %85 in 1 : vector<2x7x8x32xf32>, vector<2x1x8x32xf32> -> vector<2x8x8x32xf32>
    %88 = tpu.concatenate %72, %75, %78, %66, %63, %69, %81, %84, %87 in 3 : vector<2x8x8x32xf32>, vector<2x8x8x32xf32>, vector<2x8x8x32xf32>, vector<2x8x8x32xf32>, vector<2x8x8x32xf32>, vector<2x8x8x32xf32>, vector<2x8x8x32xf32>, vector<2x8x8x32xf32>, vector<2x8x8x32xf32> -> vector<2x8x8x288xf32>
    %89 = vector.shape_cast %88 : vector<2x8x8x288xf32> to vector<128x288xf32>
    %90 = arith.truncf %89 : vector<128x288xf32> to vector<128x288xbf16>
    %c0_66 = arith.constant 0 : index
    %c0_67 = arith.constant 0 : index
    %91 = vector.load %arg4[%c0_66, %c0_67] : memref<288x16xbf16, #tpu.memory_space<vmem>>, vector<288x16xbf16>
    %cst_68 = arith.constant dense<0.000000e+00> : vector<128x16xf32>
    %92 = tpu.matmul %90, %91, %cst_68 {dimension_numbers = #tpu.dot_dimension_numbers<[1], [0], [0], [1], [0, 0, 1, 1], [], []>} : vector<128x288xbf16>, vector<288x16xbf16>, vector<128x16xf32> -> vector<128x16xf32>
    %cst_69 = arith.constant 0.000000e+00 : f32
    %93 = vector.broadcast %cst_69 : f32 to vector<128x16xf32>
    %94 = arith.maximumf %92, %93 : vector<128x16xf32>
    %95 = arith.truncf %94 : vector<128x16xf32> to vector<128x16xbf16>
    %c0_70 = arith.constant 0 : index
    %c0_71 = arith.constant 0 : index
    %96 = vector.load %arg5[%c0_70, %c0_71] : memref<16x32xbf16, #tpu.memory_space<vmem>>, vector<16x32xbf16>
    %cst_72 = arith.constant dense<0.000000e+00> : vector<128x32xf32>
    %97 = tpu.matmul %95, %96, %cst_72 {dimension_numbers = #tpu.dot_dimension_numbers<[1], [0], [0], [1], [0, 0, 1, 1], [], []>} : vector<128x16xbf16>, vector<16x32xbf16>, vector<128x32xf32> -> vector<128x32xf32>
    %cst_73 = arith.constant 0.000000e+00 : f32
    %98 = vector.broadcast %cst_73 : f32 to vector<128x32xf32>
    %99 = arith.maximumf %97, %98 : vector<128x32xf32>
    %100 = vector.shape_cast %99 : vector<128x32xf32> to vector<2x8x8x32xf32>
    %c0_74 = arith.constant 0 : index
    %c0_75 = arith.constant 0 : index
    %c0_76 = arith.constant 0 : index
    %c0_77 = arith.constant 0 : index
    %101 = vector.load %arg6[%c0_74, %c0_75, %c0_76, %c0_77] : memref<2x8x8x32xf32, #tpu.memory_space<vmem>>, vector<2x8x8x32xf32>
    tpu.vector_store %arg6[%c0_74, %c0_75, %c0_76, %c0_77], %100 {strides = array<i32>} : memref<2x8x8x32xf32, #tpu.memory_space<vmem>>, vector<2x8x8x32xf32>,
    return
  }
}

</mosaic_0001>

<bundles_post_ra>
// kernel: hgstem_forward.1
= control target key start
LH: loop header
LB: loop body
LE: loop exit
PB: predicated region body
PF: predicated region fallthrough
CT: control target
= control target key end

     0   :  { %s4310_s13 = smov 8   ;;  %s4311_s14 = smov 4   ;;  %vm874_vm0 = vcmask 1041408   ;;  %vm685_vm1 = vcmask 31744   ;;  %vm702_vm2 = vcmask 64512   ;;  %vm719_vm3 = vcmask 97280   ;;  %s6103_s0 = inlined_call_operand.vmem [shape: f32[4,2,9,9,4], index: 0, kind: input, shape index: {}]   ;;  %s6104_s1 = inlined_call_operand.vmem [shape: bf16[36,16], index: 1, kind: input, shape index: {}]   ;;  %s6105_s2 = inlined_call_operand.vmem [shape: bf16[64,8], index: 2, kind: input, shape index: {}]   ;;  %s6106_s3 = inlined_call_operand.vmem [shape: bf16[32,16], index: 3, kind: input, shape index: {}]   ;;  %s6107_s4 = inlined_call_operand.vmem [shape: bf16[288,16], index: 4, kind: input, shape index: {}]   ;;  %s6108_s5 = inlined_call_operand.vmem [shape: bf16[16,32], index: 5, kind: input, shape index: {}]   ;;  %s6109_s6 = inlined_call_operand.vmem [shape: f32[2,8,8,32], index: 6, kind: output, shape index: {}]  }
   0x1   :  { %v57_v0 = vld [vmem:[%s6103_s0 + $0x1] sm:$0xff]  ;;  %v4363_v1 = vld [vmem:[%s6103_s0 + $0x11] sm:$0xff]  ;;  %s4312_s7 = smov 12   ;;  %s4313_s18 = smov 16   ;;  %vm736_vm4 = vcmask 130048   ;;  %vm753_vm5 = vcmask 162816  }
   0x2   :  { %v3062_v2 = vld [vmem:[%s6103_s0 + $0x120] sm:$0xff]  ;;  %v3492_v3 = vpack.i.bf16 %v4363_v1, %v57_v0  ;;  %v3063_v4 = vld [vmem:[%s6103_s0 + $0x130] sm:$0xff]  ;;  %s4314_s27 = smov 20   ;;  %s4315_s30 = smov 24   ;;  %v4283_v52 = vld [vmem:[%s6104_s1 + $0x8] sm:$0xff]   ;;  %vm770_vm6 = vcmask 195584  }
   0x3   :  { %v4375_v5 = vld [vmem:[%s6103_s0 + $0x21] sm:$0xff]  ;;  %v4380_v6 = vld [vmem:[%s6103_s0 + $0x31] sm:$0xff]  ;;  %v3482_v7 = vpack.i.bf16 %v3063_v4, %v3062_v2  ;;  %s4316_s10 = smov 28   ;;  %s4317_s20 = smov 32   ;;  %vm787_vm7 = vcmask 228352   ;;  %vm804_vm8 = vcmask 261120  }
   0x4   :  { %v3064_v8 = vld [vmem:[%s6103_s0 + $0x140] sm:$0xff]  ;;  %v3065_v9 = vld [vmem:[%s6103_s0 + $0x150] sm:$0xff]  ;;  %3493 = vrot.lane.b32.xlu1 %v3492_v3, %s4310_s13  ;;  %v3497_v10 = vpack.i.bf16 %v4380_v6, %v4375_v5  ;;  %v3552_v41 = vpack.i.bf16 %v4375_v5, %v4363_v1  ;;  %vm849_vm9 = vcmask 293888   ;;  %vm1039_vm10 = vcmask 1046528   ;;  %s4318_s15 = smov 48   ;;  %s4320_s25 = smov 96  }
   0x5   :  { %3483 = vrot.lane.b32.xlu0 %v3482_v7, %s4311_s14  ;;  %v3487_v11 = vpack.i.bf16 %v3065_v9, %v3064_v8  ;;  %v3080_v12 = vld [vmem:[%s6103_s0 + $0x260] sm:$0xff]  ;;  %v3081_v13 = vld [vmem:[%s6103_s0 + $0x270] sm:$0xff]  ;;  %v3542_v38 = vpack.i.bf16 %v3064_v8, %v3063_v4  ;;  %vm1243_vm11 = vcmask 392192   ;;  %vm1300_vm12 = vcmask 523264  }
   0x6   :  { %v3078_v14 = vld [vmem:[%s6103_s0 + $0x240] sm:$0xff]  ;;  %v3079_v15 = vld [vmem:[%s6103_s0 + $0x250] sm:$0xff]  ;;  %v3507_v16 = vpack.i.bf16 %v3081_v13, %v3080_v12  ;;  %vm2025_vm13 = vcmask 1040384   ;;  %vm2422_vm14 = vcmask 785408  }
   0x7   :  { %v3502_v17 = vpack.i.bf16 %v3079_v15, %v3078_v14  ;;  %v3096_v18 = vld [vmem:[%s6103_s0 + $0x380] sm:$0xff]  ;;  %v3097_v19 = vld [vmem:[%s6103_s0 + $0x390] sm:$0xff] }
   0x8   :  { %3498 = vrot.lane.b32.xlu1 %v3497_v10, %s4310_s13  ;;  %v3094_v20 = vld [vmem:[%s6103_s0 + $0x360] sm:$0xff]  ;;  %v3095_v21 = vld [vmem:[%s6103_s0 + $0x370] sm:$0xff]  ;;  %v3517_v22 = vpack.i.bf16 %v3097_v19, %v3096_v18 }
   0x9   :  { %3488 = vrot.lane.b32.xlu0 %v3487_v11, %s4311_s14  ;;  %v3512_v23 = vpack.i.bf16 %v3095_v21, %v3094_v20  ;;  %v3112_v24 = vld [vmem:[%s6103_s0 + $0x261] sm:$0xff]  ;;  %v3113_v25 = vld [vmem:[%s6103_s0 + $0x271] sm:$0xff]  ;;  %v4284_v58 = vld [vmem:[%s6104_s1 + $0x10] ss:$0 sps:$4 sm:$0x33]  }
   0xa   :  { %v3110_v26 = vld [vmem:[%s6103_s0 + $0x241] sm:$0xff]  ;;  %v3111_v27 = vld [vmem:[%s6103_s0 + $0x251] sm:$0xff]  ;;  %v3527_v28 = vpack.i.bf16 %v3113_v25, %v3112_v24  ;;  %v876_v1 = vsel %vm874_vm0, %v4284_v58, 0 }
   0xb   :  { %v3522_v29 = vpack.i.bf16 %v3111_v27, %v3110_v26  ;;  %v4437_v30 = vld [vmem:[%s6103_s0 + $0x30] sm:$0xff]  ;;  %v4442_v31 = vld [vmem:[%s6103_s0 + $0x40] sm:$0xff] }
   0xc   :  { %3508 = vrot.lane.b32.xlu1 %v3507_v16, %s4312_s7  ;;  %v4447_v32 = vld [vmem:[%s6103_s0 + $0x10] sm:$0xff]  ;;  %v4452_v33 = vld [vmem:[%s6103_s0 + $0x20] sm:$0xff]  ;;  %v3537_v34 = vpack.i.bf16 %v4442_v31, %v4437_v30 }
   0xd   :  { %3503 = vrot.lane.b32.xlu0 %v3502_v17, %s4312_s7  ;;  %v3532_v35 = vpack.i.bf16 %v4452_v33, %v4447_v32  ;;  %v3145_v36 = vld [vmem:[%s6103_s0 + $0x160] sm:$0xff]  ;;  %v4468_v39 = vld [vmem:[%s6103_s0 + $0x170] sm:$0xff] }
   0xe   :  { %v3547_v37 = vpack.i.bf16 %v3145_v36, %v3065_v9  ;;  %v3557_v40 = vpack.i.bf16 %v4468_v39, %v3145_v36  ;;  %v4478_v42 = vld [vmem:[%s6103_s0 + $0x180] sm:$0xff]  ;;  %v4483_v43 = vld [vmem:[%s6103_s0 + $0x190] sm:$0xff] }
   0xf   :  { %v3161_v44 = vld [vmem:[%s6103_s0 + $0x41] sm:$0xff]  ;;  %v3567_v45 = vpack.i.bf16 %v4483_v43, %v4478_v42  ;;  %v4501_v48 = vld [vmem:[%s6103_s0 + $0x71] sm:$0xff]  ;;  %v3622_v18 = vpack.i.bf16 %v4478_v42, %v4468_v39 }
  0x10   :  { %3518 = vrot.lane.b32.xlu1 %v3517_v22, %s4313_s18  ;;  %v3562_v46 = vpack.i.bf16 %v3161_v44, %v4380_v6  ;;  %v4496_v47 = vld [vmem:[%s6103_s0 + $0x61] sm:$0xff]  ;;  %v4506_v49 = vld [vmem:[%s6103_s0 + $0x51] sm:$0xff] }
  0x11   :  { %3513 = vrot.lane.b32.xlu0 %v3512_v23, %s4313_s18  ;;  %v4282_v50 = vld [vmem:[%s6104_s1] sm:$0xff]   ;;  %v3577_v51 = vpack.i.bf16 %v4501_v48, %v4496_v47  ;;  %v3572_v53 = vpack.i.bf16 %v4506_v49, %v3161_v44  ;;  %v3085_v55 = vld [vmem:[%s6103_s0 + $0x2b0] sm:$0xff]  ;;  %v3632_v21 = vpack.i.bf16 %v4496_v47, %v4506_v49  ;;  %s4321_s1 = smov 64  }
  0x12   :  { %v3084_v54 = vld [vmem:[%s6103_s0 + $0x2a0] sm:$0xff]  ;;  %3358 = vmatprep.subr.bf16.mxu0 %v4282_v50  ;;  %v3083_v57 = vld [vmem:[%s6103_s0 + $0x290] sm:$0xff]  ;;  %3462 = vmatprep.subr.bf16.mxu1 %v4282_v50 }
  0x13   :  { %v3082_v56 = vld [vmem:[%s6103_s0 + $0x280] sm:$0xff]  ;;  %3359 = vmatpush3.bf16.msra.mxu0 %v4282_v50  ;;  %3465 = vmatpush3.bf16.msra.mxu1 %v4282_v50  ;;  %v3587_v59 = vpack.i.bf16 %v3085_v55, %v3084_v54  ;;  %v3101_v62 = vld [vmem:[%s6103_s0 + $0x3d0] sm:$0xff] }
  0x14   :  { %3528 = vrot.lane.b32.xlu1 %v3527_v28, %s4314_s27  ;;  %3360 = vmatprep.subr.bf16.mxu0 %v4283_v52  ;;  %v3582_v60 = vpack.i.bf16 %v3083_v57, %v3082_v56  ;;  %v3100_v61 = vld [vmem:[%s6103_s0 + $0x3c0] sm:$0xff]  ;;  %v3099_v0 = vld [vmem:[%s6103_s0 + $0x3b0] sm:$0xff] }
  0x15   :  { %3523 = vrot.lane.b32.xlu0 %v3522_v29, %s4314_s27  ;;  %3463 = vmatprep.subr.bf16.mxu1 %v4283_v52  ;;  %v3098_v63 = vld [vmem:[%s6103_s0 + $0x3a0] sm:$0xff]  ;;  %v3597_v2 = vpack.i.bf16 %v3101_v62, %v3100_v61  ;;  %v3117_v5 = vld [vmem:[%s6103_s0 + $0x2b1] sm:$0xff] }
  0x16   :  { %v3592_v3 = vpack.i.bf16 %v3099_v0, %v3098_v63  ;;  %v3116_v4 = vld [vmem:[%s6103_s0 + $0x2a1] sm:$0xff]  ;;  %v3115_v7 = vld [vmem:[%s6103_s0 + $0x291] sm:$0xff] }
  0x17   :  { %3361 = vmatpush3.bf16.msra.mxu0 %v4283_v52  ;;  %3466 = vmatpush3.bf16.msra.mxu1 %v4283_v52  ;;  %v3114_v6 = vld [vmem:[%s6103_s0 + $0x281] sm:$0xff]  ;;  %v3607_v8 = vpack.i.bf16 %v3117_v5, %v3116_v4  ;;  %v4567_v10 = vld [vmem:[%s6103_s0 + $0x70] sm:$0xff] }
  0x18   :  { %3538 = vrot.lane.b32.xlu1 %v3537_v34, %s4315_s30  ;;  %3468 = vmatprep.subr.msk.bf16.mxu0 %vm874_vm0, %v4284_v58  ;;  %v3602_v9 = vpack.i.bf16 %v3115_v7, %v3114_v6  ;;  %v3133_v11 = vld [vmem:[%s6103_s0 + $0x80] sm:$0xff]  ;;  %v4575_v12 = vld [vmem:[%s6103_s0 + $0x50] sm:$0xff] }
  0x19   :  { %3533 = vrot.lane.b32.xlu0 %v3532_v35, %s4315_s30  ;;  %3469 = vmatprep.subr.msk.bf16.mxu1 %vm874_vm0, %v4284_v58  ;;  %v4580_v13 = vld [vmem:[%s6103_s0 + $0x60] sm:$0xff]  ;;  %v3617_v14 = vpack.i.bf16 %v3133_v11, %v4567_v10  ;;  %v3072_v22 = vld [vmem:[%s6103_s0 + $0x1d0] sm:$0xff] }
  0x1a   :  { %v3612_v15 = vpack.i.bf16 %v4580_v13, %v4575_v12  ;;  %v3149_v16 = vld [vmem:[%s6103_s0 + $0x1a0] sm:$0xff]  ;;  %v3070_v24 = vld [vmem:[%s6103_s0 + $0x1b0] sm:$0xff] }
  0x1b   :  { %3363 = vmatpush3.bf16.msra.mxu0 %v876_v1  ;;  %3467 = vmatpush3.bf16.msra.mxu1 %v876_v1  ;;  %v3627_v17 = vpack.i.bf16 %v3149_v16, %v4483_v43  ;;  %v3165_v19 = vld [vmem:[%s6103_s0 + $0x81] sm:$0xff]  ;;  %v67_v28 = vld [vmem:[%s6103_s0 + $0xb1] sm:$0xff] }
  0x1c   :  { %3548 = vrot.lane.b32.xlu1 %v3547_v37, %s4316_s10  ;;  %v3637_v20 = vpack.i.bf16 %v3165_v19, %v4501_v48  ;;  %v3073_v23 = vld [vmem:[%s6103_s0 + $0x1e0] sm:$0xff]  ;;  %v65_v34 = vld [vmem:[%s6103_s0 + $0x91] sm:$0xff] }
  0x1d   :  { %3543 = vrot.lane.b32.xlu0 %v3542_v38, %s4316_s10  ;;  %v3071_v25 = vld [vmem:[%s6103_s0 + $0x1c0] sm:$0xff]  ;;  %v3647_v26 = vpack.i.bf16 %v3073_v23, %v3072_v22  ;;  %v3088_v38 = vld [vmem:[%s6103_s0 + $0x2f0] sm:$0xff] }
  0x1e   :  { %v3642_v27 = vpack.i.bf16 %v3071_v25, %v3070_v24  ;;  %v68_v29 = vld [vmem:[%s6103_s0 + $0xc1] sm:$0xff]  ;;  %v3104_v44 = vld [vmem:[%s6103_s0 + $0x410] sm:$0xff]  ;;  %v3702_v0 = vpack.i.bf16 %v3072_v22, %v3071_v25 }
  0x1f   :  { %v66_v35 = vld [vmem:[%s6103_s0 + $0xa1] sm:$0xff]  ;;  %v3657_v36 = vpack.i.bf16 %v68_v29, %v67_v28  ;;  %v3120_v50 = vld [vmem:[%s6103_s0 + $0x2f1] sm:$0xff] }
  0x20   :  { %3558 = vrot.lane.b32.xlu1 %v3557_v40, %s4311_s14  ;;  %v3652_v37 = vpack.i.bf16 %v66_v35, %v65_v34  ;;  %v3089_v39 = vld [vmem:[%s6103_s0 + $0x300] sm:$0xff]  ;;  %v3086_v40 = vld [vmem:[%s6103_s0 + $0x2d0] sm:$0xff] }
  0x21   :  { %3553 = vrot.lane.b32.xlu0 %v3552_v41, %s4317_s20  ;;  %v3087_v41 = vld [vmem:[%s6103_s0 + $0x2e0] sm:$0xff]  ;;  %v3667_v42 = vpack.i.bf16 %v3089_v39, %v3088_v38  ;;  %v3118_v52 = vld [vmem:[%s6103_s0 + $0x2d1] sm:$0xff] }
  0x22   :  { %v3662_v43 = vpack.i.bf16 %v3087_v41, %v3086_v40  ;;  %v3103_v47 = vld [vmem:[%s6103_s0 + $0x400] sm:$0xff]  ;;  %v4681_v57 = vld [vmem:[%s6103_s0 + $0xd0] sm:$0xff] }
  0x23   :  { %v4676_v56 = vld [vmem:[%s6103_s0 + $0xc0] sm:$0xff]  ;;  %v3153_v62 = vld [vmem:[%s6103_s0 + $0x1f0] sm:$0xff] }
  0x24   :  { %3568 = vrot.lane.b32.xlu1 %v3567_v45, %s4311_s14  ;;  %v3105_v45 = vld [vmem:[%s6103_s0 + $0x420] sm:$0xff]  ;;  %v3707_v63 = vpack.i.bf16 %v3153_v62, %v3073_v23  ;;  %v3076_v4 = vld [vmem:[%s6103_s0 + $0x210] sm:$0xff] }
  0x25   :  { %3563 = vrot.lane.b32.xlu0 %v3562_v46, %s4317_s20  ;;  %v3102_v46 = vld [vmem:[%s6103_s0 + $0x3f0] sm:$0xff]  ;;  %v3677_v48 = vpack.i.bf16 %v3105_v45, %v3104_v44  ;;  %v4686_v58 = vld [vmem:[%s6103_s0 + $0xa0] sm:$0xff] }
  0x26   :  { %v3672_v49 = vpack.i.bf16 %v3103_v47, %v3102_v46  ;;  %v4707_v1 = vld [vmem:[%s6103_s0 + $0x200] sm:$0xff]  ;;  %v3169_v6 = vld [vmem:[%s6103_s0 + $0xd1] sm:$0xff] }
  0x27   :  { %v3077_v5 = vld [vmem:[%s6103_s0 + $0x220] sm:$0xff]  ;;  %v3090_v19 = vld [vmem:[%s6103_s0 + $0x310] sm:$0xff] }
  0x28   :  { %3578 = vrot.lane.b32.xlu1 %v3577_v51, %s4310_s13  ;;  %v3121_v51 = vld [vmem:[%s6103_s0 + $0x301] sm:$0xff]  ;;  %v3727_v7 = vpack.i.bf16 %v3077_v5, %v3076_v4  ;;  %v3108_v23 = vld [vmem:[%s6103_s0 + $0x450] sm:$0xff] }
  0x29   :  { %3573 = vrot.lane.b32.xlu0 %v3572_v53, %s4310_s13  ;;  %v3119_v53 = vld [vmem:[%s6103_s0 + $0x2e1] sm:$0xff]  ;;  %v3687_v54 = vpack.i.bf16 %v3121_v51, %v3120_v50  ;;  %v3106_v25 = vld [vmem:[%s6103_s0 + $0x430] sm:$0xff] }
  0x2a   :  { %v3682_v55 = vpack.i.bf16 %v3119_v53, %v3118_v52  ;;  %v72_v11 = vld [vmem:[%s6103_s0 + $0x101] sm:$0xff]  ;;  %v3141_v40 = vld [vmem:[%s6103_s0 + $0x110] sm:$0xff] }
  0x2b   :  { %v3109_v24 = vld [vmem:[%s6103_s0 + $0x460] sm:$0xff]  ;;  %v3157_v45 = vld [vmem:[%s6103_s0 + $0x230] sm:$0xff] }
  0x2c   :  { %3588 = vrot.lane.b32.xlu1 %v3587_v59, %s4312_s7  ;;  %v4691_v59 = vld [vmem:[%s6103_s0 + $0xb0] sm:$0xff]  ;;  %v3125_v34 = vld [vmem:[%s6103_s0 + $0x341] sm:$0xff] }
  0x2d   :  { %3583 = vrot.lane.b32.xlu0 %v3582_v60, %s4312_s7  ;;  %v3697_v60 = vpack.i.bf16 %v4681_v57, %v4676_v56  ;;  %v3692_v61 = vpack.i.bf16 %v4691_v59, %v4686_v58  ;;  %v4779_v39 = vld [vmem:[%s6103_s0 + $0x100] sm:$0xff]  ;;  %v3173_v50 = vld [vmem:[%s6103_s0 + $0x111] sm:$0xff] }
  0x2e   :  { %v4787_v41 = vld [vmem:[%s6103_s0 + $0xe0] sm:$0xff]  ;;  %v3797_v53 = vpack.i.bf16 %v3173_v50, %v72_v11 }
  0x30   :  { %3598 = vrot.lane.b32.xlu1 %v3597_v2, %s4313_s18  ;;  %v3717_v2 = vpack.i.bf16 %v4707_v1, %v3153_v62 }
  0x31   :  { %3593 = vrot.lane.b32.xlu0 %v3592_v3, %s4313_s18  ;;  %v3712_v3 = vpack.i.bf16 %v67_v28, %v66_v35  ;;  %v3122_v35 = vld [vmem:[%s6103_s0 + $0x311] sm:$0xff] }
  0x34   :  { %3608 = vrot.lane.b32.xlu1 %v3607_v8, %s4314_s27  ;;  %v3722_v8 = vpack.i.bf16 %v3169_v6, %v68_v29  ;;  %v3124_v29 = vld [vmem:[%s6103_s0 + $0x331] sm:$0xff] }
  0x35   :  { %3603 = vrot.lane.b32.xlu0 %v3602_v9, %s4314_s27  ;;  %v71_v9 = vld [vmem:[%s6103_s0 + $0xf1] sm:$0xff] }
  0x38   :  { %3618 = vrot.lane.b32.xlu1 %v3617_v14, %s4315_s30  ;;  %v70_v14 = vld [vmem:[%s6103_s0 + $0xe1] sm:$0xff] }
  0x39   :  { %3613 = vrot.lane.b32.xlu0 %v3612_v15, %s4315_s30  ;;  %v3737_v15 = vpack.i.bf16 %v72_v11, %v71_v9  ;;  %v3732_v16 = vpack.i.bf16 %v70_v14, %v3169_v6 }
  0x3c   :  { %3628 = vrot.lane.b32.xlu1 %v3627_v17, %s4316_s10  ;;  %v3092_v17 = vld [vmem:[%s6103_s0 + $0x330] sm:$0xff] }
  0x3d   :  { %3623 = vrot.lane.b32.xlu0 %v3622_v18, %s4316_s10  ;;  %v3093_v18 = vld [vmem:[%s6103_s0 + $0x340] sm:$0xff] }
  0x40   :  { %3638 = vrot.lane.b32.xlu1 %v3637_v20, %s4317_s20  ;;  %v3091_v20 = vld [vmem:[%s6103_s0 + $0x320] sm:$0xff] }
  0x41   :  { %3633 = vrot.lane.b32.xlu0 %v3632_v21, %s4317_s20  ;;  %v3747_v21 = vpack.i.bf16 %v3093_v18, %v3092_v17  ;;  %v3742_v22 = vpack.i.bf16 %v3091_v20, %v3090_v19 }
  0x44   :  { %3648 = vrot.lane.b32.xlu1 %v3647_v26, %s4311_s14  ;;  %v3107_v26 = vld [vmem:[%s6103_s0 + $0x440] sm:$0xff] }
  0x45   :  { %3643 = vrot.lane.b32.xlu0 %v3642_v27, %s4311_s14  ;;  %v3757_v27 = vpack.i.bf16 %v3109_v24, %v3108_v23  ;;  %v3752_v28 = vpack.i.bf16 %v3107_v26, %v3106_v25 }
  0x48   :  { %3658 = vrot.lane.b32.xlu1 %v3657_v36, %s4310_s13  ;;  %v3123_v36 = vld [vmem:[%s6103_s0 + $0x321] sm:$0xff] }
  0x49   :  { %3653 = vrot.lane.b32.xlu0 %v3652_v37, %s4310_s13  ;;  %v3767_v37 = vpack.i.bf16 %v3125_v34, %v3124_v29  ;;  %v3762_v38 = vpack.i.bf16 %v3123_v36, %v3122_v35 }
  0x4c   :  { %3668 = vrot.lane.b32.xlu1 %v3667_v42, %s4312_s7  ;;  %v4792_v42 = vld [vmem:[%s6103_s0 + $0xf0] sm:$0xff] }
  0x4d   :  { %3663 = vrot.lane.b32.xlu0 %v3662_v43, %s4312_s7  ;;  %v3777_v43 = vpack.i.bf16 %v3141_v40, %v4779_v39  ;;  %v3772_v44 = vpack.i.bf16 %v4792_v42, %v4787_v41 }
  0x50   :  { %3678 = vrot.lane.b32.xlu1 %v3677_v48, %s4313_s18  ;;  %v3787_v48 = vpack.i.bf16 %v3157_v45, %v3077_v5 }
  0x51   :  { %3673 = vrot.lane.b32.xlu0 %v3672_v49, %s4313_s18  ;;  %v3782_v49 = vpack.i.bf16 %v3076_v4, %v4707_v1 }
  0x54   :  { %3688 = vrot.lane.b32.xlu1 %v3687_v54, %s4314_s27  ;;  %v3792_v54 = vpack.i.bf16 %v71_v9, %v70_v14 }
  0x55   :  { %3683 = vrot.lane.b32.xlu0 %v3682_v55, %s4314_s27 }
  0x58   :  { %3698 = vrot.lane.b32.xlu1 %v3697_v60, %s4315_s30 }
  0x59   :  { %3693 = vrot.lane.b32.xlu0 %v3692_v61, %s4315_s30 }
  0x5c   :  { %3708 = vrot.lane.b32.xlu1 %v3707_v63, %s4316_s10 }
  0x5d   :  { %3703 = vrot.lane.b32.xlu0 %v3702_v0, %s4316_s10 }
  0x60   :  { %3718 = vrot.lane.b32.xlu1 %v3717_v2, %s4311_s14  ;;  %v24_v2 = vld [vmem:[%s6103_s0] sm:$0xff] }
  0x61   :  { %3713 = vrot.lane.b32.xlu0 %v3712_v3, %s4317_s20 }
  0x64   :  { %3728 = vrot.lane.b32.xlu1 %v3727_v7, %s4311_s14 }
  0x65   :  { %3723 = vrot.lane.b32.xlu0 %v3722_v8, %s4317_s20 }
  0x68   :  { %3738 = vrot.lane.b32.xlu1 %v3737_v15, %s4310_s13 }
  0x69   :  { %3733 = vrot.lane.b32.xlu0 %v3732_v16, %s4310_s13 }
  0x6c   :  { %3748 = vrot.lane.b32.xlu1 %v3747_v21, %s4312_s7 }
  0x6d   :  { %3743 = vrot.lane.b32.xlu0 %v3742_v22, %s4312_s7 }
  0x70   :  { %3758 = vrot.lane.b32.xlu1 %v3757_v27, %s4313_s18 }
  0x71   :  { %3753 = vrot.lane.b32.xlu0 %v3752_v28, %s4313_s18 }
  0x74   :  { %3768 = vrot.lane.b32.xlu1 %v3767_v37, %s4314_s27 }
  0x75   :  { %3763 = vrot.lane.b32.xlu0 %v3762_v38, %s4314_s27 }
  0x76   :  { %v3494_v46 = vpop.permute.xlu1 %3493 }
  0x77   :  { %v3484_v47 = vpop.permute.xlu0 %3483  ;;  %v3496_v6 = vunpack.i.h.bf16 %v3494_v46  ;;  %v3495_v7 = vunpack.i.l.bf16 %v3494_v46 }
  0x78   :  { %3778 = vrot.lane.b32.xlu1 %v3777_v43, %s4315_s30  ;;  %v3486_v63 = vunpack.i.h.bf16 %v3484_v47  ;;  %v3485_v0 = vunpack.i.l.bf16 %v3484_v47 }
  0x79   :  { %3773 = vrot.lane.b32.xlu0 %v3772_v44, %s4315_s30 }
  0x7a   :  { %v3499_v51 = vpop.permute.xlu1 %3498  ;;  %v686_v8 = vsel %vm685_vm1, %v24_v2, %v3485_v0  ;;  %v687_v9 = vsel %vm685_vm1, %v4447_v32, %v3486_v63 }
  0x7b   :  { %v3489_v52 = vpop.permute.xlu0 %3488  ;;  %v3501_v11 = vunpack.i.h.bf16 %v3499_v51  ;;  %v3500_v14 = vunpack.i.l.bf16 %v3499_v51  ;;  %v703_v23 = vsel %vm702_vm2, %v686_v8, %v3495_v7  ;;  %v704_v32 = vsel %vm702_vm2, %v687_v9, %v3496_v6 }
  0x7c   :  { %3788 = vrot.lane.b32.xlu1 %v3787_v48, %s4316_s10  ;;  %v3491_v3 = vunpack.i.h.bf16 %v3489_v52  ;;  %v3490_v4 = vunpack.i.l.bf16 %v3489_v52 }
  0x7d   :  { %3783 = vrot.lane.b32.xlu0 %v3782_v49, %s4316_s10 }
  0x7e   :  { %v3509_v55 = vpop.permute.xlu1 %3508  ;;  %v688_v16 = vsel %vm685_vm1, %v4452_v33, %v3490_v4  ;;  %v689_v17 = vsel %vm685_vm1, %v4437_v30, %v3491_v3 }
  0x7f   :  { %v3504_v60 = vpop.permute.xlu0 %3503  ;;  %v3511_v18 = vunpack.i.h.bf16 %v3509_v55  ;;  %v3510_v19 = vunpack.i.l.bf16 %v3509_v55  ;;  %v705_v24 = vsel %vm702_vm2, %v688_v16, %v3500_v14  ;;  %v706_v33 = vsel %vm702_vm2, %v689_v17, %v3501_v11 }
  0x80   :  { %3798 = vrot.lane.b32.xlu1 %v3797_v53, %s4317_s20  ;;  %v3506_v21 = vunpack.i.h.bf16 %v3504_v60  ;;  %v3505_v22 = vunpack.i.l.bf16 %v3504_v60 }
  0x81   :  { %3793 = vrot.lane.b32.xlu0 %v3792_v54, %s4317_s20  ;;  %v722_v27 = vsel %vm719_vm3, %v705_v24, %v3510_v19  ;;  %v723_v28 = vsel %vm719_vm3, %v706_v33, %v3511_v18 }
  0x82   :  { %v4812_v61 = vpop.permute.xlu1 %3518  ;;  %v720_v36 = vsel %vm719_vm3, %v703_v23, %v3505_v22  ;;  %v721_v37 = vsel %vm719_vm3, %v704_v32, %v3506_v21 }
  0x83   :  { %v3514_v62 = vpop.permute.xlu0 %3513  ;;  %v3521_v43 = vunpack.i.h.bf16 %v4812_v61  ;;  %v3520_v44 = vunpack.i.l.bf16 %v4812_v61 }
  0x84   :  { %v3516_v25 = vunpack.i.h.bf16 %v3514_v62  ;;  %v3515_v26 = vunpack.i.l.bf16 %v3514_v62 }
  0x85   :  { %v740_v6 = vsel %vm736_vm4, %v723_v28, %v3521_v43 }
  0x86   :  { %v4814_v1 = vpop.permute.xlu1 %3528  ;;  %v737_v47 = vsel %vm736_vm4, %v720_v36, %v3515_v26  ;;  %v738_v48 = vsel %vm736_vm4, %v721_v37, %v3516_v25 }
  0x87   :  { %v3524_v5 = vpop.permute.xlu0 %3523  ;;  %v3531_v49 = vunpack.i.h.bf16 %v4814_v1  ;;  %v3530_v50 = vunpack.i.l.bf16 %v4814_v1 }
  0x88   :  { %v3526_v29 = vunpack.i.h.bf16 %v3524_v5  ;;  %v3525_v34 = vunpack.i.l.bf16 %v3524_v5  ;;  %v739_v5 = vsel %vm736_vm4, %v722_v27, %v3520_v44 }
  0x89   :  { %v756_v11 = vsel %vm753_vm5, %v739_v5, %v3530_v50  ;;  %v757_v14 = vsel %vm753_vm5, %v740_v6, %v3531_v49 }
  0x8a   :  { %v4822_v15 = vpop.permute.xlu1 %3538  ;;  %v754_v52 = vsel %vm753_vm5, %v737_v47, %v3525_v34  ;;  %v755_v53 = vsel %vm753_vm5, %v738_v48, %v3526_v29 }
  0x8b   :  { %v3534_v20 = vpop.permute.xlu0 %3533  ;;  %v3541_v54 = vunpack.i.h.bf16 %v4822_v15  ;;  %v3540_v55 = vunpack.i.l.bf16 %v4822_v15 }
  0x8c   :  { %v3536_v38 = vunpack.i.h.bf16 %v3534_v20  ;;  %v3535_v40 = vunpack.i.l.bf16 %v3534_v20 }
  0x8d   :  { %v773_v17 = vsel %vm770_vm6, %v756_v11, %v3540_v55  ;;  %v774_v18 = vsel %vm770_vm6, %v757_v14, %v3541_v54 }
  0x8e   :  { %v3549_v30 = vpop.permute.xlu1 %3548  ;;  %v771_v63 = vsel %vm770_vm6, %v754_v52, %v3535_v40  ;;  %v772_v0 = vsel %vm770_vm6, %v755_v53, %v3536_v38 }
  0x8f   :  { %v3544_v35 = vpop.permute.xlu0 %3543  ;;  %v3551_v2 = vunpack.i.h.bf16 %v3549_v30  ;;  %v3550_v3 = vunpack.i.l.bf16 %v3549_v30 }
  0x90   :  { %v3546_v45 = vunpack.i.h.bf16 %v3544_v35  ;;  %v3545_v46 = vunpack.i.l.bf16 %v3544_v35 }
  0x91   :  { %v790_v21 = vsel %vm787_vm7, %v773_v17, %v3550_v3  ;;  %v791_v22 = vsel %vm787_vm7, %v774_v18, %v3551_v2 }
  0x92   :  { %v3559_v51 = vpop.permute.xlu1 %3558  ;;  %v788_v1 = vsel %vm787_vm7, %v771_v63, %v3545_v46  ;;  %v789_v4 = vsel %vm787_vm7, %v772_v0, %v3546_v45 }
  0x93   :  { %v3554_v60 = vpop.permute.xlu0 %3553  ;;  %v3561_v35 = vunpack.i.h.bf16 %v3559_v51  ;;  %v3560_v36 = vunpack.i.l.bf16 %v3559_v51 }
  0x94   :  { %v3556_v61 = vunpack.i.h.bf16 %v3554_v60  ;;  %v3555_v62 = vunpack.i.l.bf16 %v3554_v60 }
  0x95   :  { %v690_v53 = vsel %vm685_vm1, %v4442_v31, %v3560_v36  ;;  %v691_v51 = vsel %vm685_vm1, %v4575_v12, %v3561_v35 }
  0x96   :  { %v3569_v7 = vpop.permute.xlu1 %3568  ;;  %v805_v8 = vsel %vm804_vm8, %v788_v1, %v3555_v62  ;;  %v806_v9 = vsel %vm804_vm8, %v789_v4, %v3556_v61 }
  0x97   :  { %v3564_v15 = vpop.permute.xlu0 %3563  ;;  %v821_v16 = vpack.c.bf16 %v806_v9, %v805_v8  ;;  %v3571_v29 = vunpack.i.h.bf16 %v3569_v7  ;;  %v3570_v34 = vunpack.i.l.bf16 %v3569_v7 }
  0x98   :  { %v3566_v19 = vunpack.i.h.bf16 %v3564_v15  ;;  %v3565_v20 = vunpack.i.l.bf16 %v3564_v15 }
  0x99   :  { %3364 = vmatprep.mubr.msk.bf16.mxu0 %vm849_vm9, %v821_v16  ;;  %v692_v48 = vsel %vm685_vm1, %v4580_v13, %v3570_v34  ;;  %v693_v49 = vsel %vm685_vm1, %v4567_v10, %v3571_v29 }
  0x9a   :  { %v807_v23 = vsel %vm804_vm8, %v790_v21, %v3565_v20  ;;  %v808_v32 = vsel %vm804_vm8, %v791_v22, %v3566_v19  ;;  %v3579_v24 = vpop.permute.xlu1 %3578 }
  0x9b   :  { %v3574_v33 = vpop.permute.xlu0 %3573  ;;  %v822_v25 = vpack.c.bf16 %v808_v32, %v807_v23  ;;  %v3581_v37 = vunpack.i.h.bf16 %v3579_v24  ;;  %v3580_v38 = vunpack.i.l.bf16 %v3579_v24 }
  0x9c   :  { %v3576_v43 = vunpack.i.h.bf16 %v3574_v33  ;;  %v3575_v44 = vunpack.i.l.bf16 %v3574_v33 }
  0x9d   :  { %3365 = vmatmul.mubr.msk.bf16.vlgmr.msra.gmra.mrb[0].mxu0 %vm849_vm9, %v822_v25  ;;  %v709_v54 = vsel %vm702_vm2, %v692_v48, %v3580_v38  ;;  %v710_v55 = vsel %vm702_vm2, %v693_v49, %v3581_v37 }
  0x9e   :  { %v3589_v26 = vpop.permute.xlu1 %3588  ;;  %v707_v61 = vsel %vm702_vm2, %v690_v53, %v3575_v44  ;;  %v708_v13 = vsel %vm702_vm2, %v691_v51, %v3576_v43 }
  0x9f   :  { %v3584_v30 = vpop.permute.xlu0 %3583  ;;  %v3591_v46 = vunpack.i.h.bf16 %v3589_v26  ;;  %v3590_v47 = vunpack.i.l.bf16 %v3589_v26 }
  0xa0   :  { %v3586_v50 = vunpack.i.h.bf16 %v3584_v30  ;;  %v3585_v52 = vunpack.i.l.bf16 %v3584_v30 }
  0xa1   :  { %v726_v0 = vsel %vm719_vm3, %v709_v54, %v3590_v47  ;;  %v727_v2 = vsel %vm719_vm3, %v710_v55, %v3591_v46 }
  0xa2   :  { %v3599_v27 = vpop.permute.xlu1 %3598  ;;  %v724_v12 = vsel %vm719_vm3, %v707_v61, %v3585_v52  ;;  %v725_v1 = vsel %vm719_vm3, %v708_v13, %v3586_v50 }
  0xa3   :  { %v3594_v28 = vpop.permute.xlu0 %3593  ;;  %v3601_v62 = vunpack.i.h.bf16 %v3599_v27  ;;  %v3600_v63 = vunpack.i.l.bf16 %v3599_v27 }
  0xa4   :  { %v3596_v31 = vunpack.i.h.bf16 %v3594_v28  ;;  %v3595_v3 = vunpack.i.l.bf16 %v3594_v28 }
  0xa5   :  { %v743_v14 = vsel %vm736_vm4, %v726_v0, %v3600_v63  ;;  %v744_v15 = vsel %vm736_vm4, %v727_v2, %v3601_v62 }
  0xa6   :  { %v3609_v40 = vpop.permute.xlu1 %3608  ;;  %v741_v19 = vsel %vm736_vm4, %v724_v12, %v3595_v3  ;;  %v742_v20 = vsel %vm736_vm4, %v725_v1, %v3596_v31 }
  0xa7   :  { %v3604_v45 = vpop.permute.xlu0 %3603  ;;  %v3611_v4 = vunpack.i.h.bf16 %v3609_v40  ;;  %v3610_v5 = vunpack.i.l.bf16 %v3609_v40 }
  0xa8   :  { %v3606_v6 = vunpack.i.h.bf16 %v3604_v45  ;;  %v3605_v7 = vunpack.i.l.bf16 %v3604_v45 }
  0xa9   :  { %v760_v23 = vsel %vm753_vm5, %v743_v14, %v3610_v5  ;;  %v761_v32 = vsel %vm753_vm5, %v744_v15, %v3611_v4  ;;  %v32_v5 = vld [vmem:[%s6103_s0 + $0x90] sm:$0xff] }
  0xaa   :  { %v3619_v60 = vpop.permute.xlu1 %3618  ;;  %v758_v25 = vsel %vm753_vm5, %v741_v19, %v3605_v7  ;;  %v759_v26 = vsel %vm753_vm5, %v742_v20, %v3606_v6 }
  0xab   :  { %v3614_v10 = vpop.permute.xlu0 %3613  ;;  %v3621_v8 = vunpack.i.h.bf16 %v3619_v60  ;;  %v3620_v9 = vunpack.i.l.bf16 %v3619_v60 }
  0xac   :  { %v3616_v16 = vunpack.i.h.bf16 %v3614_v10  ;;  %v3615_v17 = vunpack.i.l.bf16 %v3614_v10 }
  0xad   :  { %v777_v30 = vsel %vm770_vm6, %v760_v23, %v3620_v9  ;;  %v778_v27 = vsel %vm770_vm6, %v761_v32, %v3621_v8 }
  0xae   :  { %v3629_v11 = vpop.permute.xlu1 %3628  ;;  %v775_v29 = vsel %vm770_vm6, %v758_v25, %v3615_v17  ;;  %v776_v34 = vsel %vm770_vm6, %v759_v26, %v3616_v16 }
  0xaf   :  { %v3624_v18 = vpop.permute.xlu0 %3623  ;;  %v3631_v21 = vunpack.i.h.bf16 %v3629_v11  ;;  %v3630_v22 = vunpack.i.l.bf16 %v3629_v11 }
  0xb0   :  { %v3626_v24 = vunpack.i.h.bf16 %v3624_v18  ;;  %v3625_v33 = vunpack.i.l.bf16 %v3624_v18 }
  0xb1   :  { %v794_v38 = vsel %vm787_vm7, %v777_v30, %v3630_v22  ;;  %v795_v40 = vsel %vm787_vm7, %v778_v27, %v3631_v21 }
  0xb2   :  { %v3639_v28 = vpop.permute.xlu1 %3638  ;;  %v792_v45 = vsel %vm787_vm7, %v775_v29, %v3625_v33  ;;  %v793_v46 = vsel %vm787_vm7, %v776_v34, %v3626_v24 }
  0xb3   :  { %v3641_v35 = vunpack.i.h.bf16 %v3639_v28  ;;  %v3640_v36 = vunpack.i.l.bf16 %v3639_v28  ;;  %v3634_v37 = vpop.permute.xlu0 %3633 }
  0xb4   :  { %v3636_v43 = vunpack.i.h.bf16 %v3634_v37  ;;  %v3635_v44 = vunpack.i.l.bf16 %v3634_v37 }
  0xb5   :  { %v811_v47 = vsel %vm804_vm8, %v794_v38, %v3640_v36  ;;  %v812_v48 = vsel %vm804_vm8, %v795_v40, %v3641_v35 }
  0xb6   :  { %v809_v49 = vsel %vm804_vm8, %v792_v45, %v3635_v44  ;;  %v810_v50 = vsel %vm804_vm8, %v793_v46, %v3636_v43  ;;  %v3649_v52 = vpop.permute.xlu1 %3648  ;;  %v824_v53 = vpack.c.bf16 %v812_v48, %v811_v47 }
  0xb7   :  { %v3644_v51 = vpop.permute.xlu0 %3643  ;;  %v823_v54 = vpack.c.bf16 %v810_v50, %v809_v49  ;;  %v3651_v2 = vunpack.i.h.bf16 %v3649_v52  ;;  %v3650_v31 = vunpack.i.l.bf16 %v3649_v52 }
  0xb8   :  { %v3646_v3 = vunpack.i.h.bf16 %v3644_v51  ;;  %v3645_v12 = vunpack.i.l.bf16 %v3644_v51 }
  0xb9   :  { %3368 = vmatprep.mubr.msk.bf16.mxu0 %vm849_vm9, %v823_v54  ;;  %v696_v15 = vsel %vm685_vm1, %v4691_v59, %v3650_v31  ;;  %v697_v16 = vsel %vm685_vm1, %v4676_v56, %v3651_v2 }
  0xba   :  { %3369 = vmatmul.mubr.msk.bf16.gmra.mrb[4].mxu0 %vm849_vm9, %v824_v53  ;;  %v3659_v55 = vpop.permute.xlu1 %3658  ;;  %v694_v19 = vsel %vm685_vm1, %v32_v5, %v3645_v12  ;;  %v695_v20 = vsel %vm685_vm1, %v4686_v58, %v3646_v3 }
  0xbb   :  { %v3654_v60 = vpop.permute.xlu0 %3653  ;;  %v3661_v1 = vunpack.i.h.bf16 %v3659_v55  ;;  %v3660_v4 = vunpack.i.l.bf16 %v3659_v55 }
  0xbc   :  { %v3656_v6 = vunpack.i.h.bf16 %v3654_v60  ;;  %v3655_v7 = vunpack.i.l.bf16 %v3654_v60 }
  0xbd   :  { %v713_v21 = vsel %vm702_vm2, %v696_v15, %v3660_v4  ;;  %v714_v22 = vsel %vm702_vm2, %v697_v16, %v3661_v1 }
  0xbe   :  { %v3669_v61 = vpop.permute.xlu1 %3668  ;;  %v711_v23 = vsel %vm702_vm2, %v694_v19, %v3655_v7  ;;  %v712_v32 = vsel %vm702_vm2, %v695_v20, %v3656_v6 }
  0xbf   :  { %v3664_v13 = vpop.permute.xlu0 %3663  ;;  %v3671_v9 = vunpack.i.h.bf16 %v3669_v61  ;;  %v3670_v11 = vunpack.i.l.bf16 %v3669_v61 }
  0xc0   :  { %v3666_v17 = vunpack.i.h.bf16 %v3664_v13  ;;  %v3665_v18 = vunpack.i.l.bf16 %v3664_v13 }
  0xc1   :  { %v730_v56 = vsel %vm719_vm3, %v713_v21, %v3670_v11  ;;  %v731_v25 = vsel %vm719_vm3, %v714_v22, %v3671_v9 }
  0xc2   :  { %v4902_v62 = vpop.permute.xlu1 %3678  ;;  %v728_v58 = vsel %vm719_vm3, %v711_v23, %v3665_v18  ;;  %v729_v28 = vsel %vm719_vm3, %v712_v32, %v3666_v17 }
  0xc3   :  { %v3674_v63 = vpop.permute.xlu0 %3673  ;;  %v3681_v35 = vunpack.i.h.bf16 %v4902_v62  ;;  %v3680_v36 = vunpack.i.l.bf16 %v4902_v62 }
  0xc4   :  { %v3676_v24 = vunpack.i.h.bf16 %v3674_v63  ;;  %v3675_v59 = vunpack.i.l.bf16 %v3674_v63 }
  0xc5   :  { %v747_v63 = vsel %vm736_vm4, %v730_v56, %v3680_v36 }
  0xc6   :  { %v4904_v10 = vpop.permute.xlu1 %3688  ;;  %v745_v40 = vsel %vm736_vm4, %v728_v58, %v3675_v59  ;;  %v746_v43 = vsel %vm736_vm4, %v729_v28, %v3676_v24 }
  0xc7   :  { %v3684_v0 = vpop.permute.xlu0 %3683  ;;  %v3691_v44 = vunpack.i.h.bf16 %v4904_v10  ;;  %v3690_v45 = vunpack.i.l.bf16 %v4904_v10  ;;  %v748_v10 = vsel %vm736_vm4, %v731_v25, %v3681_v35 }
  0xc8   :  { %v3686_v26 = vunpack.i.h.bf16 %v3684_v0  ;;  %v3685_v30 = vunpack.i.l.bf16 %v3684_v0 }
  0xc9   :  { %v764_v3 = vsel %vm753_vm5, %v747_v63, %v3690_v45  ;;  %v765_v12 = vsel %vm753_vm5, %v748_v10, %v3691_v44 }
  0xca   :  { %v3699_v8 = vpop.permute.xlu1 %3698  ;;  %v762_v47 = vsel %vm753_vm5, %v745_v40, %v3685_v30  ;;  %v763_v48 = vsel %vm753_vm5, %v746_v43, %v3686_v26 }
  0xcb   :  { %v3694_v14 = vpop.permute.xlu0 %3693  ;;  %v3701_v49 = vunpack.i.h.bf16 %v3699_v8  ;;  %v3700_v50 = vunpack.i.l.bf16 %v3699_v8 }
  0xcc   :  { %v3696_v29 = vunpack.i.h.bf16 %v3694_v14  ;;  %v3695_v34 = vunpack.i.l.bf16 %v3694_v14 }
  0xcd   :  { %v781_v5 = vsel %vm770_vm6, %v764_v3, %v3700_v50  ;;  %v782_v6 = vsel %vm770_vm6, %v765_v12, %v3701_v49 }
  0xce   :  { %v3709_v33 = vpop.permute.xlu1 %3708  ;;  %v779_v54 = vsel %vm770_vm6, %v762_v47, %v3695_v34  ;;  %v780_v55 = vsel %vm770_vm6, %v763_v48, %v3696_v29 }
  0xcf   :  { %v3704_v27 = vpop.permute.xlu0 %3703  ;;  %v3711_v60 = vunpack.i.h.bf16 %v3709_v33  ;;  %v3710_v61 = vunpack.i.l.bf16 %v3709_v33 }
  0xd0   :  { %v3706_v37 = vunpack.i.h.bf16 %v3704_v27  ;;  %v3705_v38 = vunpack.i.l.bf16 %v3704_v27 }
  0xd1   :  { %v798_v9 = vsel %vm787_vm7, %v781_v5, %v3710_v61  ;;  %v799_v11 = vsel %vm787_vm7, %v782_v6, %v3711_v60 }
  0xd2   :  { %v3719_v46 = vpop.permute.xlu1 %3718  ;;  %v796_v13 = vsel %vm787_vm7, %v779_v54, %v3705_v38  ;;  %v797_v62 = vsel %vm787_vm7, %v780_v55, %v3706_v37 }
  0xd3   :  { %v3714_v52 = vpop.permute.xlu0 %3713  ;;  %v3721_v24 = vunpack.i.h.bf16 %v3719_v46  ;;  %v3720_v59 = vunpack.i.l.bf16 %v3719_v46 }
  0xd4   :  { %v3716_v53 = vunpack.i.h.bf16 %v3714_v52  ;;  %v3715_v51 = vunpack.i.l.bf16 %v3714_v52 }
  0xd5   :  { %v698_v37 = vsel %vm685_vm1, %v4681_v57, %v3720_v59  ;;  %v699_v38 = vsel %vm685_vm1, %v4787_v41, %v3721_v24 }
  0xd6   :  { %v3729_v0 = vpop.permute.xlu1 %3728  ;;  %v813_v2 = vsel %vm804_vm8, %v796_v13, %v3715_v51  ;;  %v814_v31 = vsel %vm804_vm8, %v797_v62, %v3716_v53 }
  0xd7   :  { %v3724_v1 = vpop.permute.xlu0 %3723  ;;  %v825_v4 = vpack.c.bf16 %v814_v31, %v813_v2  ;;  %v3731_v23 = vunpack.i.h.bf16 %v3729_v0  ;;  %v3730_v32 = vunpack.i.l.bf16 %v3729_v0 }
  0xd8   :  { %v3726_v7 = vunpack.i.h.bf16 %v3724_v1  ;;  %v3725_v8 = vunpack.i.l.bf16 %v3724_v1 }
  0xd9   :  { %3372 = vmatprep.mubr.msk.bf16.mxu1 %vm849_vm9, %v825_v4  ;;  %v700_v29 = vsel %vm685_vm1, %v4792_v42, %v3730_v32  ;;  %v701_v34 = vsel %vm685_vm1, %v4779_v39, %v3731_v23 }
  0xda   :  { %v815_v14 = vsel %vm804_vm8, %v798_v9, %v3725_v8  ;;  %v816_v15 = vsel %vm804_vm8, %v799_v11, %v3726_v7  ;;  %v3739_v16 = vpop.permute.xlu1 %3738 }
  0xdb   :  { %v3734_v17 = vpop.permute.xlu0 %3733  ;;  %v826_v18 = vpack.c.bf16 %v816_v15, %v815_v14  ;;  %v3741_v33 = vunpack.i.h.bf16 %v3739_v16  ;;  %v3740_v56 = vunpack.i.l.bf16 %v3739_v16 }
  0xdc   :  { %v3736_v26 = vunpack.i.h.bf16 %v3734_v17  ;;  %v3735_v30 = vunpack.i.l.bf16 %v3734_v17 }
  0xdd   :  { %3373 = vmatmul.mubr.msk.bf16.vlgmr.msra.gmra.mrb[0].mxu1 %vm849_vm9, %v826_v18  ;;  %v717_v40 = vsel %vm702_vm2, %v700_v29, %v3740_v56  ;;  %v718_v43 = vsel %vm702_vm2, %v701_v34, %v3741_v33 }
  0xde   :  { %v3749_v19 = vpop.permute.xlu1 %3748  ;;  %v715_v45 = vsel %vm702_vm2, %v698_v37, %v3735_v30  ;;  %v716_v42 = vsel %vm702_vm2, %v699_v38, %v3736_v26 }
  0xdf   :  { %v3744_v20 = vpop.permute.xlu0 %3743  ;;  %v3751_v58 = vunpack.i.h.bf16 %v3749_v19  ;;  %v3750_v28 = vunpack.i.l.bf16 %v3749_v19 }
  0xe0   :  { %v3746_v35 = vunpack.i.h.bf16 %v3744_v20  ;;  %v3745_v36 = vunpack.i.l.bf16 %v3744_v20 }
  0xe1   :  { %v734_v48 = vsel %vm719_vm3, %v717_v40, %v3750_v28  ;;  %v735_v49 = vsel %vm719_vm3, %v718_v43, %v3751_v58 }
  0xe2   :  { %v3759_v21 = vpop.permute.xlu1 %3758  ;;  %v732_v41 = vsel %vm719_vm3, %v715_v45, %v3745_v36  ;;  %v733_v52 = vsel %vm719_vm3, %v716_v42, %v3746_v35 }
  0xe3   :  { %v3754_v22 = vpop.permute.xlu0 %3753  ;;  %v3761_v46 = vunpack.i.h.bf16 %v3759_v21  ;;  %v3760_v47 = vunpack.i.l.bf16 %v3759_v21 }
  0xe4   :  { %v3756_v57 = vunpack.i.h.bf16 %v3754_v22  ;;  %v3755_v50 = vunpack.i.l.bf16 %v3754_v22 }
  0xe5   :  { %v751_v62 = vsel %vm736_vm4, %v734_v48, %v3760_v47  ;;  %v752_v63 = vsel %vm736_vm4, %v735_v49, %v3761_v46 }
  0xe6   :  { %v3769_v25 = vpop.permute.xlu1 %3768  ;;  %v749_v31 = vsel %vm736_vm4, %v732_v41, %v3755_v50  ;;  %v750_v3 = vsel %vm736_vm4, %v733_v52, %v3756_v57 }
  0xe7   :  { %v3764_v27 = vpop.permute.xlu0 %3763  ;;  %v3771_v53 = vunpack.i.h.bf16 %v3769_v25  ;;  %v3770_v51 = vunpack.i.l.bf16 %v3769_v25 }
  0xe8   :  { %v3766_v54 = vunpack.i.h.bf16 %v3764_v27  ;;  %v3765_v55 = vunpack.i.l.bf16 %v3764_v27 }
  0xe9   :  { %v768_v4 = vsel %vm753_vm5, %v751_v62, %v3770_v51  ;;  %v769_v5 = vsel %vm753_vm5, %v752_v63, %v3771_v53  ;;  %v4285_v51 = vld [vmem:[%s6105_s2] sm:$0xff]   ;;  %v4287_v62 = vld [vmem:[%s6105_s2 + $0x10] sm:$0xff]  }
  0xea   :  { %v3779_v44 = vpop.permute.xlu1 %3778  ;;  %v766_v8 = vsel %vm753_vm5, %v749_v31, %v3765_v55  ;;  %v767_v9 = vsel %vm753_vm5, %v750_v3, %v3766_v54  ;;  %3380 = vmatprep.subr.bf16.mxu1 %v4285_v51 }
  0xeb   :  { %v3774_v39 = vpop.permute.xlu0 %3773  ;;  %v3781_v60 = vunpack.i.h.bf16 %v3779_v44  ;;  %v3780_v61 = vunpack.i.l.bf16 %v3779_v44  ;;  %3381 = vmatpush3.bf16.msra.mxu1 %v4285_v51 }
  0xec   :  { %v3776_v10 = vunpack.i.h.bf16 %v3774_v39  ;;  %v3775_v0 = vunpack.i.l.bf16 %v3774_v39 }
  0xed   :  { %v785_v11 = vsel %vm770_vm6, %v768_v4, %v3780_v61  ;;  %v786_v14 = vsel %vm770_vm6, %v769_v5, %v3781_v60 }
  0xee   :  { %v3789_v13 = vpop.permute.xlu1 %3788  ;;  %v783_v16 = vsel %vm770_vm6, %v766_v8, %v3775_v0  ;;  %v784_v17 = vsel %vm770_vm6, %v767_v9, %v3776_v10  ;;  %v4288_v10 = vld [vmem:[%s6105_s2 + $0x18] sm:$0xff]  }
  0xef   :  { %v3784_v2 = vpop.permute.xlu0 %3783  ;;  %v3791_v12 = vunpack.i.h.bf16 %v3789_v13  ;;  %v3790_v1 = vunpack.i.l.bf16 %v3789_v13  ;;  %v4286_v13 = vld [vmem:[%s6105_s2 + $0x8] sm:$0xff]  }
  0xf0   :  { %v3786_v6 = vunpack.i.h.bf16 %v3784_v2  ;;  %v3785_v7 = vunpack.i.l.bf16 %v3784_v2  ;;  %3382 = vmatprep.subr.bf16.mxu1 %v4286_v13 }
  0xf1   :  { %v802_v21 = vsel %vm787_vm7, %v785_v11, %v3790_v1  ;;  %v803_v22 = vsel %vm787_vm7, %v786_v14, %v3791_v12  ;;  %3383 = vmatpush3.bf16.msra.mxu1 %v4286_v13 }
  0xf2   :  { %v3799_v15 = vpop.permute.xlu1 %3798  ;;  %v800_v24 = vsel %vm787_vm7, %v783_v16, %v3785_v7  ;;  %v801_v59 = vsel %vm787_vm7, %v784_v17, %v3786_v6  ;;  %3384 = vmatprep.subr.bf16.mxu1 %v4287_v62 }
  0xf3   :  { %v3801_v18 = vunpack.i.h.bf16 %v3799_v15  ;;  %v3800_v19 = vunpack.i.l.bf16 %v3799_v15  ;;  %v3794_v20 = vpop.permute.xlu0 %3793 }
  0xf4   :  { %v3796_v23 = vunpack.i.h.bf16 %v3794_v20  ;;  %v3795_v32 = vunpack.i.l.bf16 %v3794_v20 }
  0xf5   :  { %v819_v33 = vsel %vm804_vm8, %v802_v21, %v3800_v19  ;;  %v820_v56 = vsel %vm804_vm8, %v803_v22, %v3801_v18  ;;  %3385 = vmatpush3.bf16.msra.mxu1 %v4287_v62  ;;  %v4319_v18 = vmov 0.0  }
  0xf6   :  { %v817_v25 = vsel %vm804_vm8, %v800_v24, %v3795_v32  ;;  %v818_v26 = vsel %vm804_vm8, %v801_v59, %v3796_v23  ;;  %v828_v30 = vpack.c.bf16 %v820_v56, %v819_v33  ;;  %3386 = vmatprep.subr.bf16.mxu1 %v4288_v10 }
  0xf7   :  { %v827_v27 = vpack.c.bf16 %v818_v26, %v817_v25 }
  0xf9   :  { %3376 = vmatprep.mubr.msk.bf16.mxu1 %vm849_vm9, %v827_v27  ;;  %3387 = vmatpush3.bf16.msra.mxu1 %v4288_v10 }
  0xfa   :  { %3377 = vmatmul.mubr.msk.bf16.gmra.mrb[4].mxu1 %vm849_vm9, %v828_v30 }
 0x170   :  { %v3366_v58 = vpop.f32.mrb[0].mxu0 }
 0x171   :  { %v4988_v28 = vmax.f32 %v3366_v58, 0.0  ;;  %v912_v29 = vpop.f32.mrb[1].mxu0 }
 0x172   :  { %v4990_v34 = vmax.f32 %v912_v29, 0.0  ;;  %v3367_v35 = vpop.f32.mrb[2].mxu0 }
 0x173   :  { %v4992_v36 = vmax.f32 %v3367_v35, 0.0  ;;  %v915_v37 = vpop.f32.mrb[3].mxu0  ;;  %v1009_v38 = vrot.slane %v4988_v28, 1 }
 0x174   :  { %v1007_v40 = vrot.slane %v4990_v34, 1  ;;  %v4996_v43 = vmax.f32 %v915_v37, 0.0 }
 0x175   :  { %v1010_v44 = vrot.slane %v4992_v36, 1  ;;  %v1042_v45 = vsel %vm1039_vm10, %v1009_v38, 0.0 }
 0x176   :  { %v1040_v42 = vsel %vm1039_vm10, %v1007_v40, 0.0  ;;  %v3802_v46 = vpack.i.bf16 %v4988_v28, %v4996_v43  ;;  %v1008_v47 = vrot.slane %v4996_v43, 1  ;;  %v5009_v48 = vmax.f32 %v4988_v28, %v1042_v45 }
 0x177   :  { %v5005_v39 = vsel %vm1039_vm10, %v1010_v44, 0.0  ;;  %v1438_v41 = vmax.f32 %v4990_v34, %v1040_v42 }
 0x178   :  { %3803 = vrot.lane.b32.xlu0 %v3802_v46, %s4317_s20  ;;  %v3807_v49 = vpack.i.bf16 %v5005_v39, %v1042_v45  ;;  %v5014_v57 = vmax.f32 %v4992_v36, %v5005_v39  ;;  %v1041_v50 = vsel %vm1039_vm10, %v1008_v47, 0.0 }
 0x179   :  { %v3812_v52 = vpack.i.bf16 %v1041_v50, %v1040_v42  ;;  %v5019_v53 = vmax.f32 %v4996_v43, %v1041_v50  ;;  %v3817_v61 = vpack.i.bf16 %v1042_v45, %v1041_v50 }
 0x17a   :  { %3808 = vrot.lane.b32.xlu1 %v3807_v49, %s4313_s18  ;;  %v1456_v54 = vmax.f32 %v5009_v48, %v5014_v57 }
 0x17b   :  { %v5028_v55 = vmax.f32 %v1438_v41, %v5019_v53  ;;  %v1455_v60 = vmax.f32 %v5019_v53, %v5009_v48  ;;  %v4305_v48 = vld [vmem:[%s6107_s4 + $0x70] sm:$0xff]  }
 0x17c   :  { %3813 = vrot.lane.b32.xlu0 %v3812_v52, %s4313_s18 }
 0x180   :  { %3818 = vrot.lane.b32.xlu0 %v3817_v61, %s4318_s15 }
 0x18d   :  { %v3370_v63 = vpop.f32.mrb[4].mxu0 }
 0x18e   :  { %v5043_v0 = vmax.f32 %v3370_v63, 0.0  ;;  %v928_v2 = vpop.f32.mrb[5].mxu0 }
 0x18f   :  { %v5045_v31 = vmax.f32 %v928_v2, 0.0  ;;  %v3371_v3 = vpop.f32.mrb[6].mxu0 }
 0x190   :  { %v5047_v12 = vmax.f32 %v3371_v3, 0.0  ;;  %v931_v1 = vpop.f32.mrb[7].mxu0  ;;  %v1013_v4 = vrot.slane %v5043_v0, 1 }
 0x191   :  { %v5050_v5 = vmax.f32 %v931_v1, 0.0  ;;  %v3822_v6 = vpack.i.bf16 %v5045_v31, %v4992_v36  ;;  %v1011_v7 = vrot.slane %v5045_v31, 1 }
 0x192   :  { %v1046_v8 = vsel %vm1039_vm10, %v1013_v4, 0.0  ;;  %v1014_v9 = vrot.slane %v5047_v12, 1  ;;  %v3827_v19 = vpack.i.bf16 %v4319_v18, %v5047_v12 }
 0x193   :  { %3823 = vrot.lane.b32.xlu1 %v3822_v6, %s4317_s20  ;;  %v3832_v11 = vpack.i.bf16 %v5043_v0, %v5050_v5  ;;  %v1012_v14 = vrot.slane %v5050_v5, 1  ;;  %v1044_v15 = vsel %vm1039_vm10, %v1011_v7, 0.0  ;;  %v5071_v21 = vmax.f32 %v5043_v0, %v1046_v8 }
 0x194   :  { %v5063_v16 = vmax.f32 %v5045_v31, %v1044_v15  ;;  %v1047_v17 = vsel %vm1039_vm10, %v1014_v9, 0.0  ;;  %v3837_v25 = vpack.i.bf16 %v1044_v15, %v5005_v39 }
 0x195   :  { %3833 = vrot.lane.b32.xlu0 %v3832_v11, %s4317_s20  ;;  %v1045_v20 = vsel %vm1039_vm10, %v1012_v14, 0.0  ;;  %v5074_v22 = vmax.f32 %v5047_v12, %v1047_v17  ;;  %v3842_v30 = vpack.i.bf16 %v1047_v17, %v1046_v8  ;;  %v3857_v27 = vpack.i.bf16 %v4319_v18, %v1047_v17 }
 0x196   :  { %v1457_v23 = vmax.f32 %v5014_v57, %v5063_v16  ;;  %v3847_v32 = vpack.i.bf16 %v1045_v20, %v1044_v15  ;;  %v5079_v24 = vmax.f32 %v5050_v5, %v1045_v20  ;;  %v3852_v26 = vpack.i.bf16 %v1046_v8, %v1045_v20  ;;  %v4304_v57 = vld [vmem:[%s6107_s4 + $0x28] sm:$0xff]  }
 0x197   :  { %3828 = vrot.lane.b32.xlu1 %v3827_v19, %s4317_s20  ;;  %v1460_v59 = vmax.f32 %v5071_v21, %v5074_v22 }
 0x198   :  { %v1458_v33 = vmax.f32 %v5063_v16, %v5079_v24  ;;  %v1459_v56 = vmax.f32 %v5079_v24, %v5071_v21 }
 0x199   :  { %3848 = vrot.lane.b32.xlu0 %v3847_v32, %s4313_s18 }
 0x19b   :  { %3838 = vrot.lane.b32.xlu1 %v3837_v25, %s4318_s15 }
 0x19d   :  { %3853 = vrot.lane.b32.xlu0 %v3852_v26, %s4318_s15 }
 0x19f   :  { %3843 = vrot.lane.b32.xlu1 %v3842_v30, %s4313_s18 }
 0x1a3   :  { %3858 = vrot.lane.b32.xlu1 %v3857_v27, %s4318_s15 }
 0x1b0   :  { %v3374_v58 = vpop.f32.mrb[0].mxu1 }
 0x1b1   :  { %v5095_v29 = vmax.f32 %v3374_v58, 0.0  ;;  %v944_v35 = vpop.f32.mrb[1].mxu1 }
 0x1b2   :  { %v5097_v37 = vmax.f32 %v944_v35, 0.0  ;;  %v3375_v38 = vpop.f32.mrb[2].mxu1 }
 0x1b3   :  { %v5099_v40 = vmax.f32 %v3375_v38, 0.0  ;;  %v947_v44 = vpop.f32.mrb[3].mxu1  ;;  %v1017_v45 = vrot.slane %v5095_v29, 1 }
 0x1b4   :  { %v1015_v42 = vrot.slane %v5097_v37, 1  ;;  %v5103_v46 = vmax.f32 %v947_v44, 0.0 }
 0x1b5   :  { %v1018_v47 = vrot.slane %v5099_v40, 1  ;;  %v1050_v39 = vsel %vm1039_vm10, %v1017_v45, 0.0 }
 0x1b6   :  { %v1048_v49 = vsel %vm1039_vm10, %v1015_v42, 0.0  ;;  %v1016_v50 = vrot.slane %v5103_v46, 1  ;;  %v5111_v52 = vmax.f32 %v5095_v29, %v1050_v39  ;;  %v3872_v4 = vpack.i.bf16 %v5095_v29, %v5103_v46 }
 0x1b7   :  { %v1051_v41 = vsel %vm1039_vm10, %v1018_v47, 0.0  ;;  %v1446_v62 = vmax.f32 %v5097_v37, %v1048_v49 }
 0x1b8   :  { %v3867_v51 = vpack.i.bf16 %v1051_v41, %v1050_v39  ;;  %v5114_v61 = vmax.f32 %v5099_v40, %v1051_v41  ;;  %v1049_v13 = vsel %vm1039_vm10, %v1016_v50, 0.0 }
 0x1b9   :  { %v3862_v63 = vpack.i.bf16 %v1049_v13, %v1048_v49  ;;  %v5119_v10 = vmax.f32 %v5103_v46, %v1049_v13  ;;  %v3882_v6 = vpack.i.bf16 %v1050_v39, %v1049_v13 }
 0x1ba   :  { %v1464_v2 = vmax.f32 %v5111_v52, %v5114_v61  ;;  %3868 = vrot.lane.b32.xlu1 %v3867_v51, %s4313_s18 }
 0x1bb   :  { %v5125_v3 = vmax.f32 %v1446_v62, %v5119_v10  ;;  %v1463_v1 = vmax.f32 %v5119_v10, %v5111_v52  ;;  %3863 = vrot.lane.b32.xlu0 %v3862_v63, %s4313_s18 }
 0x1bf   :  { %3873 = vrot.lane.b32.xlu0 %v3872_v4, %s4317_s20 }
 0x1c3   :  { %3883 = vrot.lane.b32.xlu0 %v3882_v6, %s4318_s15 }
 0x1cd   :  { %v3378_v7 = vpop.f32.mrb[4].mxu1 }
 0x1ce   :  { %v5134_v8 = vmax.f32 %v3378_v7, 0.0  ;;  %v960_v9 = vpop.f32.mrb[5].mxu1 }
 0x1cf   :  { %v5136_v11 = vmax.f32 %v960_v9, 0.0  ;;  %v3379_v14 = vpop.f32.mrb[6].mxu1 }
 0x1d0   :  { %v5138_v15 = vmax.f32 %v3379_v14, 0.0  ;;  %v963_v17 = vpop.f32.mrb[7].mxu1  ;;  %v1021_v19 = vrot.slane %v5134_v8, 1 }
 0x1d1   :  { %v5141_v20 = vmax.f32 %v963_v17, 0.0  ;;  %v3877_v32 = vpack.i.bf16 %v5136_v11, %v5099_v40  ;;  %v1019_v25 = vrot.slane %v5136_v11, 1 }
 0x1d2   :  { %v1022_v26 = vrot.slane %v5138_v15, 1  ;;  %v1054_v30 = vsel %vm1039_vm10, %v1021_v19, 0.0 }
 0x1d3   :  { %3878 = vrot.lane.b32.xlu1 %v3877_v32, %s4317_s20  ;;  %v3897_v27 = vpack.i.bf16 %v5134_v8, %v5141_v20  ;;  %v1052_v58 = vsel %vm1039_vm10, %v1019_v25, 0.0  ;;  %v1020_v35 = vrot.slane %v5141_v20, 1  ;;  %v5160_v47 = vmax.f32 %v5134_v8, %v1054_v30 }
 0x1d4   :  { %v3887_v38 = vpack.i.bf16 %v1052_v58, %v1051_v41  ;;  %v5154_v44 = vmax.f32 %v5136_v11, %v1052_v58  ;;  %v1055_v45 = vsel %vm1039_vm10, %v1022_v26, 0.0 }
 0x1d5   :  { %3898 = vrot.lane.b32.xlu0 %v3897_v27, %s4317_s20  ;;  %v1053_v42 = vsel %vm1039_vm10, %v1020_v35, 0.0  ;;  %v5163_v39 = vmax.f32 %v5138_v15, %v1055_v45  ;;  %v3892_v63 = vpack.i.bf16 %v1055_v45, %v1054_v30 }
 0x1d6   :  { %v1465_v49 = vmax.f32 %v5114_v61, %v5154_v44  ;;  %v3902_v50 = vpack.i.bf16 %v1053_v42, %v1052_v58  ;;  %v5168_v41 = vmax.f32 %v5141_v20, %v1053_v42  ;;  %v3907_v4 = vpack.i.bf16 %v1054_v30, %v1053_v42 }
 0x1d7   :  { %3888 = vrot.lane.b32.xlu1 %v3887_v38, %s4318_s15 }
 0x1d9   :  { %3903 = vrot.lane.b32.xlu0 %v3902_v50, %s4313_s18 }
 0x1db   :  { %3893 = vrot.lane.b32.xlu1 %v3892_v63, %s4313_s18 }
 0x1dd   :  { %3908 = vrot.lane.b32.xlu0 %v3907_v4, %s4318_s15 }
 0x1df   :  { %1149 = vrot.lane.b32.xlu1 %v5138_v15, %s4317_s20 }
 0x1e3   :  { %1194 = vrot.lane.b32.xlu1 %v1055_v45, %s4318_s15 }
 0x1ea   :  { %v3804_v6 = vpop.permute.xlu0 %3803 }
 0x1eb   :  { %v3806_v32 = vunpack.i.h.bf16 %v3804_v6  ;;  %v3805_v25 = vunpack.i.l.bf16 %v3804_v6 }
 0x1ee   :  { %v3814_v7 = vpop.permute.xlu0 %3813 }
 0x1ef   :  { %v3816_v9 = vunpack.i.h.bf16 %v3814_v7  ;;  %v3815_v14 = vunpack.i.l.bf16 %v3814_v7 }
 0x1f1   :  { %v1212_v17 = vsel %vm736_vm4, %v4996_v43, %v3816_v9  ;;  %v1211_v19 = vsel %vm736_vm4, %v4990_v34, %v3815_v14  ;;  %v3809_v43 = vpop.permute.xlu1 %3808 }
 0x1f2   :  { %v3819_v26 = vpop.permute.xlu0 %3818  ;;  %v1227_v58 = vsel %vm804_vm8, %v1211_v19, %v3805_v25  ;;  %v1228_v35 = vsel %vm804_vm8, %v1212_v17, %v3806_v32  ;;  %v3811_v63 = vunpack.i.h.bf16 %v3809_v43  ;;  %v3810_v4 = vunpack.i.l.bf16 %v3809_v43 }
 0x1f3   :  { %v3821_v30 = vunpack.i.h.bf16 %v3819_v26  ;;  %v3820_v27 = vunpack.i.l.bf16 %v3819_v26 }
 0x1f4   :  { %v1214_v17 = vsel %vm736_vm4, %v4992_v36, %v3811_v63  ;;  %v1213_v32 = vsel %vm736_vm4, %v4988_v28, %v3810_v4 }
 0x1f5   :  { %v1244_v38 = vsel %vm1243_vm11, %v1227_v58, %v3820_v27  ;;  %v1245_v45 = vsel %vm1243_vm11, %v1228_v35, %v3821_v30 }
 0x1f6   :  { %v1260_v42 = vpack.c.bf16 %v1245_v45, %v1244_v38 }
 0x1f8   :  { %3388 = vmatprep.mubr.msk.bf16.mxu1 %vm1300_vm12, %v1260_v42 }
 0x205   :  { %v3824_v34 = vpop.permute.xlu1 %3823 }
 0x206   :  { %v3826_v7 = vunpack.i.h.bf16 %v3824_v34  ;;  %v3825_v9 = vunpack.i.l.bf16 %v3824_v34 }
 0x207   :  { %v3834_v50 = vpop.permute.xlu0 %3833 }
 0x208   :  { %v1230_v38 = vsel %vm804_vm8, %v1214_v17, %v3826_v7  ;;  %v1229_v45 = vsel %vm804_vm8, %v1213_v32, %v3825_v9  ;;  %v3836_v42 = vunpack.i.h.bf16 %v3834_v50  ;;  %v3835_v43 = vunpack.i.l.bf16 %v3834_v50 }
 0x209   :  { %v3829_v6 = vpop.permute.xlu1 %3828 }
 0x20b   :  { %v3849_v14 = vpop.permute.xlu0 %3848 }
 0x20c   :  { %v3851_v19 = vunpack.i.h.bf16 %v3849_v14  ;;  %v3850_v25 = vunpack.i.l.bf16 %v3849_v14 }
 0x20d   :  { %v3839_v26 = vpop.permute.xlu1 %3838 }
 0x20e   :  { %v1216_v30 = vsel %vm736_vm4, %v5050_v5, %v3851_v19  ;;  %v1215_v27 = vsel %vm736_vm4, %v5045_v31, %v3850_v25  ;;  %v3841_v58 = vunpack.i.h.bf16 %v3839_v26  ;;  %v3840_v35 = vunpack.i.l.bf16 %v3839_v26 }
 0x20f   :  { %v3854_v34 = vpop.permute.xlu0 %3853  ;;  %v1231_v5 = vsel %vm804_vm8, %v1215_v27, %v3835_v43  ;;  %v1232_v31 = vsel %vm804_vm8, %v1216_v30, %v3836_v42  ;;  %v3830_v27 = vunpack.i.l.bf16 %v3829_v6 }
 0x210   :  { %v1247_v36 = vsel %vm1243_vm11, %v1230_v38, %v3841_v58  ;;  %v1246_v28 = vsel %vm1243_vm11, %v1229_v45, %v3840_v35  ;;  %v3856_v63 = vunpack.i.h.bf16 %v3854_v34  ;;  %v3855_v4 = vunpack.i.l.bf16 %v3854_v34 }
 0x211   :  { %v1261_v14 = vpack.c.bf16 %v1247_v36, %v1246_v28  ;;  %v3844_v19 = vpop.permute.xlu1 %3843  ;;  %v5213_v58 = vunpack.i.h.bf16 %v3829_v6 }
 0x212   :  { %v1248_v25 = vsel %vm1243_vm11, %v1231_v5, %v3855_v4  ;;  %v1249_v7 = vsel %vm1243_vm11, %v1232_v31, %v3856_v63  ;;  %v3846_v9 = vunpack.i.h.bf16 %v3844_v19  ;;  %v3845_v17 = vunpack.i.l.bf16 %v3844_v19 }
 0x213   :  { %v1262_v50 = vpack.c.bf16 %v1249_v7, %v1248_v25  ;;  %3389 = vmatmul.mubr.msk.bf16.vlgmr.msra.gmra.mrb[8].mxu1 %vm1300_vm12, %v1261_v14 }
 0x214   :  { %v1218_v32 = vsel %vm736_vm4, %v5047_v12, %v3846_v9  ;;  %v1217_v26 = vsel %vm736_vm4, %v5043_v0, %v3845_v17 }
 0x215   :  { %v5215_v30 = vpop.permute.xlu1 %3858  ;;  %3392 = vmatprep.mubr.msk.bf16.mxu1 %vm1300_vm12, %v1262_v50  ;;  %v1233_v45 = vsel %vm804_vm8, %v1217_v26, %v3830_v27  ;;  %v1234_v42 = vsel %vm804_vm8, %v1218_v32, %v5213_v58 }
 0x216   :  { %v3861_v35 = vunpack.i.h.bf16 %v5215_v30  ;;  %v3860_v38 = vunpack.i.l.bf16 %v5215_v30 }
 0x218   :  { %v1250_v12 = vsel %vm1243_vm11, %v1233_v45, %v3860_v38  ;;  %v1251_v0 = vsel %vm1243_vm11, %v1234_v42, %v3861_v35 }
 0x219   :  { %v1263_v6 = vpack.c.bf16 %v1251_v0, %v1250_v12 }
 0x21b   :  { %3393 = vmatmul.mubr.msk.bf16.gmra.mrb[12].mxu1 %vm1300_vm12, %v1263_v6 }
 0x22c   :  { %v3869_v26 = vpop.permute.xlu1 %3868 }
 0x22d   :  { %v3864_v43 = vpop.permute.xlu0 %3863  ;;  %v3871_v38 = vunpack.i.h.bf16 %v3869_v26 }
 0x22e   :  { %v3866_v36 = vunpack.i.h.bf16 %v3864_v43  ;;  %v3865_v28 = vunpack.i.l.bf16 %v3864_v43 }
 0x22f   :  { %v1222_v0 = vsel %vm736_vm4, %v5099_v40, %v3871_v38 }
 0x230   :  { %v1220_v5 = vsel %vm736_vm4, %v5103_v46, %v3866_v36  ;;  %v1219_v31 = vsel %vm736_vm4, %v5097_v37, %v3865_v28  ;;  %v3870_v46 = vunpack.i.l.bf16 %v3869_v26 }
 0x231   :  { %v3874_v34 = vpop.permute.xlu0 %3873 }
 0x232   :  { %v3876_v63 = vunpack.i.h.bf16 %v3874_v34  ;;  %v3875_v4 = vunpack.i.l.bf16 %v3874_v34  ;;  %v1221_v6 = vsel %vm736_vm4, %v5095_v29, %v3870_v46 }
 0x234   :  { %v1235_v7 = vsel %vm804_vm8, %v1219_v31, %v3875_v4  ;;  %v1236_v9 = vsel %vm804_vm8, %v1220_v5, %v3876_v63 }
 0x235   :  { %v3884_v14 = vpop.permute.xlu0 %3883 }
 0x236   :  { %v3886_v19 = vunpack.i.h.bf16 %v3884_v14  ;;  %v3885_v25 = vunpack.i.l.bf16 %v3884_v14 }
 0x238   :  { %v1252_v17 = vsel %vm1243_vm11, %v1235_v7, %v3885_v25  ;;  %v1253_v50 = vsel %vm1243_vm11, %v1236_v9, %v3886_v19 }
 0x239   :  { %v1264_v32 = vpack.c.bf16 %v1253_v50, %v1252_v17 }
 0x23b   :  { %3396 = vmatprep.mubr.msk.bf16.mxu1 %vm1300_vm12, %v1264_v32 }
 0x245   :  { %v3879_v27 = vpop.permute.xlu1 %3878 }
 0x246   :  { %v3881_v45 = vunpack.i.h.bf16 %v3879_v27  ;;  %v3880_v42 = vunpack.i.l.bf16 %v3879_v27 }
 0x247   :  { %v3899_v37 = vpop.permute.xlu0 %3898 }
 0x248   :  { %v1237_v36 = vsel %vm804_vm8, %v1221_v6, %v3880_v42  ;;  %v1238_v28 = vsel %vm804_vm8, %v1222_v0, %v3881_v45  ;;  %v3901_v17 = vunpack.i.h.bf16 %v3899_v37  ;;  %v3900_v50 = vunpack.i.l.bf16 %v3899_v37 }
 0x249   :  { %v3889_v12 = vpop.permute.xlu1 %3888 }
 0x24a   :  { %v3891_v43 = vunpack.i.h.bf16 %v3889_v12  ;;  %v3890_v34 = vunpack.i.l.bf16 %v3889_v12 }
 0x24b   :  { %v3904_v63 = vpop.permute.xlu0 %3903 }
 0x24c   :  { %v1254_v4 = vsel %vm1243_vm11, %v1237_v36, %v3890_v34  ;;  %v1255_v14 = vsel %vm1243_vm11, %v1238_v28, %v3891_v43  ;;  %v3906_v5 = vunpack.i.h.bf16 %v3904_v63  ;;  %v3905_v31 = vunpack.i.l.bf16 %v3904_v63 }
 0x24d   :  { %v1265_v19 = vpack.c.bf16 %v1255_v14, %v1254_v4  ;;  %v3894_v25 = vpop.permute.xlu1 %3893 }
 0x24e   :  { %v1224_v40 = vsel %vm736_vm4, %v5141_v20, %v3906_v5  ;;  %v1223_v29 = vsel %vm736_vm4, %v5136_v11, %v3905_v31  ;;  %v3896_v7 = vunpack.i.h.bf16 %v3894_v25  ;;  %v3895_v9 = vunpack.i.l.bf16 %v3894_v25 }
 0x24f   :  { %v3909_v32 = vpop.permute.xlu0 %3908  ;;  %3397 = vmatmul.mubr.msk.bf16.gmra.mrb[16].mxu1 %vm1300_vm12, %v1265_v19  ;;  %v1239_v46 = vsel %vm804_vm8, %v1223_v29, %v3900_v50  ;;  %v1240_v45 = vsel %vm804_vm8, %v1224_v40, %v3901_v17  ;;  %v4290_v40 = vld [vmem:[%s6106_s3 + $0x8] sm:$0xff]  }
 0x250   :  { %v1226_v26 = vsel %vm736_vm4, %v5138_v15, %v3896_v7  ;;  %v3911_v27 = vunpack.i.h.bf16 %v3909_v32  ;;  %v3910_v38 = vunpack.i.l.bf16 %v3909_v32  ;;  %v1225_v37 = vsel %vm736_vm4, %v5134_v8, %v3895_v9  ;;  %v4289_v8 = vld [vmem:[%s6106_s3] sm:$0xff]  }
 0x251   :  { %v1150_v20 = vpop.permute.xlu1 %1149  ;;  %v1242_v0 = vsel %vm804_vm8, %v1226_v26, %v5213_v58  ;;  %3404 = vmatprep.subr.bf16.mxu0 %v4289_v8 }
 0x252   :  { %v1256_v42 = vsel %vm1243_vm11, %v1239_v46, %v3910_v38  ;;  %v1257_v11 = vsel %vm1243_vm11, %v1240_v45, %v3911_v27  ;;  %v1241_v15 = vsel %vm804_vm8, %v1225_v37, %v1150_v20  ;;  %v1259_v34 = vsel %vm1243_vm11, %v1242_v0, %v3861_v35  ;;  %3405 = vmatpush3.bf16.msra.mxu0 %v4289_v8 }
 0x253   :  { %v1266_v12 = vpack.c.bf16 %v1257_v11, %v1256_v42  ;;  %3406 = vmatprep.subr.bf16.mxu0 %v4290_v40 }
 0x255   :  { %v1195_v6 = vpop.permute.xlu1 %1194  ;;  %3400 = vmatprep.mubr.msk.bf16.mxu1 %vm1300_vm12, %v1266_v12 }
 0x256   :  { %v1258_v43 = vsel %vm1243_vm11, %v1241_v15, %v1195_v6  ;;  %3407 = vmatpush3.bf16.msra.mxu0 %v4290_v40 }
 0x257   :  { %v1267_v36 = vpack.c.bf16 %v1259_v34, %v1258_v43 }
 0x259   :  { %3401 = vmatmul.mubr.msk.bf16.gmra.mrb[20].mxu1 %vm1300_vm12, %v1267_v36 }
 0x2e6   :  { %v3390_v28 = vpop.f32.mrb[8].mxu1 }
 0x2e7   :  { %v5270_v63 = vmax.f32 %v3390_v28, 0.0  ;;  %v5272_v4 = vpop.f32.mrb[9].mxu1 }
 0x2e8   :  { %v1422_v14 = vmax.f32 %v5272_v4, 0.0  ;;  %v3391_v5 = vpop.f32.mrb[10].mxu1 }
 0x2e9   :  { %v1488_v30 = vrot.slane %v5270_v63, 1  ;;  %v5276_v31 = vmax.f32 %v3391_v5, 0.0  ;;  %v1362_v35 = vpop.f32.mrb[11].mxu1 }
 0x2ea   :  { %v1486_v19 = vrot.slane %v1422_v14, 1  ;;  %v5280_v25 = vmax.f32 %v1362_v35, 0.0 }
 0x2eb   :  { %v1489_v29 = vrot.slane %v5276_v31, 1  ;;  %v1520_v17 = vsel %vm1039_vm10, %v1488_v30, 0.0 }
 0x2ec   :  { %v1487_v7 = vrot.slane %v5280_v25, 1  ;;  %v3912_v9 = vpack.i.bf16 %v5270_v63, %v5280_v25  ;;  %v1518_v32 = vsel %vm1039_vm10, %v1486_v19, 0.0 }
 0x2ed   :  { %v1521_v50 = vsel %vm1039_vm10, %v1489_v29, 0.0 }
 0x2ee   :  { %3913 = vrot.lane.b32.xlu0 %v3912_v9, %s4313_s18  ;;  %v3394_v26 = vpop.f32.mrb[12].mxu1  ;;  %v3917_v27 = vpack.i.bf16 %v1521_v50, %v1520_v17  ;;  %v1519_v38 = vsel %vm1039_vm10, %v1487_v7, 0.0 }
 0x2ef   :  { %v1375_v46 = vpop.f32.mrb[13].mxu1  ;;  %v3922_v45 = vpack.i.bf16 %v1519_v38, %v1518_v32  ;;  %v3927_v6 = vpack.i.bf16 %v1520_v17, %v1519_v38  ;;  %v5307_v34 = vmax.f32 %v3394_v26, 0.0 }
 0x2f0   :  { %v5294_v20 = vmax.f32 %v1375_v46, 0.0  ;;  %3918 = vrot.lane.b32.xlu1 %v3917_v27, %s4310_s13  ;;  %v3395_v42 = vpop.f32.mrb[14].mxu1 }
 0x2f1   :  { %v1378_v11 = vpop.f32.mrb[15].mxu1  ;;  %v5303_v15 = vmax.f32 %v3395_v42, 0.0  ;;  %v1492_v30 = vrot.slane %v5307_v34, 1 }
 0x2f2   :  { %v1490_v37 = vrot.slane %v5294_v20, 1  ;;  %v5298_v12 = vmax.f32 %v1378_v11, 0.0  ;;  %3923 = vrot.lane.b32.xlu0 %v3922_v45, %s4310_s13  ;;  %v3932_v0 = vpack.i.bf16 %v5294_v20, %v5276_v31 }
 0x2f3   :  { %v1493_v8 = vrot.slane %v5303_v15, 1  ;;  %v3947_v19 = vpack.i.bf16 %v4319_v18, %v5303_v15  ;;  %v1524_v7 = vsel %vm1039_vm10, %v1492_v30, 0.0 }
 0x2f4   :  { %3933 = vrot.lane.b32.xlu1 %v3932_v0, %s4313_s18  ;;  %v1522_v43 = vsel %vm1039_vm10, %v1490_v37, 0.0  ;;  %v1491_v36 = vrot.slane %v5298_v12, 1  ;;  %v3937_v5 = vpack.i.bf16 %v5307_v34, %v5298_v12 }
 0x2f5   :  { %v3942_v28 = vpack.i.bf16 %v1522_v43, %v1521_v50  ;;  %v1525_v40 = vsel %vm1039_vm10, %v1493_v8, 0.0 }
 0x2f6   :  { %3928 = vrot.lane.b32.xlu0 %v3927_v6, %s4315_s30  ;;  %v1523_v35 = vsel %vm1039_vm10, %v1491_v36, 0.0  ;;  %v3952_v9 = vpack.i.bf16 %v1525_v40, %v1524_v7  ;;  %v3967_v50 = vpack.i.bf16 %v4319_v18, %v1525_v40 }
 0x2f7   :  { %v3957_v29 = vpack.i.bf16 %v1523_v35, %v1522_v43  ;;  %v3962_v17 = vpack.i.bf16 %v1524_v7, %v1523_v35 }
 0x2f8   :  { %3943 = vrot.lane.b32.xlu1 %v3942_v28, %s4315_s30 }
 0x2fa   :  { %3938 = vrot.lane.b32.xlu0 %v3937_v5, %s4313_s18 }
 0x2fc   :  { %3948 = vrot.lane.b32.xlu1 %v3947_v19, %s4313_s18 }
 0x2fe   :  { %3958 = vrot.lane.b32.xlu0 %v3957_v29, %s4310_s13 }
 0x300   :  { %3953 = vrot.lane.b32.xlu1 %v3952_v9, %s4310_s13 }
 0x302   :  { %3963 = vrot.lane.b32.xlu0 %v3962_v17, %s4315_s30 }
 0x304   :  { %3968 = vrot.lane.b32.xlu1 %v3967_v50, %s4315_s30 }
 0x322   :  { %v3398_v32 = vpop.f32.mrb[16].mxu1 }
 0x323   :  { %v5328_v26 = vmax.f32 %v3398_v32, 0.0  ;;  %v5330_v27 = vpop.f32.mrb[17].mxu1 }
 0x324   :  { %v1430_v38 = vmax.f32 %v5330_v27, 0.0  ;;  %v3399_v46 = vpop.f32.mrb[18].mxu1 }
 0x325   :  { %v1496_v45 = vrot.slane %v5328_v26, 1  ;;  %v5334_v42 = vmax.f32 %v3399_v46, 0.0  ;;  %v1394_v11 = vpop.f32.mrb[19].mxu1 }
 0x326   :  { %v1494_v37 = vrot.slane %v1430_v38, 1  ;;  %v5338_v0 = vmax.f32 %v1394_v11, 0.0 }
 0x327   :  { %v1497_v6 = vrot.slane %v5334_v42, 1  ;;  %v1528_v28 = vsel %vm1039_vm10, %v1496_v45, 0.0 }
 0x328   :  { %v3972_v43 = vpack.i.bf16 %v5328_v26, %v5338_v0  ;;  %v1495_v36 = vrot.slane %v5338_v0, 1  ;;  %v1526_v5 = vsel %vm1039_vm10, %v1494_v37, 0.0 }
 0x329   :  { %v1529_v8 = vsel %vm1039_vm10, %v1497_v6, 0.0 }
 0x32a   :  { %v1527_v30 = vsel %vm1039_vm10, %v1495_v36, 0.0  ;;  %3973 = vrot.lane.b32.xlu0 %v3972_v43, %s4313_s18  ;;  %v3977_v35 = vpack.i.bf16 %v1529_v8, %v1528_v28 }
 0x32b   :  { %v3982_v19 = vpack.i.bf16 %v1527_v30, %v1526_v5  ;;  %v3987_v45 = vpack.i.bf16 %v1528_v28, %v1527_v30 }
 0x32c   :  { %3978 = vrot.lane.b32.xlu1 %v3977_v35, %s4310_s13  ;;  %v3402_v40 = vpop.f32.mrb[20].mxu1 }
 0x32d   :  { %v1407_v29 = vpop.f32.mrb[21].mxu1  ;;  %v5360_v37 = vmax.f32 %v3402_v40, 0.0 }
 0x32e   :  { %v5350_v7 = vmax.f32 %v1407_v29, 0.0  ;;  %3983 = vrot.lane.b32.xlu0 %v3982_v19, %s4310_s13  ;;  %v3403_v9 = vpop.f32.mrb[22].mxu1 }
 0x32f   :  { %v1410_v17 = vpop.f32.mrb[23].mxu1  ;;  %v5358_v11 = vmax.f32 %v3403_v9, 0.0  ;;  %v1500_v30 = vrot.slane %v5360_v37, 1 }
 0x330   :  { %v3992_v50 = vpack.i.bf16 %v5350_v7, %v5334_v42  ;;  %v1498_v32 = vrot.slane %v5350_v7, 1  ;;  %v5356_v46 = vmax.f32 %v1410_v17, 0.0 }
 0x331   :  { %v1501_v35 = vrot.slane %v5358_v11, 1 }
 0x332   :  { %v1530_v6 = vsel %vm1039_vm10, %v1498_v32, 0.0  ;;  %v1499_v43 = vrot.slane %v5356_v46, 1  ;;  %3988 = vrot.lane.b32.xlu0 %v3987_v45, %s4315_s30  ;;  %3993 = vrot.lane.b32.xlu1 %v3992_v50, %s4313_s18  ;;  %v3997_v5 = vpack.i.bf16 %v5360_v37, %v5356_v46 }
 0x333   :  { %v4002_v36 = vpack.i.bf16 %v1530_v6, %v1529_v8  ;;  %v1533_v40 = vsel %vm1039_vm10, %v1501_v35, 0.0  ;;  %v1532_v8 = vsel %vm1039_vm10, %v1500_v30, 0.0 }
 0x334   :  { %v1531_v28 = vsel %vm1039_vm10, %v1499_v43, 0.0  ;;  %v4007_v29 = vpack.i.bf16 %v1533_v40, %v1532_v8 }
 0x335   :  { %v4012_v19 = vpack.i.bf16 %v1531_v28, %v1530_v6  ;;  %v4017_v9 = vpack.i.bf16 %v1532_v8, %v1531_v28 }
 0x336   :  { %4003 = vrot.lane.b32.xlu1 %v4002_v36, %s4315_s30  ;;  %3998 = vrot.lane.b32.xlu0 %v3997_v5, %s4313_s18 }
 0x33a   :  { %1626 = vrot.lane.b32.xlu1 %v5358_v11, %s4313_s18  ;;  %4013 = vrot.lane.b32.xlu0 %v4012_v19, %s4310_s13 }
 0x33e   :  { %4008 = vrot.lane.b32.xlu1 %v4007_v29, %s4310_s13  ;;  %4018 = vrot.lane.b32.xlu0 %v4017_v9, %s4315_s30 }
 0x342   :  { %1671 = vrot.lane.b32.xlu1 %v1533_v40, %s4315_s30 }
 0x360   :  { %v3914_v17 = vpop.permute.xlu0 %3913 }
 0x361   :  { %v3916_v30 = vunpack.i.h.bf16 %v3914_v17  ;;  %v3915_v19 = vunpack.i.l.bf16 %v3914_v17 }
 0x362   :  { %v3919_v50 = vpop.permute.xlu1 %3918 }
 0x363   :  { %v3921_v43 = vunpack.i.h.bf16 %v3919_v50  ;;  %v3920_v36 = vunpack.i.l.bf16 %v3919_v50 }
 0x364   :  { %v3924_v32 = vpop.permute.xlu0 %3923 }
 0x365   :  { %v3926_v45 = vunpack.i.h.bf16 %v3924_v32  ;;  %v3925_v6 = vunpack.i.l.bf16 %v3924_v32  ;;  %v1691_v32 = vsel %vm702_vm2, %v5276_v31, %v3921_v43  ;;  %v1690_v50 = vsel %vm702_vm2, %v5270_v63, %v3920_v36 }
 0x366   :  { %v3934_v5 = vpop.permute.xlu1 %3933 }
 0x367   :  { %v1689_v35 = vsel %vm702_vm2, %v5280_v25, %v3926_v45  ;;  %v1688_v28 = vsel %vm702_vm2, %v1422_v14, %v3925_v6  ;;  %v3936_v8 = vunpack.i.h.bf16 %v3934_v5  ;;  %v3935_v29 = vunpack.i.l.bf16 %v3934_v5 }
 0x368   :  { %v3929_v40 = vpop.permute.xlu0 %3928  ;;  %v1704_v62 = vsel %vm736_vm4, %v1688_v28, %v3915_v19  ;;  %v1705_v25 = vsel %vm736_vm4, %v1689_v35, %v3916_v30 }
 0x369   :  { %v3931_v9 = vunpack.i.h.bf16 %v3929_v40  ;;  %v3930_v13 = vunpack.i.l.bf16 %v3929_v40  ;;  %v1707_v5 = vsel %vm736_vm4, %v1691_v32, %v3936_v8  ;;  %v1706_v40 = vsel %vm736_vm4, %v1690_v50, %v3935_v29 }
 0x36a   :  { %v3944_v4 = vpop.permute.xlu1 %3943 }
 0x36b   :  { %v1720_v14 = vsel %vm770_vm6, %v1704_v62, %v3930_v13  ;;  %v1721_v17 = vsel %vm770_vm6, %v1705_v25, %v3931_v9  ;;  %v3946_v45 = vunpack.i.h.bf16 %v3944_v4  ;;  %v3945_v6 = vunpack.i.l.bf16 %v3944_v4 }
 0x36c   :  { %v1736_v51 = vpack.c.bf16 %v1721_v17, %v1720_v14  ;;  %v3939_v31 = vpop.permute.xlu0 %3938 }
 0x36d   :  { %v1723_v43 = vsel %vm770_vm6, %v1707_v5, %v3946_v45  ;;  %v1722_v63 = vsel %vm770_vm6, %v1706_v40, %v3945_v6  ;;  %v3941_v32 = vunpack.i.h.bf16 %v3939_v31  ;;  %v3940_v50 = vunpack.i.l.bf16 %v3939_v31 }
 0x36e   :  { %v1737_v36 = vpack.c.bf16 %v1723_v43, %v1722_v63  ;;  %3408 = vmatprep.mubr.msk.bf16.mxu0 %vm804_vm8, %v1736_v51  ;;  %v5399_v35 = vpop.permute.xlu1 %3948 }
 0x36f   :  { %v3951_v45 = vunpack.i.h.bf16 %v5399_v35 }
 0x370   :  { %3409 = vmatmul.mubr.msk.bf16.vlgmr.msra.gmra.mrb[8].mxu0 %vm804_vm8, %v1737_v36  ;;  %v3959_v13 = vpop.permute.xlu0 %3958 }
 0x371   :  { %v3961_v62 = vunpack.i.h.bf16 %v3959_v13  ;;  %v3960_v28 = vunpack.i.l.bf16 %v3959_v13 }
 0x372   :  { %v3954_v30 = vpop.permute.xlu1 %3953 }
 0x373   :  { %v1693_v19 = vsel %vm702_vm2, %v5298_v12, %v3961_v62  ;;  %v1692_v8 = vsel %vm702_vm2, %v5294_v20, %v3960_v28  ;;  %v3956_v29 = vunpack.i.h.bf16 %v3954_v30  ;;  %v3955_v9 = vunpack.i.l.bf16 %v3954_v30 }
 0x374   :  { %v3964_v25 = vpop.permute.xlu0 %3963  ;;  %v3950_v12 = vunpack.i.l.bf16 %v5399_v35  ;;  %v1708_v6 = vsel %vm736_vm4, %v1692_v8, %v3940_v50  ;;  %v1709_v20 = vsel %vm736_vm4, %v1693_v19, %v3941_v32 }
 0x375   :  { %v1695_v51 = vsel %vm702_vm2, %v5303_v15, %v3956_v29  ;;  %v1694_v4 = vsel %vm702_vm2, %v5307_v34, %v3955_v9  ;;  %v3966_v14 = vunpack.i.h.bf16 %v3964_v25  ;;  %v3965_v17 = vunpack.i.l.bf16 %v3964_v25 }
 0x376   :  { %v5414_v5 = vpop.permute.xlu1 %3968  ;;  %v1710_v63 = vsel %vm736_vm4, %v1694_v4, %v3950_v12  ;;  %v1711_v36 = vsel %vm736_vm4, %v1695_v51, %v3951_v45 }
 0x377   :  { %v1724_v40 = vsel %vm770_vm6, %v1708_v6, %v3965_v17  ;;  %v1725_v31 = vsel %vm770_vm6, %v1709_v20, %v3966_v14  ;;  %v3971_v15 = vunpack.i.h.bf16 %v5414_v5  ;;  %v3970_v34 = vunpack.i.l.bf16 %v5414_v5  ;;  %v4291_v5 = vld [vmem:[%s6107_s4 + $0x80] sm:$0xff]  }
 0x378   :  { %v1738_v43 = vpack.c.bf16 %v1725_v31, %v1724_v40  ;;  %3424 = vmatprep.subr.bf16.mxu0 %v4291_v5 }
 0x379   :  { %v1726_v13 = vsel %vm770_vm6, %v1710_v63, %v3970_v34  ;;  %v1727_v62 = vsel %vm770_vm6, %v1711_v36, %v3971_v15  ;;  %3425 = vmatpush3.bf16.msra.mxu0 %v4291_v5  ;;  %v4297_v5 = vld [vmem:[%s6107_s4 + $0x50] sm:$0xff]  }
 0x37a   :  { %v1739_v28 = vpack.c.bf16 %v1727_v62, %v1726_v13  ;;  %3412 = vmatprep.mubr.msk.bf16.mxu0 %vm804_vm8, %v1738_v43 }
 0x37c   :  { %3413 = vmatmul.mubr.msk.bf16.gmra.mrb[12].mxu0 %vm804_vm8, %v1739_v28 }
 0x39c   :  { %v3974_v30 = vpop.permute.xlu0 %3973 }
 0x39d   :  { %v3976_v25 = vunpack.i.h.bf16 %v3974_v30  ;;  %v3975_v51 = vunpack.i.l.bf16 %v3974_v30 }
 0x39e   :  { %v3979_v19 = vpop.permute.xlu1 %3978 }
 0x39f   :  { %v3981_v17 = vunpack.i.h.bf16 %v3979_v19  ;;  %v3980_v12 = vunpack.i.l.bf16 %v3979_v19 }
 0x3a0   :  { %v3984_v8 = vpop.permute.xlu0 %3983 }
 0x3a1   :  { %v3986_v29 = vunpack.i.h.bf16 %v3984_v8  ;;  %v3985_v9 = vunpack.i.l.bf16 %v3984_v8  ;;  %v1699_v13 = vsel %vm702_vm2, %v5334_v42, %v3981_v17  ;;  %v1698_v62 = vsel %vm702_vm2, %v5328_v26, %v3980_v12 }
 0x3a3   :  { %v1697_v32 = vsel %vm702_vm2, %v5338_v0, %v3986_v29  ;;  %v1696_v50 = vsel %vm702_vm2, %v1430_v38, %v3985_v9 }
 0x3a4   :  { %v3989_v4 = vpop.permute.xlu0 %3988  ;;  %v3994_v14 = vpop.permute.xlu1 %3993  ;;  %v1712_v40 = vsel %vm736_vm4, %v1696_v50, %v3975_v51  ;;  %v1713_v31 = vsel %vm736_vm4, %v1697_v32, %v3976_v25 }
 0x3a5   :  { %v3991_v6 = vunpack.i.h.bf16 %v3989_v4  ;;  %v3990_v20 = vunpack.i.l.bf16 %v3989_v4  ;;  %v3996_v34 = vunpack.i.h.bf16 %v3994_v14  ;;  %v3995_v43 = vunpack.i.l.bf16 %v3994_v14 }
 0x3a7   :  { %v1728_v0 = vsel %vm770_vm6, %v1712_v40, %v3990_v20  ;;  %v1729_v27 = vsel %vm770_vm6, %v1713_v31, %v3991_v6  ;;  %v1715_v19 = vsel %vm736_vm4, %v1699_v13, %v3996_v34  ;;  %v1714_v8 = vsel %vm736_vm4, %v1698_v62, %v3995_v43 }
 0x3a8   :  { %v1740_v63 = vpack.c.bf16 %v1729_v27, %v1728_v0  ;;  %v4004_v38 = vpop.permute.xlu1 %4003  ;;  %v3999_v36 = vpop.permute.xlu0 %3998 }
 0x3a9   :  { %v4006_v28 = vunpack.i.h.bf16 %v4004_v38  ;;  %v4005_v30 = vunpack.i.l.bf16 %v4004_v38  ;;  %v4001_v14 = vunpack.i.h.bf16 %v3999_v36  ;;  %v4000_v17 = vunpack.i.l.bf16 %v3999_v36 }
 0x3aa   :  { %3416 = vmatprep.mubr.msk.bf16.mxu0 %vm804_vm8, %v1740_v63 }
 0x3ab   :  { %v1731_v29 = vsel %vm770_vm6, %v1715_v19, %v4006_v28  ;;  %v1730_v9 = vsel %vm770_vm6, %v1714_v8, %v4005_v30 }
 0x3ac   :  { %v1741_v32 = vpack.c.bf16 %v1731_v29, %v1730_v9  ;;  %v1627_v50 = vpop.permute.xlu1 %1626  ;;  %v4014_v25 = vpop.permute.xlu0 %4013 }
 0x3ad   :  { %v4016_v51 = vunpack.i.h.bf16 %v4014_v25  ;;  %v4015_v42 = vunpack.i.l.bf16 %v4014_v25 }
 0x3ae   :  { %3417 = vmatmul.mubr.msk.bf16.gmra.mrb[16].mxu0 %vm804_vm8, %v1741_v32 }
 0x3af   :  { %v1701_v26 = vsel %vm702_vm2, %v5356_v46, %v4016_v51  ;;  %v1700_v4 = vsel %vm702_vm2, %v5350_v7, %v4015_v42  ;;  %v4292_v51 = vld [vmem:[%s6107_s4 + $0x88] sm:$0xff]  }
 0x3b0   :  { %v4009_v12 = vpop.permute.xlu1 %4008  ;;  %v4019_v6 = vpop.permute.xlu0 %4018  ;;  %v1716_v43 = vsel %vm736_vm4, %v1700_v4, %v4000_v17  ;;  %v1717_v0 = vsel %vm736_vm4, %v1701_v26, %v4001_v14  ;;  %3426 = vmatprep.subr.bf16.mxu0 %v4292_v51 }
 0x3b1   :  { %v4011_v20 = vunpack.i.h.bf16 %v4009_v12  ;;  %v4010_v40 = vunpack.i.l.bf16 %v4009_v12  ;;  %v4021_v31 = vunpack.i.h.bf16 %v4019_v6  ;;  %v4020_v34 = vunpack.i.l.bf16 %v4019_v6  ;;  %3427 = vmatpush3.bf16.msra.mxu0 %v4292_v51  ;;  %v4300_v51 = vld [vmem:[%s6107_s4 + $0x18] sm:$0xff]  }
 0x3b3   :  { %v1703_v27 = vsel %vm702_vm2, %v5358_v11, %v4011_v20  ;;  %v1732_v46 = vsel %vm770_vm6, %v1716_v43, %v4020_v34  ;;  %v1733_v63 = vsel %vm770_vm6, %v1717_v0, %v4021_v31  ;;  %v1702_v7 = vsel %vm702_vm2, %v5360_v37, %v4010_v40 }
 0x3b4   :  { %v1742_v38 = vpack.c.bf16 %v1733_v63, %v1732_v46  ;;  %v1672_v36 = vpop.permute.xlu1 %1671  ;;  %v1718_v13 = vsel %vm736_vm4, %v1702_v7, %v1627_v50  ;;  %v1719_v62 = vsel %vm736_vm4, %v1703_v27, %v3951_v45 }
 0x3b5   :  { %v1734_v28 = vsel %vm770_vm6, %v1718_v13, %v1672_v36  ;;  %v1735_v11 = vsel %vm770_vm6, %v1719_v62, %v3971_v15 }
 0x3b6   :  { %v1743_v30 = vpack.c.bf16 %v1735_v11, %v1734_v28  ;;  %3420 = vmatprep.mubr.msk.bf16.mxu0 %vm804_vm8, %v1742_v38 }
 0x3b8   :  { %3421 = vmatmul.mubr.msk.bf16.gmra.mrb[20].mxu0 %vm804_vm8, %v1743_v30 }
 0x443   :  { %v3410_v37 = vpop.f32.mrb[8].mxu0 }
 0x444   :  { %v1818_v19 = vpop.f32.mrb[9].mxu0  ;;  %v1883_v29 = vmax.f32 %v3410_v37, 0.0 }
 0x445   :  { %v3411_v8 = vpop.f32.mrb[10].mxu0  ;;  %v1881_v35 = vmax.f32 %v1818_v19, 0.0 }
 0x446   :  { %v1884_v9 = vmax.f32 %v3411_v8, 0.0  ;;  %v1821_v32 = vpop.f32.mrb[11].mxu0 }
 0x447   :  { %v1882_v50 = vmax.f32 %v1821_v32, 0.0  ;;  %v4293_v32 = vld [vmem:[%s6107_s4 + $0x40] sm:$0xff]  }
 0x448   :  { %v4027_v45 = vpack.i.bf16 %v1884_v9, %v1883_v29  ;;  %3275 = vmatprep.subr.bf16.mxu1 %v4293_v32 }
 0x449   :  { %v4022_v25 = vpack.i.bf16 %v1882_v50, %v1881_v35  ;;  %v4294_v35 = vld [vmem:[%s6107_s4] sm:$0xff]   ;;  %v4295_v50 = vld [vmem:[%s6107_s4 + $0x48] sm:$0xff]  }
 0x44a   :  { %4028 = vrot.lane.b32.xlu1 %v4027_v45, %s4313_s18  ;;  %3276 = vmatpush3.bf16.msra.mxu1 %v4294_v35  ;;  %v4296_v45 = vld [vmem:[%s6107_s4 + $0x8] sm:$0xff]  }
 0x44b   :  { %4023 = vrot.lane.b32.xlu0 %v4022_v25, %s4313_s18  ;;  %3277 = vmatprep.subr.bf16.mxu1 %v4295_v50  ;;  %v4298_v25 = vld [vmem:[%s6107_s4 + $0x10] sm:$0xff]  }
 0x44e   :  { %3278 = vmatpush3.bf16.msra.mxu1 %v4296_v45 }
 0x44f   :  { %v3414_v15 = vpop.f32.mrb[12].mxu0  ;;  %3279 = vmatprep.subr.bf16.mxu1 %v4297_v5 }
 0x450   :  { %v1834_v42 = vpop.f32.mrb[13].mxu0  ;;  %v1887_v26 = vmax.f32 %v3414_v15, 0.0  ;;  %v4299_v15 = vld [vmem:[%s6107_s4 + $0x58] sm:$0xff]  }
 0x451   :  { %v3415_v4 = vpop.f32.mrb[14].mxu0  ;;  %v1885_v12 = vmax.f32 %v1834_v42, 0.0  ;;  %v4301_v42 = vld [vmem:[%s6107_s4 + $0x60] sm:$0xff]  }
 0x452   :  { %v1888_v14 = vmax.f32 %v3415_v4, 0.0  ;;  %v1837_v17 = vpop.f32.mrb[15].mxu0  ;;  %3280 = vmatpush3.bf16.msra.mxu1 %v4298_v25  ;;  %v4302_v4 = vld [vmem:[%s6107_s4 + $0x20] sm:$0xff]  }
 0x453   :  { %v1886_v6 = vmax.f32 %v1837_v17, 0.0  ;;  %3281 = vmatprep.subr.bf16.mxu1 %v4299_v15 }
 0x454   :  { %v4037_v20 = vpack.i.bf16 %v1888_v14, %v1887_v26 }
 0x455   :  { %v4032_v40 = vpack.i.bf16 %v1886_v6, %v1885_v12 }
 0x456   :  { %4038 = vrot.lane.b32.xlu1 %v4037_v20, %s4313_s18  ;;  %3282 = vmatpush3.bf16.msra.mxu1 %v4300_v51 }
 0x457   :  { %4033 = vrot.lane.b32.xlu0 %v4032_v40, %s4313_s18  ;;  %3283 = vmatprep.subr.bf16.mxu1 %v4301_v42  ;;  %v4303_v40 = vld [vmem:[%s6107_s4 + $0x68] sm:$0xff]  }
 0x45a   :  { %3284 = vmatpush3.bf16.msra.mxu1 %v4302_v4 }
 0x45b   :  { %3285 = vmatprep.subr.bf16.mxu1 %v4303_v40 }
 0x45e   :  { %3286 = vmatpush3.bf16.msra.mxu1 %v4304_v57 }
 0x45f   :  { %3287 = vmatprep.subr.bf16.mxu1 %v4305_v48 }
 0x481   :  { %v3418_v31 = vpop.f32.mrb[16].mxu0 }
 0x482   :  { %v1850_v34 = vpop.f32.mrb[17].mxu0  ;;  %v1891_v0 = vmax.f32 %v3418_v31, 0.0 }
 0x483   :  { %v3419_v43 = vpop.f32.mrb[18].mxu0  ;;  %v1889_v63 = vmax.f32 %v1850_v34, 0.0 }
 0x484   :  { %v1892_v27 = vmax.f32 %v3419_v43, 0.0  ;;  %v1853_v46 = vpop.f32.mrb[19].mxu0 }
 0x485   :  { %v1890_v7 = vmax.f32 %v1853_v46, 0.0 }
 0x486   :  { %v4042_v38 = vpack.i.bf16 %v1892_v27, %v1891_v0 }
 0x487   :  { %v4047_v36 = vpack.i.bf16 %v1890_v7, %v1889_v63 }
 0x488   :  { %4043 = vrot.lane.b32.xlu1 %v4042_v38, %s4313_s18 }
 0x489   :  { %4048 = vrot.lane.b32.xlu0 %v4047_v36, %s4313_s18 }
 0x48b   :  { %v3422_v13 = vpop.f32.mrb[20].mxu0 }
 0x48c   :  { %v1866_v62 = vpop.f32.mrb[21].mxu0  ;;  %v1895_v11 = vmax.f32 %v3422_v13, 0.0 }
 0x48d   :  { %v3423_v28 = vpop.f32.mrb[22].mxu0  ;;  %v1893_v19 = vmax.f32 %v1866_v62, 0.0 }
 0x48e   :  { %v1896_v30 = vmax.f32 %v3423_v28, 0.0  ;;  %v1869_v37 = vpop.f32.mrb[23].mxu0  ;;  %v4306_v28 = vld [vmem:[%s6107_s4 + $0x30] sm:$0xff]  }
 0x48f   :  { %v1894_v8 = vmax.f32 %v1869_v37, 0.0  ;;  %3288 = vmatpush3.bf16.msra.mxu1 %v4306_v28 }
 0x490   :  { %v4052_v29 = vpack.i.bf16 %v1896_v30, %v1895_v11 }
 0x491   :  { %v4057_v9 = vpack.i.bf16 %v1894_v8, %v1893_v19  ;;  %v4307_v19 = vld [vmem:[%s6107_s4 + $0x78] sm:$0xff]  }
 0x492   :  { %4053 = vrot.lane.b32.xlu1 %v4052_v29, %s4313_s18  ;;  %v4308_v8 = vld [vmem:[%s6107_s4 + $0x38] sm:$0xff]   ;;  %3289 = vmatprep.subr.bf16.mxu1 %v4307_v19 }
 0x493   :  { %4058 = vrot.lane.b32.xlu0 %v4057_v9, %s4313_s18  ;;  %3290 = vmatpush3.bf16.msra.mxu1 %v4308_v8 }
 0x4bc   :  { %v4029_v26 = vpop.permute.xlu1 %4028 }
 0x4bd   :  { %v4031_v14 = vunpack.i.h.bf16 %v4029_v26  ;;  %v4030_v17 = vunpack.i.l.bf16 %v4029_v26  ;;  %v4024_v12 = vpop.permute.xlu0 %4023 }
 0x4be   :  { %v4026_v6 = vunpack.i.h.bf16 %v4024_v12  ;;  %v4025_v20 = vunpack.i.l.bf16 %v4024_v12 }
 0x4bf   :  { %v5522_v31 = vsel %vm736_vm4, %v1457_v23, %v4031_v14  ;;  %v5528_v34 = vsel %vm736_vm4, %v1456_v54, %v4030_v17  ;;  %v1461_v14 = vmax.f32 %v5074_v22, 0.0 }
 0x4c0   :  { %v5534_v43 = vsel %vm736_vm4, %v1455_v60, %v4026_v6  ;;  %v5538_v0 = vsel %vm736_vm4, %v5028_v55, %v4025_v20  ;;  %v2044_v27 = vrot.slane %v5528_v34, 1  ;;  %v2045_v23 = vrot.slane %v5522_v31, 1 }
 0x4c1   :  { %v2042_v53 = vrot.slane %v5538_v0, 1  ;;  %v4067_v54 = vpack.i.bf16 %v5528_v34, %v5534_v43  ;;  %v2043_v55 = vrot.slane %v5534_v43, 1  ;;  %v1995_v13 = vrot.slane %v5528_v34, 7 }
 0x4c2   :  { %v5553_v60 = vsel %vm1039_vm10, %v2044_v27, 0.0  ;;  %v5556_v46 = vsel %vm1039_vm10, %v2045_v23, 0.0  ;;  %v1996_v62 = vrot.slane %v5522_v31, 7  ;;  %v1994_v30 = vrot.slane %v5534_v43, 7 }
 0x4c3   :  { %4068 = vrot.lane.b32.xlu0 %v4067_v54, %s4320_s25  ;;  %v4062_v63 = vpack.i.bf16 %v5553_v60, %v5538_v0  ;;  %v2075_v7 = vsel %vm1039_vm10, %v2043_v55, 0.0  ;;  %v2074_v36 = vsel %vm1039_vm10, %v2042_v53, 0.0  ;;  %v4077_v11 = vpack.i.bf16 %v5534_v43, %v5556_v46 }
 0x4c4   :  { %v2489_v38 = vpack.c.bf16 %v5553_v60, %v2075_v7  ;;  %v4072_v37 = vpack.i.bf16 %v2074_v36, %v4319_v18  ;;  %v1993_v29 = vrot.slane %v5538_v0, 7  ;;  %v5584_v32 = vsel %vm2025_vm13, 0.0, %v1995_v13 }
 0x4c5   :  { %4063 = vrot.lane.b32.xlu1 %v4062_v63, %s4317_s20  ;;  %v5587_v35 = vsel %vm2025_vm13, 0.0, %v1996_v62  ;;  %v4087_v5 = vpack.i.bf16 %v2075_v7, %v2074_v36  ;;  %v5591_v42 = vsel %vm2025_vm13, 0.0, %v1994_v30  ;;  %v4102_v53 = vpack.i.bf16 %v5553_v60, %v2075_v7 }
 0x4c6   :  { %3428 = vmatprep.mubr.msk.bf16.mxu0 %vm804_vm8, %v2489_v38  ;;  %v4082_v4 = vpack.i.bf16 %v5587_v35, %v5584_v32  ;;  %v4092_v22 = vpack.i.bf16 %v5584_v32, %v5591_v42 }
 0x4c7   :  { %4078 = vrot.lane.b32.xlu0 %v4077_v11, %s4317_s20 }
 0x4c8   :  { %v4039_v9 = vpop.permute.xlu1 %4038 }
 0x4c9   :  { %v4040_v50 = vunpack.i.l.bf16 %v4039_v9  ;;  %v4034_v45 = vpop.permute.xlu0 %4033  ;;  %4073 = vrot.lane.b32.xlu1 %v4072_v37, %s4321_s1  ;;  %v4041_v25 = vunpack.i.h.bf16 %v4039_v9 }
 0x4ca   :  { %v4036_v15 = vunpack.i.h.bf16 %v4034_v45  ;;  %v4035_v51 = vunpack.i.l.bf16 %v4034_v45 }
 0x4cb   :  { %v5597_v26 = vsel %vm736_vm4, %v1460_v59, %v4040_v50  ;;  %4088 = vrot.lane.b32.xlu0 %v4087_v5, %s4317_s20  ;;  %v5616_v59 = vsel %vm2025_vm13, 0.0, %v1993_v29  ;;  %v5625_v20 = vsel %vm736_vm4, %v1461_v14, %v4041_v25 }
 0x4cc   :  { %v5607_v17 = vsel %vm736_vm4, %v1458_v33, %v4035_v51  ;;  %v5613_v12 = vsel %vm736_vm4, %v1459_v56, %v4036_v15  ;;  %v2048_v33 = vrot.slane %v5597_v26, 1  ;;  %v4097_v24 = vpack.i.bf16 %v5591_v42, %v5616_v59 }
 0x4cd   :  { %v2046_v6 = vrot.slane %v5607_v17, 1  ;;  %4083 = vrot.lane.b32.xlu1 %v4082_v4, %s4320_s25  ;;  %v2047_v16 = vrot.slane %v5613_v12, 1  ;;  %v2049_v57 = vrot.slane %v5625_v20, 1  ;;  %v4107_v48 = vpack.i.bf16 %v5607_v17, %v5522_v31 }
 0x4ce   :  { %v5633_v40 = vsel %vm1039_vm10, %v2048_v33, 0.0  ;;  %v4112_v54 = vpack.i.bf16 %v4319_v18, %v5625_v20  ;;  %v1997_v63 = vrot.slane %v5607_v17, 7  ;;  %v4122_v60 = vpack.i.bf16 %v5597_v26, %v5613_v12 }
 0x4cf   :  { %v2078_v21 = vsel %vm1039_vm10, %v2046_v6, 0.0  ;;  %4093 = vrot.lane.b32.xlu0 %v4092_v22, %s4321_s1  ;;  %v2079_v56 = vsel %vm1039_vm10, %v2047_v16, 0.0  ;;  %v2081_v55 = vsel %vm1039_vm10, %v2049_v57, 0.0  ;;  %v4117_v38 = vpack.i.bf16 %v5633_v40, %v5607_v17 }
 0x4d0   :  { %v2492_v27 = vpack.c.bf16 %v2078_v21, %v5556_v46  ;;  %v2495_v23 = vpack.c.bf16 %v5633_v40, %v2079_v56  ;;  %v2498_v36 = vpack.c.bf16 %v4319_v18, %v2081_v55  ;;  %v5659_v7 = vsel %vm2025_vm13, 0.0, %v1997_v63 }
 0x4d1   :  { %4098 = vrot.lane.b32.xlu1 %v4097_v24, %s4320_s25  ;;  %v4127_v13 = vpack.i.bf16 %v2078_v21, %v5528_v34  ;;  %v2000_v62 = vrot.slane %v5625_v20, 7  ;;  %v1999_v28 = vrot.slane %v5597_v26, 7  ;;  %v4132_v11 = vpack.i.bf16 %v5659_v7, %v5587_v35 }
 0x4d2   :  { %3429 = vmatmul.mubr.msk.bf16.vlgmr.msra.gmra.mrb[24].mxu0 %vm804_vm8, %v2492_v27  ;;  %v4137_v30 = vpack.i.bf16 %v2078_v21, %v5556_v46  ;;  %v1998_v8 = vrot.slane %v5613_v12, 7  ;;  %v4142_v29 = vpack.i.bf16 %v5613_v12, %v2081_v55  ;;  %v4152_v46 = vpack.i.bf16 %v5522_v31, %v2079_v56 }
 0x4d3   :  { %4108 = vrot.lane.b32.xlu0 %v4107_v48, %s4320_s25  ;;  %3432 = vmatprep.mubr.msk.bf16.mxu0 %vm804_vm8, %v2495_v23  ;;  %v5671_v37 = vsel %vm2025_vm13, 0.0, %v1999_v28  ;;  %v2033_v19 = vsel %vm2025_vm13, 0.0, %v2000_v62  ;;  %v1469_v28 = vmax.f32 %v5163_v39, 0.0 }
 0x4d4   :  { %v4147_v9 = vpack.i.bf16 %v2033_v19, %v5671_v37  ;;  %v5680_v50 = vsel %vm2025_vm13, 0.0, %v1998_v8  ;;  %v4167_v25 = vpack.i.bf16 %v2079_v56, %v2033_v19 }
 0x4d5   :  { %4103 = vrot.lane.b32.xlu1 %v4102_v53, %s4321_s1  ;;  %v4162_v45 = vpack.i.bf16 %v5680_v50, %v5659_v7  ;;  %v4157_v5 = vpack.i.bf16 %v5671_v37, %v5680_v50 }
 0x4d7   :  { %4113 = vrot.lane.b32.xlu0 %v4112_v54, %s4320_s25 }
 0x4d9   :  { %4118 = vrot.lane.b32.xlu1 %v4117_v38, %s4317_s20 }
 0x4da   :  { %3433 = vmatmul.mubr.msk.bf16.gmra.mrb[28].mxu0 %vm804_vm8, %v2498_v36 }
 0x4db   :  { %4123 = vrot.lane.b32.xlu0 %v4122_v60, %s4320_s25 }
 0x4dd   :  { %4128 = vrot.lane.b32.xlu1 %v4127_v13, %s4317_s20 }
 0x4df   :  { %4133 = vrot.lane.b32.xlu0 %v4132_v11, %s4321_s1  ;;  %v6110_v11 = vmax.f32 %v5160_v47, %v5163_v39 }
 0x4e1   :  { %4138 = vrot.lane.b32.xlu1 %v4137_v30, %s4321_s1 }
 0x4e3   :  { %4143 = vrot.lane.b32.xlu0 %v4142_v29, %s4317_s20  ;;  %v6111_v29 = vmax.f32 %v5168_v41, %v5160_v47 }
 0x4e5   :  { %4148 = vrot.lane.b32.xlu1 %v4147_v9, %s4320_s25 }
 0x4e7   :  { %4153 = vrot.lane.b32.xlu0 %v4152_v46, %s4317_s20  ;;  %v6112_v46 = vmax.f32 %v5154_v44, %v5168_v41 }
 0x4e9   :  { %4163 = vrot.lane.b32.xlu1 %v4162_v45, %s4320_s25 }
 0x4eb   :  { %4158 = vrot.lane.b32.xlu0 %v4157_v5, %s4321_s1 }
 0x4ef   :  { %4168 = vrot.lane.b32.xlu0 %v4167_v25, %s4321_s1 }
 0x4fa   :  { %v4044_v15 = vpop.permute.xlu1 %4043 }
 0x4fb   :  { %v4046_v51 = vunpack.i.h.bf16 %v4044_v15  ;;  %v4045_v4 = vunpack.i.l.bf16 %v4044_v15  ;;  %v4049_v14 = vpop.permute.xlu0 %4048 }
 0x4fc   :  { %v4051_v6 = vunpack.i.h.bf16 %v4049_v14  ;;  %v4050_v22 = vunpack.i.l.bf16 %v4049_v14 }
 0x4fd   :  { %v5696_v16 = vsel %vm736_vm4, %v1465_v49, %v4046_v51  ;;  %v5702_v33 = vsel %vm736_vm4, %v1464_v2, %v4045_v4 }
 0x4fe   :  { %v5708_v21 = vsel %vm736_vm4, %v1463_v1, %v4051_v6  ;;  %v5712_v24 = vsel %vm736_vm4, %v5125_v3, %v4050_v22  ;;  %v2052_v56 = vrot.slane %v5702_v33, 1  ;;  %v2053_v49 = vrot.slane %v5696_v16, 1 }
 0x4ff   :  { %v2050_v27 = vrot.slane %v5712_v24, 1  ;;  %v4177_v61 = vpack.i.bf16 %v5702_v33, %v5708_v21  ;;  %v2051_v2 = vrot.slane %v5708_v21, 1  ;;  %v2003_v10 = vrot.slane %v5702_v33, 7 }
 0x500   :  { %v5721_v52 = vsel %vm1039_vm10, %v2052_v56, 0.0  ;;  %v5728_v1 = vsel %vm1039_vm10, %v2053_v49, 0.0  ;;  %v2002_v63 = vrot.slane %v5708_v21, 7  ;;  %v2004_v8 = vrot.slane %v5696_v16, 7 }
 0x501   :  { %4178 = vrot.lane.b32.xlu1 %v4177_v61, %s4317_s20  ;;  %4173 = vrot.lane.b32.xlu0 %v4177_v61, %s4320_s25  ;;  %v2082_v3 = vsel %vm1039_vm10, %v2050_v27, 0.0  ;;  %v2083_v23 = vsel %vm1039_vm10, %v2051_v2, 0.0  ;;  %v4192_v54 = vpack.i.bf16 %v5728_v1, %v5721_v52  ;;  %v5736_v55 = vsel %vm2025_vm13, 0.0, %v2003_v10 }
 0x502   :  { %v4182_v57 = vpack.i.bf16 %v2082_v3, %v5597_v26  ;;  %v2501_v48 = vpack.c.bf16 %v5721_v52, %v2083_v23  ;;  %v4187_v19 = vpack.i.bf16 %v2082_v3, %v5736_v55  ;;  %v4207_v39 = vpack.i.bf16 %v5712_v24, %v2083_v23 }
 0x503   :  { %v5765_v5 = vsel %vm2025_vm13, 0.0, %v2002_v63  ;;  %v2001_v51 = vrot.slane %v5712_v24, 7  ;;  %v5785_v27 = vsel %vm2025_vm13, 0.0, %v2004_v8 }
 0x504   :  { %v4054_v53 = vpop.permute.xlu1 %4053  ;;  %3436 = vmatprep.mubr.msk.bf16.mxu0 %vm804_vm8, %v2501_v48  ;;  %v4197_v41 = vpack.i.bf16 %v5765_v5, %v5633_v40  ;;  %v4202_v2 = vpack.i.bf16 %v5785_v27, %v5736_v55 }
 0x505   :  { %v4055_v38 = vunpack.i.l.bf16 %v4054_v53  ;;  %v4059_v36 = vpop.permute.xlu0 %4058  ;;  %4183 = vrot.lane.b32.xlu1 %v4182_v57, %s4317_s20  ;;  %v4056_v60 = vunpack.i.h.bf16 %v4054_v53  ;;  %4193 = vrot.lane.b32.xlu0 %v4192_v54, %s4317_s20  ;;  %v5798_v3 = vsel %vm2025_vm13, 0.0, %v2001_v51 }
 0x506   :  { %v4061_v13 = vunpack.i.h.bf16 %v4059_v36  ;;  %v4060_v62 = vunpack.i.l.bf16 %v4059_v36  ;;  %v4212_v53 = vpack.i.bf16 %v5765_v5, %v5798_v3 }
 0x507   :  { %v5747_v30 = vsel %vm736_vm4, %v6110_v11, %v4055_v38  ;;  %v5773_v44 = vsel %vm736_vm4, %v1469_v28, %v4056_v60  ;;  %v4217_v60 = vpack.i.bf16 %v5721_v52, %v2083_v23 }
 0x508   :  { %v5755_v9 = vsel %vm736_vm4, %v6111_v29, %v4061_v13  ;;  %v5761_v45 = vsel %vm736_vm4, %v6112_v46, %v4060_v62  ;;  %v2056_v15 = vrot.slane %v5747_v30, 1  ;;  %v2057_v61 = vrot.slane %v5773_v44, 1 }
 0x509   :  { %4188 = vrot.lane.b32.xlu1 %v4187_v19, %s4321_s1  ;;  %v2054_v25 = vrot.slane %v5761_v45, 1  ;;  %v2055_v47 = vrot.slane %v5755_v9, 1  ;;  %4208 = vrot.lane.b32.xlu0 %v4207_v39, %s4317_s20  ;;  %v4222_v22 = vpack.i.bf16 %v5761_v45, %v5696_v16  ;;  %v2005_v40 = vrot.slane %v5761_v45, 7 }
 0x50a   :  { %v2088_v6 = vsel %vm1039_vm10, %v2056_v15, 0.0  ;;  %v4232_v10 = vpack.i.bf16 %v5747_v30, %v5755_v9  ;;  %v2089_v48 = vsel %vm1039_vm10, %v2057_v61, 0.0  ;;  %v2006_v38 = vrot.slane %v5755_v9, 7 }
 0x50b   :  { %v2086_v4 = vsel %vm1039_vm10, %v2054_v25, 0.0  ;;  %v2087_v14 = vsel %vm1039_vm10, %v2055_v47, 0.0  ;;  %v5802_v57 = vsel %vm2025_vm13, 0.0, %v2005_v40  ;;  %v2510_v63 = vpack.c.bf16 %v4319_v18, %v2089_v48 }
 0x50c   :  { %v2504_v56 = vpack.c.bf16 %v2086_v4, %v5728_v1  ;;  %v2507_v49 = vpack.c.bf16 %v2088_v6, %v2087_v14  ;;  %v4237_v54 = vpack.i.bf16 %v5802_v57, %v5785_v27  ;;  %v2007_v36 = vrot.slane %v5747_v30, 7 }
 0x50d   :  { %4198 = vrot.lane.b32.xlu1 %v4197_v41, %s4321_s1  ;;  %4223 = vrot.lane.b32.xlu0 %v4222_v22, %s4320_s25  ;;  %v4247_v13 = vpack.i.bf16 %v2087_v14, %v2086_v4  ;;  %v5819_v62 = vsel %vm2025_vm13, 0.0, %v2006_v38  ;;  %v2008_v11 = vrot.slane %v5773_v44, 7  ;;  %v4242_v52 = vpack.i.bf16 %v2086_v4, %v5728_v1 }
 0x50e   :  { %3437 = vmatmul.mubr.msk.bf16.gmra.mrb[32].mxu0 %vm804_vm8, %v2504_v56  ;;  %v5822_v18 = vsel %vm2025_vm13, 0.0, %v2007_v36  ;;  %v4257_v23 = vpack.i.bf16 %v2089_v48, %v2088_v6  ;;  %v4267_v29 = vpack.i.bf16 %v5819_v62, %v5802_v57 }
 0x50f   :  { %3440 = vmatprep.mubr.msk.bf16.mxu0 %vm804_vm8, %v2507_v49  ;;  %v4252_v28 = vpack.i.bf16 %v5822_v18, %v5819_v62  ;;  %v2041_v19 = vsel %vm2025_vm13, 0.0, %v2008_v11  ;;  %v4277_v46 = vpack.i.bf16 %v5822_v18, %v5773_v44 }
 0x510   :  { %v4272_v8 = vpack.i.bf16 %v2087_v14, %v2041_v19 }
 0x511   :  { %4203 = vrot.lane.b32.xlu1 %v4202_v2, %s4320_s25  ;;  %4233 = vrot.lane.b32.xlu0 %v4232_v10, %s4320_s25 }
 0x515   :  { %4213 = vrot.lane.b32.xlu1 %v4212_v53, %s4320_s25  ;;  %4238 = vrot.lane.b32.xlu0 %v4237_v54, %s4321_s1 }
 0x516   :  { %3441 = vmatmul.mubr.msk.bf16.gmra.mrb[36].mxu0 %vm804_vm8, %v2510_v63 }
 0x519   :  { %4218 = vrot.lane.b32.xlu1 %v4217_v60, %s4321_s1  ;;  %4248 = vrot.lane.b32.xlu0 %v4247_v13, %s4317_s20 }
 0x51d   :  { %4228 = vrot.lane.b32.xlu1 %v4222_v22, %s4317_s20  ;;  %4253 = vrot.lane.b32.xlu0 %v4252_v28, %s4321_s1  ;;  %v2392_v22 = vsel %vm804_vm8, 0.0, %v5213_v58 }
 0x521   :  { %4243 = vrot.lane.b32.xlu1 %v4242_v52, %s4321_s1  ;;  %4258 = vrot.lane.b32.xlu0 %v4257_v23, %s4317_s20 }
 0x525   :  { %4263 = vrot.lane.b32.xlu1 %v4232_v10, %s4317_s20  ;;  %4273 = vrot.lane.b32.xlu0 %v4272_v8, %s4321_s1 }
 0x529   :  { %4268 = vrot.lane.b32.xlu1 %v4267_v29, %s4320_s25  ;;  %4278 = vrot.lane.b32.xlu0 %v4277_v46, %s4320_s25 }
 0x52d   :  { %2174 = vrot.lane.b32.xlu1 %v2088_v6, %s4321_s1 }
 0x531   :  { %2237 = vrot.lane.b32.xlu1 %v2041_v19, %s4320_s25 }
 0x535   :  { %v4069_v1 = vpop.permute.xlu0 %4068 }
 0x536   :  { %v4071_v6 = vunpack.i.h.bf16 %v4069_v1  ;;  %v4070_v10 = vunpack.i.l.bf16 %v4069_v1 }
 0x537   :  { %v4064_v39 = vpop.permute.xlu1 %4063 }
 0x538   :  { %v4065_v51 = vunpack.i.l.bf16 %v4064_v39  ;;  %v4066_v1 = vunpack.i.h.bf16 %v4064_v39 }
 0x539   :  { %v4079_v25 = vpop.permute.xlu0 %4078 }
 0x53a   :  { %v2393_v48 = vsel %vm804_vm8, %v5616_v59, %v4065_v51 }
 0x53b   :  { %v4074_v47 = vpop.permute.xlu1 %4073 }
 0x53c   :  { %v4076_v56 = vunpack.i.h.bf16 %v4074_v47  ;;  %v5848_v49 = vunpack.i.l.bf16 %v4074_v47  ;;  %v4081_v47 = vunpack.i.h.bf16 %v4079_v25 }
 0x53d   :  { %v4089_v15 = vpop.permute.xlu0 %4088 }
 0x53e   :  { %v4091_v41 = vunpack.i.h.bf16 %v4089_v15  ;;  %v4090_v4 = vunpack.i.l.bf16 %v4089_v15  ;;  %v5860_v13 = vsel %vm1300_vm12, %v2392_v22, %v5848_v49  ;;  %v2408_v28 = vsel %vm1300_vm12, %v2393_v48, %v4076_v56 }
 0x53f   :  { %v5844_v14 = vpop.permute.xlu1 %4083  ;;  %v4080_v15 = vunpack.i.l.bf16 %v4079_v25  ;;  %v2441_v56 = vsel %vm804_vm8, %v5528_v34, %v4066_v1 }
 0x540   :  { %v2440_v53 = vsel %vm804_vm8, %v5534_v43, %v4091_v41  ;;  %v2439_v54 = vsel %vm804_vm8, %v5538_v0, %v4090_v4  ;;  %v4086_v39 = vunpack.i.h.bf16 %v5844_v14 }
 0x541   :  { %v4094_v61 = vpop.permute.xlu0 %4093 }
 0x542   :  { %v4096_v40 = vunpack.i.h.bf16 %v4094_v61  ;;  %v4095_v2 = vunpack.i.l.bf16 %v4094_v61  ;;  %v2394_v61 = vsel %vm804_vm8, %v5591_v42, %v4081_v47  ;;  %v4085_v42 = vunpack.i.l.bf16 %v5844_v14 }
 0x543   :  { %v4099_v63 = vpop.permute.xlu1 %4098 }
 0x544   :  { %v2455_v58 = vsel %vm1300_vm12, %v2439_v54, %v4095_v2  ;;  %v2456_v38 = vsel %vm1300_vm12, %v2440_v53, %v4096_v40  ;;  %v4101_v36 = vunpack.i.h.bf16 %v4099_v63  ;;  %v4100_v60 = vunpack.i.l.bf16 %v4099_v63 }
 0x545   :  { %v4109_v59 = vpop.permute.xlu0 %4108  ;;  %v2471_v11 = vsel %vm2422_vm14, %v2455_v58, %v4070_v10  ;;  %v2472_v43 = vsel %vm2422_vm14, %v2456_v38, %v4071_v6  ;;  %v2442_v6 = vsel %vm804_vm8, %v5522_v31, %v4080_v15 }
 0x546   :  { %v2423_v0 = vsel %vm2422_vm14, %v5860_v13, %v4100_v60  ;;  %v2424_v52 = vsel %vm2422_vm14, %v2408_v28, %v4101_v36  ;;  %v2488_v8 = vpack.c.bf16 %v2472_v43, %v2471_v11  ;;  %v4111_v53 = vunpack.i.h.bf16 %v4109_v59 }
 0x547   :  { %v2487_v23 = vpack.c.bf16 %v2424_v52, %v2423_v0  ;;  %v4104_v19 = vpop.permute.xlu1 %4103  ;;  %v4110_v54 = vunpack.i.l.bf16 %v4109_v59 }
 0x548   :  { %2711 = vmatprep.mubr.bf16.mxu1 %v2488_v8  ;;  %v4105_v41 = vunpack.i.l.bf16 %v4104_v19  ;;  %v4106_v40 = vunpack.i.h.bf16 %v4104_v19 }
 0x549   :  { %v5868_v29 = vpop.permute.xlu0 %4113  ;;  %2712 = vmatmul.mubr.bf16.vlgmr.msra.gmra.mrb[24].mxu1 %v2487_v23 }
 0x54a   :  { %v2409_v63 = vsel %vm1300_vm12, %v2394_v61, %v4105_v41 }
 0x54b   :  { %v5870_v46 = vpop.permute.xlu1 %4118  ;;  %v2425_v11 = vsel %vm2422_vm14, %v2409_v63, %v4085_v42 }
 0x54c   :  { %v4120_v14 = vunpack.i.l.bf16 %v5870_v46 }
 0x54d   :  { %v5872_v51 = vpop.permute.xlu0 %4123 }
 0x54f   :  { %v4129_v4 = vpop.permute.xlu1 %4128 }
 0x550   :  { %v4130_v22 = vunpack.i.l.bf16 %v4129_v4  ;;  %v4131_v23 = vunpack.i.h.bf16 %v4129_v4 }
 0x551   :  { %v4134_v2 = vpop.permute.xlu0 %4133 }
 0x552   :  { %v2395_v25 = vsel %vm804_vm8, %v5584_v32, %v4130_v22  ;;  %v4136_v10 = vunpack.i.h.bf16 %v4134_v2  ;;  %v4135_v48 = vunpack.i.l.bf16 %v4134_v2 }
 0x553   :  { %v4139_v34 = vpop.permute.xlu1 %4138  ;;  %v2410_v58 = vsel %vm1300_vm12, %v2395_v25, %v4106_v40  ;;  %v2397_v40 = vsel %vm804_vm8, %v5659_v7, %v4120_v14  ;;  %v4125_v25 = vunpack.i.l.bf16 %v5872_v51 }
 0x554   :  { %v2458_v31 = vsel %vm1300_vm12, %v2442_v6, %v4136_v10  ;;  %v2457_v38 = vsel %vm1300_vm12, %v2441_v56, %v4135_v48  ;;  %v2426_v28 = vsel %vm2422_vm14, %v2410_v58, %v4086_v39  ;;  %v4141_v8 = vunpack.i.h.bf16 %v4139_v34 }
 0x555   :  { %v5888_v36 = vpop.permute.xlu0 %4143  ;;  %v2473_v60 = vsel %vm2422_vm14, %v2457_v38, %v4110_v54  ;;  %v2474_v32 = vsel %vm2422_vm14, %v2458_v31, %v4111_v53  ;;  %v2490_v0 = vpack.c.bf16 %v2426_v28, %v2425_v11  ;;  %v4140_v1 = vunpack.i.l.bf16 %v4139_v34 }
 0x556   :  { %v2491_v59 = vpack.c.bf16 %v2474_v32, %v2473_v60  ;;  %v4145_v47 = vunpack.i.l.bf16 %v5888_v36  ;;  %v4121_v6 = vunpack.i.h.bf16 %v5870_v46  ;;  %v4126_v39 = vunpack.i.h.bf16 %v5872_v51 }
 0x557   :  { %v5894_v43 = vpop.permute.xlu1 %4148  ;;  %v2443_v53 = vsel %vm804_vm8, %v5607_v17, %v4131_v23  ;;  %v4115_v60 = vunpack.i.l.bf16 %v5868_v29 }
 0x558   :  { %2719 = vmatprep.mubr.bf16.mxu1 %v2491_v59  ;;  %v2446_v46 = vsel %vm804_vm8, %v5625_v20, %v4145_v47  ;;  %v2445_v32 = vsel %vm804_vm8, %v5597_v26, %v4121_v6  ;;  %v4146_v26 = vunpack.i.h.bf16 %v5888_v36 }
 0x559   :  { %v4154_v52 = vpop.permute.xlu0 %4153  ;;  %2720 = vmatmul.mubr.bf16.gmra.mrb[28].mxu1 %v2490_v0  ;;  %v2462_v20 = vsel %vm1300_vm12, %v2446_v46, %v5848_v49 }
 0x55a   :  { %v4156_v19 = vunpack.i.h.bf16 %v4154_v52  ;;  %v4155_v15 = vunpack.i.l.bf16 %v4154_v52  ;;  %v2398_v6 = vsel %vm804_vm8, %v5680_v50, %v4146_v26 }
 0x55b   :  { %v4164_v41 = vpop.permute.xlu1 %4163 }
 0x55c   :  { %v2396_v22 = vsel %vm804_vm8, %v5587_v35, %v4156_v19  ;;  %v4166_v56 = vunpack.i.h.bf16 %v4164_v41  ;;  %v4165_v61 = vunpack.i.l.bf16 %v4164_v41  ;;  %v2412_v35 = vsel %vm1300_vm12, %v2397_v40, %v4141_v8 }
 0x55d   :  { %v4159_v2 = vpop.permute.xlu0 %4158  ;;  %v2411_v4 = vsel %vm1300_vm12, %v2396_v22, %v4140_v1  ;;  %v2444_v7 = vsel %vm804_vm8, %v5613_v12, %v4155_v15  ;;  %v4116_v12 = vunpack.i.h.bf16 %v5868_v29  ;;  %v4151_v40 = vunpack.i.h.bf16 %v5894_v43 }
 0x55e   :  { %v4161_v10 = vunpack.i.h.bf16 %v4159_v2  ;;  %v4160_v48 = vunpack.i.l.bf16 %v4159_v2  ;;  %v2427_v34 = vsel %vm2422_vm14, %v2411_v4, %v4165_v61  ;;  %v2428_v51 = vsel %vm2422_vm14, %v2412_v35, %v4166_v56 }
 0x55f   :  { %v2493_v28 = vpack.c.bf16 %v2428_v51, %v2427_v34  ;;  %v2478_v0 = vsel %vm2422_vm14, %v2462_v20, %v4116_v12  ;;  %v4150_v2 = vunpack.i.l.bf16 %v5894_v43 }
 0x560   :  { %v2459_v54 = vsel %vm1300_vm12, %v2443_v53, %v4160_v48  ;;  %v2460_v63 = vsel %vm1300_vm12, %v2444_v7, %v4161_v10 }
 0x561   :  { %v4169_v58 = vpop.permute.xlu0 %4168  ;;  %v2475_v42 = vsel %vm2422_vm14, %v2459_v54, %v4125_v25  ;;  %v2476_v17 = vsel %vm2422_vm14, %v2460_v63, %v4126_v39 }
 0x562   :  { %v4170_v31 = vunpack.i.l.bf16 %v4169_v58  ;;  %v2494_v38 = vpack.c.bf16 %v2476_v17, %v2475_v42  ;;  %v4171_v47 = vunpack.i.h.bf16 %v4169_v58 }
 0x564   :  { %v2461_v59 = vsel %vm1300_vm12, %v2445_v32, %v4170_v31  ;;  %2727 = vmatprep.mubr.bf16.mxu1 %v2494_v38  ;;  %v2413_v36 = vsel %vm1300_vm12, %v2398_v6, %v4171_v47 }
 0x565   :  { %2728 = vmatmul.mubr.bf16.gmra.mrb[32].mxu1 %v2493_v28  ;;  %v2477_v11 = vsel %vm2422_vm14, %v2461_v59, %v4115_v60  ;;  %v2429_v34 = vsel %vm2422_vm14, %v2413_v36, %v4150_v2 }
 0x566   :  { %v2497_v14 = vpack.c.bf16 %v2478_v0, %v2477_v11 }
 0x568   :  { %2735 = vmatprep.mubr.bf16.mxu1 %v2497_v14 }
 0x573   :  { %v5930_v52 = vpop.permute.xlu1 %4178  ;;  %v4174_v23 = vpop.permute.xlu0 %4173 }
 0x574   :  { %v4176_v35 = vunpack.i.h.bf16 %v4174_v23  ;;  %v4175_v46 = vunpack.i.l.bf16 %v4174_v23  ;;  %v4181_v32 = vunpack.i.h.bf16 %v5930_v52  ;;  %v4180_v59 = vunpack.i.l.bf16 %v5930_v52 }
 0x577   :  { %v4184_v19 = vpop.permute.xlu1 %4183  ;;  %v4194_v8 = vpop.permute.xlu0 %4193 }
 0x578   :  { %v4186_v22 = vunpack.i.h.bf16 %v4184_v19  ;;  %v4185_v56 = vunpack.i.l.bf16 %v4184_v19  ;;  %v4196_v17 = vunpack.i.h.bf16 %v4194_v8  ;;  %v4195_v20 = vunpack.i.l.bf16 %v4194_v8 }
 0x57a   :  { %v2447_v50 = vsel %vm804_vm8, %v5712_v24, %v4186_v22  ;;  %v2399_v7 = vsel %vm804_vm8, %v5671_v37, %v4185_v56  ;;  %v2450_v11 = vsel %vm804_vm8, %v5696_v16, %v4196_v17  ;;  %v2449_v19 = vsel %vm804_vm8, %v5702_v33, %v4195_v20 }
 0x57b   :  { %v4189_v1 = vpop.permute.xlu1 %4188  ;;  %v4209_v41 = vpop.permute.xlu0 %4208 }
 0x57c   :  { %v4190_v15 = vunpack.i.l.bf16 %v4189_v1  ;;  %v4210_v61 = vunpack.i.l.bf16 %v4209_v41  ;;  %v4211_v43 = vunpack.i.h.bf16 %v4209_v41  ;;  %v4191_v37 = vunpack.i.h.bf16 %v4189_v1 }
 0x57e   :  { %v2448_v4 = vsel %vm804_vm8, %v5708_v21, %v4210_v61  ;;  %v2400_v60 = vsel %vm804_vm8, %v5798_v3, %v4211_v43 }
 0x57f   :  { %v4199_v39 = vpop.permute.xlu1 %4198  ;;  %v4224_v48 = vpop.permute.xlu0 %4223  ;;  %v2464_v53 = vsel %vm1300_vm12, %v2448_v4, %v4190_v15  ;;  %v2415_v3 = vsel %vm1300_vm12, %v2400_v60, %v4191_v37  ;;  %v2402_v4 = vsel %vm804_vm8, %v5736_v55, %v4181_v32 }
 0x580   :  { %v4201_v25 = vunpack.i.h.bf16 %v4199_v39  ;;  %v4200_v10 = vunpack.i.l.bf16 %v4199_v39  ;;  %v2480_v42 = vsel %vm2422_vm14, %v2464_v53, %v4176_v35  ;;  %v4226_v1 = vunpack.i.h.bf16 %v4224_v48 }
 0x581   :  { %v4225_v47 = vunpack.i.l.bf16 %v4224_v48 }
 0x582   :  { %v2414_v54 = vsel %vm1300_vm12, %v2399_v7, %v4200_v10  ;;  %v2463_v21 = vsel %vm1300_vm12, %v2447_v50, %v4201_v25 }
 0x583   :  { %v4204_v63 = vpop.permute.xlu1 %4203  ;;  %v2430_v51 = vsel %vm2422_vm14, %v2414_v54, %v4151_v40  ;;  %v2479_v58 = vsel %vm2422_vm14, %v2463_v21, %v4175_v46  ;;  %v4234_v31 = vpop.permute.xlu0 %4233 }
 0x584   :  { %v2496_v24 = vpack.c.bf16 %v2430_v51, %v2429_v34  ;;  %v2500_v38 = vpack.c.bf16 %v2480_v42, %v2479_v58  ;;  %v4206_v53 = vunpack.i.h.bf16 %v4204_v63  ;;  %v4205_v35 = vunpack.i.l.bf16 %v4204_v63 }
 0x585   :  { %v4235_v21 = vunpack.i.l.bf16 %v4234_v31 }
 0x586   :  { %2736 = vmatmul.mubr.bf16.gmra.mrb[36].mxu1 %v2496_v24 }
 0x587   :  { %v4214_v28 = vpop.permute.xlu1 %4213  ;;  %2743 = vmatprep.mubr.bf16.mxu1 %v2500_v38  ;;  %v4239_v23 = vpop.permute.xlu0 %4238 }
 0x588   :  { %v4216_v0 = vunpack.i.h.bf16 %v4214_v28  ;;  %v4215_v14 = vunpack.i.l.bf16 %v4214_v28  ;;  %v4241_v8 = vunpack.i.h.bf16 %v4239_v23  ;;  %v4240_v26 = vunpack.i.l.bf16 %v4239_v23 }
 0x58a   :  { %v2431_v15 = vsel %vm2422_vm14, %v5860_v13, %v4215_v14  ;;  %v2432_v52 = vsel %vm2422_vm14, %v2415_v3, %v4216_v0  ;;  %v2465_v41 = vsel %vm1300_vm12, %v2449_v19, %v4240_v26  ;;  %v2466_v16 = vsel %vm1300_vm12, %v2450_v11, %v4241_v8 }
 0x58b   :  { %v4219_v22 = vpop.permute.xlu1 %4218  ;;  %v2499_v56 = vpack.c.bf16 %v2432_v52, %v2431_v15  ;;  %v4249_v33 = vpop.permute.xlu0 %4248  ;;  %v2481_v40 = vsel %vm2422_vm14, %v2465_v41, %v4225_v47  ;;  %v2482_v2 = vsel %vm2422_vm14, %v2466_v16, %v4226_v1  ;;  %v2401_v13 = vsel %vm804_vm8, %v5765_v5, %v4180_v59 }
 0x58c   :  { %v4221_v61 = vunpack.i.h.bf16 %v4219_v22  ;;  %v4220_v6 = vunpack.i.l.bf16 %v4219_v22  ;;  %v2503_v39 = vpack.c.bf16 %v2482_v2, %v2481_v40  ;;  %v4251_v10 = vunpack.i.h.bf16 %v4249_v33 }
 0x58d   :  { %v4250_v48 = vunpack.i.l.bf16 %v4249_v33  ;;  %v4236_v5 = vunpack.i.h.bf16 %v4234_v31 }
 0x58e   :  { %v2416_v36 = vsel %vm1300_vm12, %v2401_v13, %v4220_v6  ;;  %v2417_v25 = vsel %vm1300_vm12, %v2402_v4, %v4221_v61  ;;  %2744 = vmatmul.mubr.bf16.gmra.mrb[40].mxu1 %v2499_v56  ;;  %v2452_v34 = vsel %vm804_vm8, %v5755_v9, %v4251_v10 }
 0x58f   :  { %v4229_v46 = vpop.permute.xlu1 %4228  ;;  %2751 = vmatprep.mubr.bf16.mxu1 %v2503_v39  ;;  %v4254_v50 = vpop.permute.xlu0 %4253  ;;  %v2433_v55 = vsel %vm2422_vm14, %v2416_v36, %v4205_v35  ;;  %v2434_v54 = vsel %vm2422_vm14, %v2417_v25, %v4206_v53  ;;  %v2451_v51 = vsel %vm804_vm8, %v5761_v45, %v4250_v48 }
 0x590   :  { %v4256_v7 = vunpack.i.h.bf16 %v4254_v50  ;;  %v4255_v43 = vunpack.i.l.bf16 %v4254_v50  ;;  %v2502_v24 = vpack.c.bf16 %v2434_v54, %v2433_v55  ;;  %v4231_v31 = vunpack.i.h.bf16 %v4229_v46 }
 0x591   :  { %v4230_v32 = vunpack.i.l.bf16 %v4229_v46 }
 0x592   :  { %v2467_v58 = vsel %vm1300_vm12, %v2451_v51, %v4255_v43  ;;  %v2468_v63 = vsel %vm1300_vm12, %v2452_v34, %v4256_v7  ;;  %v2404_v23 = vsel %vm804_vm8, %v5802_v57, %v4231_v31  ;;  %v4309_v43 = vld [vmem:[%s6108_s5] sm:$0xff]  }
 0x593   :  { %v4244_v42 = vpop.permute.xlu1 %4243  ;;  %v4259_v17 = vpop.permute.xlu0 %4258  ;;  %v2483_v38 = vsel %vm2422_vm14, %v2467_v58, %v4235_v21  ;;  %v2484_v20 = vsel %vm2422_vm14, %v2468_v63, %v4236_v5  ;;  %v2403_v19 = vsel %vm804_vm8, %v5785_v27, %v4230_v32  ;;  %3444 = vmatprep.subr.bf16.mxu0 %v4309_v43 }
 0x594   :  { %v4261_v37 = vunpack.i.h.bf16 %v4259_v17  ;;  %v2506_v60 = vpack.c.bf16 %v2484_v20, %v2483_v38  ;;  %v4245_v28 = vunpack.i.l.bf16 %v4244_v42  ;;  %v4246_v59 = vunpack.i.h.bf16 %v4244_v42  ;;  %3445 = vmatpush3.bf16.msra.mxu0 %v4309_v43 }
 0x595   :  { %v4260_v0 = vunpack.i.l.bf16 %v4259_v17 }
 0x596   :  { %2752 = vmatmul.mubr.bf16.gmra.mrb[44].mxu1 %v2502_v24  ;;  %v2454_v11 = vsel %vm804_vm8, %v5773_v44, %v4261_v37  ;;  %v2418_v26 = vsel %vm1300_vm12, %v2403_v19, %v4245_v28  ;;  %v2419_v52 = vsel %vm1300_vm12, %v2404_v23, %v4246_v59 }
 0x597   :  { %v4264_v9 = vpop.permute.xlu1 %4263  ;;  %2759 = vmatprep.mubr.bf16.mxu1 %v2506_v60  ;;  %v4274_v45 = vpop.permute.xlu0 %4273  ;;  %v2470_v15 = vsel %vm1300_vm12, %v2454_v11, %v5848_v49  ;;  %v2453_v44 = vsel %vm804_vm8, %v5747_v30, %v4260_v0 }
 0x598   :  { %v4275_v14 = vunpack.i.l.bf16 %v4274_v45  ;;  %v4266_v41 = vunpack.i.h.bf16 %v4264_v9  ;;  %v4265_v57 = vunpack.i.l.bf16 %v4264_v9  ;;  %v2486_v49 = vsel %vm2422_vm14, %v2470_v15, %v4116_v12 }
 0x599   :  { %v4276_v2 = vunpack.i.h.bf16 %v4274_v45 }
 0x59a   :  { %v2469_v22 = vsel %vm1300_vm12, %v2453_v44, %v4275_v14  ;;  %v2405_v30 = vsel %vm804_vm8, %v5819_v62, %v4265_v57  ;;  %v2406_v13 = vsel %vm804_vm8, %v5822_v18, %v4266_v41 }
 0x59b   :  { %v4269_v8 = vpop.permute.xlu1 %4268  ;;  %v4279_v47 = vpop.permute.xlu0 %4278  ;;  %v2420_v29 = vsel %vm1300_vm12, %v2405_v30, %v4276_v2 }
 0x59c   :  { %v4271_v3 = vunpack.i.h.bf16 %v4269_v8  ;;  %v4270_v1 = vunpack.i.l.bf16 %v4269_v8  ;;  %v4280_v16 = vunpack.i.l.bf16 %v4279_v47  ;;  %v4281_v4 = vunpack.i.h.bf16 %v4279_v47 }
 0x59e   :  { %v2435_v27 = vsel %vm2422_vm14, %v2418_v26, %v4270_v1  ;;  %v2436_v56 = vsel %vm2422_vm14, %v2419_v52, %v4271_v3  ;;  %v2485_v33 = vsel %vm2422_vm14, %v2469_v22, %v4280_v16  ;;  %v2437_v12 = vsel %vm2422_vm14, %v2420_v29, %v4281_v4 }
 0x59f   :  { %v2175_v61 = vpop.permute.xlu1 %2174  ;;  %v2505_v6 = vpack.c.bf16 %v2436_v56, %v2435_v27  ;;  %v2509_v40 = vpack.c.bf16 %v2486_v49, %v2485_v33 }
 0x5a0   :  { %v2421_v39 = vsel %vm1300_vm12, %v2406_v13, %v2175_v61 }
 0x5a1   :  { %2760 = vmatmul.mubr.bf16.gmra.mrb[48].mxu1 %v2505_v6 }
 0x5a2   :  { %2767 = vmatprep.mubr.bf16.mxu1 %v2509_v40 }
 0x5a3   :  { %v2238_v36 = vpop.permute.xlu1 %2237 }
 0x5a4   :  { %v2438_v25 = vsel %vm2422_vm14, %v2421_v39, %v2238_v36 }
 0x5a5   :  { %v3430_v10 = vpop.f32.mrb[24].mxu0  ;;  %v2508_v53 = vpack.c.bf16 %v2438_v25, %v2437_v12 }
 0x5a6   :  { %v2810_v48 = vpop.f32.mrb[25].mxu0 }
 0x5a7   :  { %v3431_v35 = vpop.f32.mrb[26].mxu0 }
 0x5a8   :  { %v2813_v46 = vpop.f32.mrb[27].mxu0 }
 0x5a9   :  { %2768 = vmatmul.mubr.bf16.gmra.mrb[52].mxu1 %v2508_v53 }
 0x5ad   :  { %v3434_v62 = vpop.f32.mrb[28].mxu0 }
 0x5ae   :  { %v2826_v50 = vpop.f32.mrb[29].mxu0 }
 0x5af   :  { %v3435_v7 = vpop.f32.mrb[30].mxu0 }
 0x5b0   :  { %v2829_v18 = vpop.f32.mrb[31].mxu0 }
 0x5e1   :  { %v6013_v55 = vpop.f32.mrb[32].mxu0 }
 0x5e2   :  { %v2842_v54 = vpop.f32.mrb[33].mxu0 }
 0x5e3   :  { %v6015_v5 = vpop.f32.mrb[34].mxu0 }
 0x5e4   :  { %v2845_v21 = vpop.f32.mrb[35].mxu0 }
 0x5e9   :  { %v6017_v34 = vpop.f32.mrb[36].mxu0 }
 0x5ea   :  { %v6019_v51 = vpop.f32.mrb[37].mxu0 }
 0x5eb   :  { %v6021_v58 = vpop.f32.mrb[38].mxu0 }
 0x5ec   :  { %v6023_v63 = vpop.f32.mrb[39].mxu0 }
 0x61c   :  { %v3291_v42 = vpop.f32.mrb[24].mxu1 }
 0x61d   :  { %v3292_v17 = vpop.f32.mrb[25].mxu1 }
 0x61e   :  { %v3293_v24 = vadd.f32 %v3292_v17, %v3291_v42  ;;  %v3294_v38 = vpop.f32.mrb[26].mxu1 }
 0x61f   :  { %v3295_v20 = vpop.f32.mrb[27].mxu1 }
 0x620   :  { %v2811_v37 = vadd.f32 %v3293_v24, %v2810_v48  ;;  %v3296_v60 = vadd.f32 %v3295_v20, %v3294_v38 }
 0x622   :  { %v2814_v31 = vadd.f32 %v3296_v60, %v2813_v46  ;;  %v2873_v32 = vmax.f32 %v2811_v37, 0.0 }
 0x624   :  { %v2874_v9 = vmax.f32 %v2814_v31, 0.0 }
 0x626   :  { %v2889_v28 = vpack.c.bf16 %v2874_v9, %v2873_v32 }
 0x628   :  { %3446 = vmatprep.mubr.msk.bf16.mxu0 %vm736_vm4, %v2889_v28 }
 0x62c   :  { %v3297_v45 = vpop.f32.mrb[28].mxu1 }
 0x62d   :  { %v3298_v59 = vpop.f32.mrb[29].mxu1 }
 0x62e   :  { %v3299_v11 = vadd.f32 %v3298_v59, %v3297_v45  ;;  %v3300_v0 = vpop.f32.mrb[30].mxu1 }
 0x62f   :  { %v3301_v14 = vpop.f32.mrb[31].mxu1 }
 0x630   :  { %v2819_v23 = vadd.f32 %v3430_v10, %v3299_v11  ;;  %v3302_v19 = vadd.f32 %v3301_v14, %v3300_v0 }
 0x632   :  { %v2822_v8 = vadd.f32 %v3431_v35, %v3302_v19  ;;  %v2875_v26 = vmax.f32 %v2819_v23, 0.0 }
 0x634   :  { %v2876_v3 = vmax.f32 %v2822_v8, 0.0 }
 0x636   :  { %v2890_v1 = vpack.c.bf16 %v2876_v3, %v2875_v26 }
 0x638   :  { %v3303_v47 = vpop.f32.mrb[32].mxu1  ;;  %3447 = vmatmul.mubr.msk.bf16.vlgmr.msra.gmra.mrb[40].mxu0 %vm736_vm4, %v2890_v1 }
 0x639   :  { %v3304_v15 = vpop.f32.mrb[33].mxu1 }
 0x63a   :  { %v3305_v52 = vadd.f32 %v3304_v15, %v3303_v47  ;;  %v3306_v44 = vpop.f32.mrb[34].mxu1 }
 0x63b   :  { %v3307_v41 = vpop.f32.mrb[35].mxu1 }
 0x63c   :  { %v2827_v16 = vadd.f32 %v3305_v52, %v2826_v50  ;;  %v3308_v57 = vadd.f32 %v3307_v41, %v3306_v44 }
 0x63e   :  { %v2830_v22 = vadd.f32 %v3308_v57, %v2829_v18  ;;  %v2877_v27 = vmax.f32 %v2827_v16, 0.0 }
 0x640   :  { %v2878_v56 = vmax.f32 %v2830_v22, 0.0 }
 0x642   :  { %v2891_v61 = vpack.c.bf16 %v2878_v56, %v2877_v27 }
 0x644   :  { %3450 = vmatprep.mubr.msk.bf16.mxu0 %vm736_vm4, %v2891_v61 }
 0x659   :  { %v3309_v6 = vpop.f32.mrb[36].mxu1 }
 0x65a   :  { %v3310_v33 = vpop.f32.mrb[37].mxu1 }
 0x65b   :  { %v3311_v49 = vadd.f32 %v3310_v33, %v3309_v6  ;;  %v3312_v40 = vpop.f32.mrb[38].mxu1 }
 0x65c   :  { %v3313_v2 = vpop.f32.mrb[39].mxu1 }
 0x65d   :  { %v2835_v30 = vadd.f32 %v3434_v62, %v3311_v49  ;;  %v3314_v4 = vadd.f32 %v3313_v2, %v3312_v40 }
 0x65f   :  { %v2838_v13 = vadd.f32 %v3435_v7, %v3314_v4  ;;  %v2879_v39 = vmax.f32 %v2835_v30, 0.0 }
 0x661   :  { %v2880_v36 = vmax.f32 %v2838_v13, 0.0  ;;  %v3315_v25 = vpop.f32.mrb[40].mxu1 }
 0x662   :  { %v3316_v29 = vpop.f32.mrb[41].mxu1 }
 0x663   :  { %v2892_v10 = vpack.c.bf16 %v2880_v36, %v2879_v39  ;;  %v3317_v12 = vadd.f32 %v3316_v29, %v3315_v25  ;;  %v3318_v48 = vpop.f32.mrb[42].mxu1 }
 0x664   :  { %v3319_v53 = vpop.f32.mrb[43].mxu1 }
 0x665   :  { %v2843_v35 = vadd.f32 %v3317_v12, %v2842_v54  ;;  %v3320_v46 = vadd.f32 %v3319_v53, %v3318_v48  ;;  %3451 = vmatmul.mubr.msk.bf16.gmra.mrb[44].mxu0 %vm736_vm4, %v2892_v10 }
 0x667   :  { %v2846_v50 = vadd.f32 %v3320_v46, %v2845_v21  ;;  %v2881_v18 = vmax.f32 %v2843_v35, 0.0 }
 0x669   :  { %v2882_v43 = vmax.f32 %v2846_v50, 0.0  ;;  %v3321_v42 = vpop.f32.mrb[44].mxu1 }
 0x66a   :  { %v3322_v17 = vpop.f32.mrb[45].mxu1 }
 0x66b   :  { %v2893_v62 = vpack.c.bf16 %v2882_v43, %v2881_v18  ;;  %v3323_v24 = vadd.f32 %v3322_v17, %v3321_v42  ;;  %v3324_v7 = vpop.f32.mrb[46].mxu1 }
 0x66c   :  { %v3325_v38 = vpop.f32.mrb[47].mxu1 }
 0x66d   :  { %v2851_v20 = vadd.f32 %v6013_v55, %v3323_v24  ;;  %v3326_v37 = vadd.f32 %v3325_v38, %v3324_v7  ;;  %3454 = vmatprep.mubr.msk.bf16.mxu0 %vm736_vm4, %v2893_v62 }
 0x66f   :  { %v2854_v60 = vadd.f32 %v6015_v5, %v3326_v37  ;;  %v2883_v54 = vmax.f32 %v2851_v20, 0.0 }
 0x671   :  { %v2884_v31 = vmax.f32 %v2854_v60, 0.0 }
 0x673   :  { %v2894_v32 = vpack.c.bf16 %v2884_v31, %v2883_v54 }
 0x674   :  { %v3327_v9 = vpop.f32.mrb[48].mxu1 }
 0x675   :  { %v3328_v21 = vpop.f32.mrb[49].mxu1  ;;  %3455 = vmatmul.mubr.msk.bf16.gmra.mrb[48].mxu0 %vm736_vm4, %v2894_v32 }
 0x676   :  { %v3329_v28 = vadd.f32 %v3328_v21, %v3327_v9  ;;  %v3330_v45 = vpop.f32.mrb[50].mxu1 }
 0x677   :  { %v3331_v59 = vpop.f32.mrb[51].mxu1 }
 0x678   :  { %v2859_v11 = vadd.f32 %v3329_v28, %v6019_v51  ;;  %v3332_v0 = vadd.f32 %v3331_v59, %v3330_v45 }
 0x67a   :  { %v2862_v55 = vadd.f32 %v3332_v0, %v6023_v63  ;;  %v2885_v14 = vmax.f32 %v2859_v11, 0.0 }
 0x67c   :  { %v2886_v23 = vmax.f32 %v2862_v55, 0.0  ;;  %v3333_v19 = vpop.f32.mrb[52].mxu1 }
 0x67d   :  { %v3334_v8 = vpop.f32.mrb[53].mxu1 }
 0x67e   :  { %v2895_v5 = vpack.c.bf16 %v2886_v23, %v2885_v14  ;;  %v3335_v26 = vadd.f32 %v3334_v8, %v3333_v19  ;;  %v3336_v3 = vpop.f32.mrb[54].mxu1 }
 0x67f   :  { %v3337_v1 = vpop.f32.mrb[55].mxu1 }
 0x680   :  { %v2867_v47 = vadd.f32 %v6017_v34, %v3335_v26  ;;  %v3338_v15 = vadd.f32 %v3337_v1, %v3336_v3  ;;  %3458 = vmatprep.mubr.msk.bf16.mxu0 %vm736_vm4, %v2895_v5 }
 0x682   :  { %v2870_v52 = vadd.f32 %v6021_v58, %v3338_v15  ;;  %v2887_v44 = vmax.f32 %v2867_v47, 0.0 }
 0x684   :  { %v2888_v51 = vmax.f32 %v2870_v52, 0.0 }
 0x686   :  { %v2896_v41 = vpack.c.bf16 %v2888_v51, %v2887_v44 }
 0x688   :  { %3459 = vmatmul.mubr.msk.bf16.gmra.mrb[52].mxu0 %vm736_vm4, %v2896_v41 }
 0x70b   :  { %v3448_v63 = vpop.f32.mrb[40].mxu0 }
 0x70c   :  { %v3028_v16 = vmax.f32 %v3448_v63, 0.0  ;;  %v2963_v57 = vpop.f32.mrb[41].mxu0 }
 0x70d   :  { %v3026_v22 = vmax.f32 %v2963_v57, 0.0  ;;  %v3449_v27 = vpop.f32.mrb[42].mxu0 }
 0x70e   :  { %3044 = vst.msk [vmem:[%s6109_s6 + $0x10] sm:$0xff] %vm804_vm8, %v3028_v16  ;;  %v3029_v34 = vmax.f32 %v3449_v27, 0.0  ;;  %v2966_v56 = vpop.f32.mrb[43].mxu0 }
 0x70f   :  { %3042 = vst.msk [vmem:[%s6109_s6] sm:$0xff] %vm804_vm8, %v3026_v22  ;;  %v3027_v58 = vmax.f32 %v2966_v56, 0.0 }
 0x710   :  { %3045 = vst.msk [vmem:[%s6109_s6 + $0x18] sm:$0xff] %vm804_vm8, %v3029_v34 }
 0x711   :  { %3043 = vst.msk [vmem:[%s6109_s6 + $0x8] sm:$0xff] %vm804_vm8, %v3027_v58 }
 0x738   :  { %v3452_v61 = vpop.f32.mrb[44].mxu0 }
 0x739   :  { %v3032_v6 = vmax.f32 %v3452_v61, 0.0  ;;  %v2979_v33 = vpop.f32.mrb[45].mxu0 }
 0x73a   :  { %v3030_v49 = vmax.f32 %v2979_v33, 0.0  ;;  %v3453_v40 = vpop.f32.mrb[46].mxu0 }
 0x73b   :  { %3048 = vst.msk [vmem:[%s6109_s6 + $0x30] sm:$0xff] %vm804_vm8, %v3032_v6  ;;  %v3033_v2 = vmax.f32 %v3453_v40, 0.0  ;;  %v2982_v30 = vpop.f32.mrb[47].mxu0 }
 0x73c   :  { %3046 = vst.msk [vmem:[%s6109_s6 + $0x20] sm:$0xff] %vm804_vm8, %v3030_v49  ;;  %v3031_v4 = vmax.f32 %v2982_v30, 0.0 }
 0x73d   :  { %3049 = vst.msk [vmem:[%s6109_s6 + $0x38] sm:$0xff] %vm804_vm8, %v3033_v2 }
 0x73e   :  { %3047 = vst.msk [vmem:[%s6109_s6 + $0x28] sm:$0xff] %vm804_vm8, %v3031_v4 }
 0x748   :  { %v3456_v13 = vpop.f32.mrb[48].mxu0 }
 0x749   :  { %v3036_v39 = vmax.f32 %v3456_v13, 0.0  ;;  %v2995_v36 = vpop.f32.mrb[49].mxu0 }
 0x74a   :  { %v3034_v25 = vmax.f32 %v2995_v36, 0.0  ;;  %v3457_v29 = vpop.f32.mrb[50].mxu0 }
 0x74b   :  { %3052 = vst.msk [vmem:[%s6109_s6 + $0x50] sm:$0xff] %vm804_vm8, %v3036_v39  ;;  %v3037_v10 = vmax.f32 %v3457_v29, 0.0  ;;  %v2998_v12 = vpop.f32.mrb[51].mxu0 }
 0x74c   :  { %3050 = vst.msk [vmem:[%s6109_s6 + $0x40] sm:$0xff] %vm804_vm8, %v3034_v25  ;;  %v3035_v48 = vmax.f32 %v2998_v12, 0.0 }
 0x74d   :  { %3053 = vst.msk [vmem:[%s6109_s6 + $0x58] sm:$0xff] %vm804_vm8, %v3037_v10 }
 0x74e   :  { %3051 = vst.msk [vmem:[%s6109_s6 + $0x48] sm:$0xff] %vm804_vm8, %v3035_v48 }
 0x75b   :  { %v3460_v53 = vpop.f32.mrb[52].mxu0 }
 0x75c   :  { %v3040_v35 = vmax.f32 %v3460_v53, 0.0  ;;  %v3011_v46 = vpop.f32.mrb[53].mxu0 }
 0x75d   :  { %v3038_v50 = vmax.f32 %v3011_v46, 0.0  ;;  %v3461_v18 = vpop.f32.mrb[54].mxu0 }
 0x75e   :  { %3056 = vst.msk [vmem:[%s6109_s6 + $0x70] sm:$0xff] %vm804_vm8, %v3040_v35  ;;  %v3041_v43 = vmax.f32 %v3461_v18, 0.0  ;;  %v3014_v42 = vpop.f32.mrb[55].mxu0 }
 0x75f   :  { %3054 = vst.msk [vmem:[%s6109_s6 + $0x60] sm:$0xff] %vm804_vm8, %v3038_v50  ;;  %v3039_v17 = vmax.f32 %v3014_v42, 0.0 }
 0x760   :  { %3057 = vst.msk [vmem:[%s6109_s6 + $0x78] sm:$0xff] %vm804_vm8, %v3041_v43 }
 0x761   :  { %3055 = vst.msk [vmem:[%s6109_s6 + $0x68] sm:$0xff] %vm804_vm8, %v3039_v17 }

</bundles_post_ra>
